<compile_context>
chip_gen: v6e
topology: v6e:2x2x1
jax: 0.10.0
libtpu: 0.0.40
codegen_flags: <defaults>
</compile_context>

<pallas_src>
import functools

import jax
import jax.numpy as jnp
from jax.experimental import pallas as pl
from jax.experimental.pallas import tpu as pltpu


def _round_up(x, m):
    return ((x + m - 1) // m) * m


def _default_tile_m():
    # v6e/v7x: 256-row tiles feed the 2x256x256 MXU better and halve grid steps.
    # v5e (4x128x128 MXU, smallest default scoped VMEM): stay at 128.
    try:
        kind = jax.devices()[0].device_kind.lower()
    except Exception:
        return 128
    if "v6" in kind or "v7" in kind:
        return 256
    return 128


# ----------------------------------------------------------------------------
# Kernel factory (K, padded widths and the row tile are static)
# ----------------------------------------------------------------------------
def _make_gconv_gru_kernel(K, F_out_p, TM):
    Fp = F_out_p

    def kernel(lap_ref, feat_ref, h_ref, w_all_ref, w_hh_ref, b_ref, out_ref,
               t_a, t_b, s_a, s_b, acc_ref):
        # Grid = (phase, row_tile), phase-major iteration:
        #   0            : T_0 = [X|H],  acc  = T_0 @ W_all[0]
        #   1 .. K-1     : Chebyshev recursion on [X|H],  acc += T_k @ W_all[k]
        #   K            : R gate, S_0 = H*R, acc_h += S_0 @ W_hh[0]
        #   K+1 .. 2K-1  : Chebyshev recursion on H*R,    acc_h += S_q @ W_hh[q]
        #   2K-1 (same)  : finalize  H' = Z*H + (1-Z)*tanh(acc_h + b_h)
        p = pl.program_id(0)
        row0 = pl.multiple_of(pl.program_id(1) * TM, TM)
        rows = pl.ds(row0, TM)

        def cheb_first(prev_full, own, w_ref, col0, ncols):
            # T_1 = L @ T_0  (no T_{-1} term, no select on the hot path).
            prod = jnp.dot(lap_ref[...], prev_full[...],
                           preferred_element_type=jnp.float32)
            t_new = prod.astype(jnp.bfloat16)
            own[rows, :] = t_new
            acc_ref[rows, col0:col0 + ncols] += jnp.dot(
                t_new, w_ref[0], preferred_element_type=jnp.float32)

        def cheb_next(prev_full, own, w_ref, col0, ncols):
            # T_k = 2 L T_{k-1} - T_{k-2};  `own` holds T_{k-2} and receives T_k.
            prod = jnp.dot(lap_ref[...], prev_full[...],
                           preferred_element_type=jnp.float32)
            prev2 = own[rows, :].astype(jnp.float32)
            t_new = (2.0 * prod - prev2).astype(jnp.bfloat16)
            own[rows, :] = t_new
            acc_ref[rows, col0:col0 + ncols] += jnp.dot(
                t_new, w_ref[0], preferred_element_type=jnp.float32)

        # ---- phase 0: T_0 = [X|H], acc = T_0 @ W_all[0] ----------------------
        @pl.when(p == 0)
        def _():
            f = feat_ref[...]                                  # (TM, Fcat) bf16
            t_a[rows, :] = f
            acc_ref[rows, :] = jnp.dot(f, w_all_ref[0],
                                       preferred_element_type=jnp.float32)

        # ---- phases 1..K-1: recursion on [X|H] (one branch per level) --------
        for k in range(1, K):
            src, dst = (t_a, t_b) if k % 2 else (t_b, t_a)
            fn = cheb_first if k == 1 else cheb_next
            pl.when(p == k)(functools.partial(fn, src, dst, w_all_ref, 0, 3 * Fp))

        # ---- phase K: reset gate, S_0 = H*R, candidate accumulation starts ----
        @pl.when(p == K)
        def _():
            r = jax.nn.sigmoid(acc_ref[rows, Fp:2 * Fp] + b_ref[0:1, Fp:2 * Fp])
            hr = h_ref[...] * r                                # f32 gate math
            hr_b = hr.astype(jnp.bfloat16)
            s_a[rows, :] = hr_b
            acc_ref[rows, 2 * Fp:3 * Fp] += jnp.dot(
                hr_b, w_hh_ref[0], preferred_element_type=jnp.float32)

        # ---- phases K+1..2K-1: recursion on H*R -------------------------------
        for k in range(1, K):
            src, dst = (s_a, s_b) if k % 2 else (s_b, s_a)
            fn = cheb_first if k == 1 else cheb_next
            pl.when(p == K + k)(
                functools.partial(fn, src, dst, w_hh_ref, 2 * Fp, Fp))

        # ---- final phase: GRU state update ------------------------------------
        @pl.when(p == 2 * K - 1)
        def _():
            z = jax.nn.sigmoid(acc_ref[rows, 0:Fp] + b_ref[0:1, 0:Fp])
            h_tilde = jnp.tanh(acc_ref[rows, 2 * Fp:3 * Fp]
                               + b_ref[0:1, 2 * Fp:3 * Fp])
            # NOTE: padded node rows (N..N_pad) hold (1-z)*tanh(b_h) garbage;
            # the wrapper slices them off - do not reuse the padded output.
            out_ref[...] = z * h_ref[...] + (1.0 - z) * h_tilde

    return kernel


# ----------------------------------------------------------------------------
# Glue: dense scaled Laplacian  L-hat = -D^{-1/2} A D^{-1/2}  (lambda_max = 2)
# ----------------------------------------------------------------------------
def scaled_laplacian_dense(edge_index, edge_weight, num_nodes):
    row, col = edge_index[0], edge_index[1]
    A = jnp.zeros((num_nodes, num_nodes), jnp.float32).at[row, col].add(edge_weight)
    deg = A.sum(axis=1)
    d_inv_sqrt = jnp.where(deg > 0, 1.0 / jnp.sqrt(deg), 0.0)
    return -(d_inv_sqrt[:, None] * A * d_inv_sqrt[None, :])


# ----------------------------------------------------------------------------
# Wrapper
# ----------------------------------------------------------------------------
def gconv_gru(X, edge_index, edge_weight, H, params, *, tile_m=None):
    N, F_in = X.shape
    K, _, F_out = params["wxz"].shape
    if H is None:
        H = jnp.zeros((N, F_out), jnp.float32)
    if edge_weight is None:
        edge_weight = jnp.ones((edge_index.shape[1],), jnp.float32)
    if tile_m is None:
        tile_m = _default_tile_m()
    assert tile_m % 128 == 0 and tile_m > 0, "tile_m must be a multiple of 128"

    F_out_p = _round_up(F_out, 128)
    Fcat = _round_up(F_in + F_out, 128)       # single fused 128-lane pad of [X|H]
    Fp = F_out_p
    TM = tile_m
    N_pad = _round_up(N, TM)
    n_tiles = N_pad // TM

    # bf16 Laplacian (the dominant HBM stream), zero-padded to (N_pad, N_pad).
    lap = scaled_laplacian_dense(edge_index, edge_weight, N)
    lap_p = jnp.zeros((N_pad, N_pad), jnp.float32).at[:N, :N].set(lap)
    lap_p = lap_p.astype(jnp.bfloat16)

    # Fused feature slab T_0 = [X | H]; only ever an MXU operand / bf16 carry.
    feat = jnp.zeros((N_pad, Fcat), jnp.float32)
    feat = feat.at[:N, :F_in].set(X)
    feat = feat.at[:N, F_in:F_in + F_out].set(H)
    feat = feat.astype(jnp.bfloat16)

    # H alone, lane-aligned and f32, for the element-wise gate math.
    h_pad = jnp.zeros((N_pad, Fp), jnp.float32).at[:N, :F_out].set(H)

    # Block-fused gate weights W_all[k] : (Fcat, 3*Fp), columns [z | r | h].
    # Rows [0, F_in) carry conv_x_*; rows [F_in, F_in+F_out) carry conv_h_{z,r}.
    w_all = jnp.zeros((K, Fcat, 3 * Fp), jnp.float32)
    w_all = w_all.at[:, :F_in, 0:F_out].set(params["wxz"])
    w_all = w_all.at[:, :F_in, Fp:Fp + F_out].set(params["wxr"])
    w_all = w_all.at[:, :F_in, 2 * Fp:2 * Fp + F_out].set(params["wxh"])
    w_all = w_all.at[:, F_in:F_in + F_out, 0:F_out].set(params["whz"])
    w_all = w_all.at[:, F_in:F_in + F_out, Fp:Fp + F_out].set(params["whr"])
    w_all = w_all.astype(jnp.bfloat16)

    w_hh = jnp.zeros((K, Fp, Fp), jnp.float32)
    w_hh = w_hh.at[:, :F_out, :F_out].set(params["whh"]).astype(jnp.bfloat16)

    # Single fused bias vector [b_z | b_r | b_h].
    bias = jnp.zeros((1, 3 * Fp), jnp.float32)
    bias = bias.at[0, 0:F_out].set(params["bxz"] + params["bhz"])
    bias = bias.at[0, Fp:Fp + F_out].set(params["bxr"] + params["bhr"])
    bias = bias.at[0, 2 * Fp:2 * Fp + F_out].set(params["bxh"] + params["bhh"])

    kernel = _make_gconv_gru_kernel(K, Fp, TM)
    grid = (2 * K, n_tiles)

    # --- DMA-dedup index maps: only move a block in phases that read it -------
    def lap_map(p, i):       # lap is unused in phases 0 and K
        return (jnp.where((p == 0) | (p == K), 0, i), 0)

    def feat_map(p, i):      # [X|H] only read in phase 0
        return (jnp.where(p == 0, i, 0), 0)

    def h_map(p, i):         # H only read in phases K and 2K-1
        return (jnp.where((p == K) | (p == 2 * K - 1), i, 0), 0)

    def w_all_map(p, i):     # used in phases 0..K-1; hold the last block after
        return (jnp.minimum(p, K - 1), 0, 0)

    def w_hh_map(p, i):      # used in phases K..2K-1; pre-hold block 0 before
        return (jnp.maximum(p - K, 0), 0, 0)

    def out_map(p, i):       # written (and written back) only in the final phase
        return (jnp.where(p == 2 * K - 1, i, 0), 0)

    # --- VMEM ledger -> explicit scoped-VMEM limit -----------------------------
    block_bytes = 2 * (TM * N_pad * 2          # lap slab (bf16, double-buffered)
                       + TM * Fcat * 2         # feat (bf16)
                       + TM * Fp * 4           # H (f32)
                       + Fcat * 3 * Fp * 2     # w_all
                       + Fp * Fp * 2           # w_hh
                       + 3 * Fp * 4            # bias
                       + TM * Fp * 4)          # out
    scratch_bytes = (2 * N_pad * Fcat * 2      # bf16 T carries
                     + 2 * N_pad * Fp * 2      # bf16 S carries
                     + N_pad * 3 * Fp * 4)     # f32 fused gate accumulator
    vmem_limit = int(min(max(block_bytes + scratch_bytes + (8 << 20), 32 << 20),
                         127 << 20))

    flops = 2 * N_pad * ((K - 1) * N_pad * (Fcat + Fp)
                         + K * (Fcat * 3 * Fp + Fp * Fp))
    bytes_accessed = (2 * (K - 1) * N_pad * N_pad * 2       # dedup'ed lap stream
                      + N_pad * Fcat * 2 + 2 * N_pad * Fp * 4
                      + K * (Fcat * 3 * Fp + Fp * Fp) * 2
                      + N_pad * Fp * 4)

    out = pl.pallas_call(
        kernel,
        out_shape=jax.ShapeDtypeStruct((N_pad, Fp), jnp.float32),
        grid_spec=pltpu.PrefetchScalarGridSpec(
            num_scalar_prefetch=0,
            grid=grid,
            in_specs=[
                pl.BlockSpec((TM, N_pad), lap_map),          # lap row slab (bf16)
                pl.BlockSpec((TM, Fcat), feat_map),          # [X|H] tile (bf16)
                pl.BlockSpec((TM, Fp), h_map),               # H tile (f32)
                pl.BlockSpec((1, Fcat, 3 * Fp), w_all_map),  # fused gate weights
                pl.BlockSpec((1, Fp, Fp), w_hh_map),         # candidate weights
                pl.BlockSpec((1, 3 * Fp), lambda p, i: (0, 0)),  # fused bias
            ],
            out_specs=pl.BlockSpec((TM, Fp), out_map),
            scratch_shapes=[
                pltpu.VMEM((N_pad, Fcat), jnp.bfloat16),     # T carry (ping)
                pltpu.VMEM((N_pad, Fcat), jnp.bfloat16),     # T carry (pong)
                pltpu.VMEM((N_pad, Fp), jnp.bfloat16),       # S carry (ping)
                pltpu.VMEM((N_pad, Fp), jnp.bfloat16),       # S carry (pong)
                pltpu.VMEM((N_pad, 3 * Fp), jnp.float32),    # fused gate accum
            ],
        ),
        # Row tiles communicate through the shared full-N scratch across phases,
        # so both grid axes stay "arbitrary" (single TensorCore).
        # TODO(synk): v7x dual-TC split via core_map + shared-VMEM carry exchange.
        compiler_params=pltpu.CompilerParams(
            dimension_semantics=("arbitrary", "arbitrary"),
            vmem_limit_bytes=vmem_limit),
        cost_estimate=pl.CostEstimate(flops=int(flops),
                                      transcendentals=int(3 * N_pad * Fp),
                                      bytes_accessed=int(bytes_accessed)),
    )(lap_p, feat, h_pad, w_all, w_hh, bias)

    return out[:N, :F_out]


# ----------------------------------------------------------------------------
# Pure-JAX reference (f32, dense) for a numerical sanity check
# ----------------------------------------------------------------------------
def gconv_gru_reference(X, edge_index, edge_weight, H, params):
    N = X.shape[0]
    K = params["wxz"].shape[0]
    lap = scaled_laplacian_dense(edge_index, edge_weight, N)

    def cheb(feat, W, b):
        tx_prev = feat
        out = tx_prev @ W[0]
        if K > 1:
            tx_cur = lap @ feat
            out = out + tx_cur @ W[1]
            for k in range(2, K):
                tx_new = 2.0 * (lap @ tx_cur) - tx_prev
                out = out + tx_new @ W[k]
                tx_prev, tx_cur = tx_cur, tx_new
        return out + b

    Z = jax.nn.sigmoid(cheb(X, params["wxz"], params["bxz"])
                       + cheb(H, params["whz"], params["bhz"]))
    R = jax.nn.sigmoid(cheb(X, params["wxr"], params["bxr"])
                       + cheb(H, params["whr"], params["bhr"]))
    H_tilde = jnp.tanh(cheb(X, params["wxh"], params["bxh"])
                       + cheb(H * R, params["whh"], params["bhh"]))
    return Z * H + (1.0 - Z) * H_tilde


# ----------------------------------------------------------------------------
# Deterministic parameter init (ChebConv: weight [K, in, out], bias [out])
# ----------------------------------------------------------------------------
def init_params(key, in_channels, out_channels, K):
    names_in = {"wxz": in_channels, "wxr": in_channels, "wxh": in_channels,
                "whz": out_channels, "whr": out_channels, "whh": out_channels}
    params = {}
    keys = jax.random.split(key, 12)
    for i, (name, cin) in enumerate(names_in.items()):
        scale = 1.0 / jnp.sqrt(jnp.float32(cin * K))
        params[name] = scale * jax.random.normal(
            keys[i], (K, cin, out_channels), jnp.float32)
        bname = "b" + name[1:]
        params[bname] = 0.01 * jax.random.normal(
            keys[6 + i], (out_channels,), jnp.float32)
    return params


if __name__ == "__main__":
    key = jax.random.PRNGKey(0)
    N, F_in, F_out, K = 300, 4, 8, 3   # >1 row tile at TM=128 and TM=256

    # Deterministic small graph: bidirectional weighted ring over N nodes.
    src = jnp.arange(N, dtype=jnp.int32)
    dst = (src + 1) % N
    edge_index = jnp.stack([jnp.concatenate([src, dst]),
                            jnp.concatenate([dst, src])], axis=0)   # [2, 2N]
    k_x, k_w, k_h, k_p = jax.random.split(key, 4)
    edge_weight = jax.random.uniform(k_w, (2 * N,), jnp.float32, 0.5, 1.5)

    X = jax.random.normal(k_x, (N, F_in), jnp.float32)
    H0 = jax.random.normal(k_h, (N, F_out), jnp.float32)
    params = init_params(k_p, F_in, F_out, K)

    H_new = jax.jit(gconv_gru)(X, edge_index, edge_weight, H0, params)
    jax.block_until_ready(H_new)
    assert H_new.shape == (N, F_out)

    H_ref = gconv_gru_reference(X, edge_index, edge_weight, H0, params)
    err = float(jnp.max(jnp.abs(H_new - H_ref)))
    assert err < 7.5e-2, f"max abs error vs reference: {err}"
    print("KERNEL_OK")
</pallas_src>

<mosaic_0001>
module attributes {stable_mosaic.version = 11 : i64} {
  func.func private @main(%arg0: i32) attributes {dimension_semantics = [#tpu.dimension_semantics<core_parallel>], iteration_bounds = array<i64: 2>, tpu.core_type = #tpu.core_type<sc_scalar_subcore>, window_params = []} {
    return
  }
}

module attributes {stable_mosaic.version = 11 : i64} {
  func.func private @main(%arg0: i32) attributes {dimension_semantics = [#tpu.dimension_semantics<core_parallel>], iteration_bounds = array<i64: 2>, tpu.core_type = #tpu.core_type<sc_scalar_subcore>, window_params = []} {
    return
  }
}

module attributes {stable_mosaic.version = 11 : i64} {
  func.func @kernel(%arg0: i32, %arg1: i32, %arg2: memref<128x384xbf16, #tpu.memory_space<vmem>>, %arg3: memref<128x128xbf16, #tpu.memory_space<vmem>>, %arg4: memref<128x128xf32, #tpu.memory_space<vmem>>, %arg5: memref<1x128x384xbf16, #tpu.memory_space<vmem>>, %arg6: memref<1x128x128xbf16, #tpu.memory_space<vmem>>, %arg7: memref<1x384xf32, #tpu.memory_space<vmem>>, %arg8: memref<128x128xf32, #tpu.memory_space<vmem>>, %arg9: memref<384x128xbf16, #tpu.memory_space<vmem>>, %arg10: memref<384x128xbf16, #tpu.memory_space<vmem>>, %arg11: memref<384x128xbf16, #tpu.memory_space<vmem>>, %arg12: memref<384x128xbf16, #tpu.memory_space<vmem>>, %arg13: memref<384x384xf32, #tpu.memory_space<vmem>>) attributes {dimension_semantics = [#tpu.dimension_semantics<arbitrary>, #tpu.dimension_semantics<arbitrary>], iteration_bounds = array<i64: 6, 3>, scalar_prefetch = 0 : i64, scratch_operands = 5 : i64, tpu.core_type = #tpu.core_type<tc>, window_params = [{transform_indices = @transform_0, window_bounds = array<i64: 128, 384>}, {transform_indices = @transform_1, window_bounds = array<i64: 128, 128>}, {transform_indices = @transform_2, window_bounds = array<i64: 128, 128>}, {transform_indices = @transform_3, window_bounds = array<i64: 1, 128, 384>}, {transform_indices = @transform_4, window_bounds = array<i64: 1, 128, 128>}, {pipeline_mode = #tpu.pipeline_mode<synchronous>, transform_indices = @transform_5, window_bounds = array<i64: 1, 384>}, {transform_indices = @transform_6, window_bounds = array<i64: 128, 128>}]} {
    %c128_i32 = arith.constant 128 : i32
    %0 = arith.muli %arg1, %c128_i32 : i32
    %1 = tpu.assume_multiple %0, 128 : i32
    %c0_i32 = arith.constant 0 : i32
    %2 = arith.cmpi eq, %arg0, %c0_i32 : i32
    %3 = arith.extui %2 : i1 to i32
    %c0_i32_0 = arith.constant 0 : i32
    %4 = arith.cmpi ne, %3, %c0_i32_0 : i32
    scf.if %4 {
      %c0 = arith.constant 0 : index
      %c0_8 = arith.constant 0 : index
      %23 = vector.load %arg3[%c0, %c0_8] : memref<128x128xbf16, #tpu.memory_space<vmem>>, vector<128x128xbf16>
      %24 = arith.index_cast %1 : i32 to index
      %c0_9 = arith.constant 0 : index
      %25 = vector.load %arg9[%24, %c0_9] : memref<384x128xbf16, #tpu.memory_space<vmem>>, vector<128x128xbf16>
      tpu.vector_store %arg9[%24, %c0_9], %23 {strides = array<i32>} : memref<384x128xbf16, #tpu.memory_space<vmem>>, vector<128x128xbf16>,
      %c0_10 = arith.constant 0 : index
      %c0_11 = arith.constant 0 : index
      %c0_12 = arith.constant 0 : index
      %26 = vector.load %arg5[%c0_10, %c0_11, %c0_12] : memref<1x128x384xbf16, #tpu.memory_space<vmem>>, vector<1x128x384xbf16>
      %27 = vector.shape_cast %26 : vector<1x128x384xbf16> to vector<128x384xbf16>
      %cst = arith.constant dense<0.000000e+00> : vector<128x384xf32>
      %28 = tpu.matmul %23, %27, %cst {dimension_numbers = #tpu.dot_dimension_numbers<[1], [0], [0], [1], [0, 0, 1, 1], [], []>} : vector<128x128xbf16>, vector<128x384xbf16>, vector<128x384xf32> -> vector<128x384xf32>
      %29 = arith.index_cast %1 : i32 to index
      %c0_13 = arith.constant 0 : index
      %30 = vector.load %arg13[%29, %c0_13] : memref<384x384xf32, #tpu.memory_space<vmem>>, vector<128x384xf32>
      tpu.vector_store %arg13[%29, %c0_13], %28 {strides = array<i32>} : memref<384x384xf32, #tpu.memory_space<vmem>>, vector<128x384xf32>,
    } else {
    }
    %c1_i32 = arith.constant 1 : i32
    %5 = arith.cmpi eq, %arg0, %c1_i32 : i32
    %6 = arith.extui %5 : i1 to i32
    %c0_i32_1 = arith.constant 0 : i32
    %7 = arith.cmpi ne, %6, %c0_i32_1 : i32
    scf.if %7 {
      %c0 = arith.constant 0 : index
      %c0_8 = arith.constant 0 : index
      %23 = vector.load %arg2[%c0, %c0_8] : memref<128x384xbf16, #tpu.memory_space<vmem>>, vector<128x384xbf16>
      %c0_9 = arith.constant 0 : index
      %c0_10 = arith.constant 0 : index
      %24 = vector.load %arg9[%c0_9, %c0_10] : memref<384x128xbf16, #tpu.memory_space<vmem>>, vector<384x128xbf16>
      %cst = arith.constant dense<0.000000e+00> : vector<128x128xf32>
      %25 = tpu.matmul %23, %24, %cst {dimension_numbers = #tpu.dot_dimension_numbers<[1], [0], [0], [1], [0, 0, 1, 1], [], []>} : vector<128x384xbf16>, vector<384x128xbf16>, vector<128x128xf32> -> vector<128x128xf32>
      %26 = arith.truncf %25 : vector<128x128xf32> to vector<128x128xbf16>
      %27 = arith.index_cast %1 : i32 to index
      %c0_11 = arith.constant 0 : index
      %28 = vector.load %arg10[%27, %c0_11] : memref<384x128xbf16, #tpu.memory_space<vmem>>, vector<128x128xbf16>
      tpu.vector_store %arg10[%27, %c0_11], %26 {strides = array<i32>} : memref<384x128xbf16, #tpu.memory_space<vmem>>, vector<128x128xbf16>,
      %29 = arith.index_cast %1 : i32 to index
      %c0_12 = arith.constant 0 : index
      %30 = vector.load %arg13[%29, %c0_12] : memref<384x384xf32, #tpu.memory_space<vmem>>, vector<128x384xf32>
      %c0_13 = arith.constant 0 : index
      %c0_14 = arith.constant 0 : index
      %c0_15 = arith.constant 0 : index
      %31 = vector.load %arg5[%c0_13, %c0_14, %c0_15] : memref<1x128x384xbf16, #tpu.memory_space<vmem>>, vector<1x128x384xbf16>
      %32 = vector.shape_cast %31 : vector<1x128x384xbf16> to vector<128x384xbf16>
      %cst_16 = arith.constant dense<0.000000e+00> : vector<128x384xf32>
      %33 = tpu.matmul %26, %32, %cst_16 {dimension_numbers = #tpu.dot_dimension_numbers<[1], [0], [0], [1], [0, 0, 1, 1], [], []>} : vector<128x128xbf16>, vector<128x384xbf16>, vector<128x384xf32> -> vector<128x384xf32>
      %34 = arith.addf %30, %33 : vector<128x384xf32>
      %35 = arith.index_cast %1 : i32 to index
      %c0_17 = arith.constant 0 : index
      %36 = vector.load %arg13[%35, %c0_17] : memref<384x384xf32, #tpu.memory_space<vmem>>, vector<128x384xf32>
      tpu.vector_store %arg13[%35, %c0_17], %34 {strides = array<i32>} : memref<384x384xf32, #tpu.memory_space<vmem>>, vector<128x384xf32>,
    } else {
    }
    %c2_i32 = arith.constant 2 : i32
    %8 = arith.cmpi eq, %arg0, %c2_i32 : i32
    %9 = arith.extui %8 : i1 to i32
    %c0_i32_2 = arith.constant 0 : i32
    %10 = arith.cmpi ne, %9, %c0_i32_2 : i32
    scf.if %10 {
      %c0 = arith.constant 0 : index
      %c0_8 = arith.constant 0 : index
      %23 = vector.load %arg2[%c0, %c0_8] : memref<128x384xbf16, #tpu.memory_space<vmem>>, vector<128x384xbf16>
      %c0_9 = arith.constant 0 : index
      %c0_10 = arith.constant 0 : index
      %24 = vector.load %arg10[%c0_9, %c0_10] : memref<384x128xbf16, #tpu.memory_space<vmem>>, vector<384x128xbf16>
      %cst = arith.constant dense<0.000000e+00> : vector<128x128xf32>
      %25 = tpu.matmul %23, %24, %cst {dimension_numbers = #tpu.dot_dimension_numbers<[1], [0], [0], [1], [0, 0, 1, 1], [], []>} : vector<128x384xbf16>, vector<384x128xbf16>, vector<128x128xf32> -> vector<128x128xf32>
      %26 = arith.index_cast %1 : i32 to index
      %c0_11 = arith.constant 0 : index
      %27 = vector.load %arg9[%26, %c0_11] : memref<384x128xbf16, #tpu.memory_space<vmem>>, vector<128x128xbf16>
      %28 = arith.extf %27 : vector<128x128xbf16> to vector<128x128xf32>
      %cst_12 = arith.constant 2.000000e+00 : f32
      %29 = vector.broadcast %cst_12 : f32 to vector<128x128xf32>
      %30 = arith.mulf %29, %25 : vector<128x128xf32>
      %31 = arith.subf %30, %28 : vector<128x128xf32>
      %32 = arith.truncf %31 : vector<128x128xf32> to vector<128x128xbf16>
      %33 = arith.index_cast %1 : i32 to index
      %c0_13 = arith.constant 0 : index
      %34 = vector.load %arg9[%33, %c0_13] : memref<384x128xbf16, #tpu.memory_space<vmem>>, vector<128x128xbf16>
      tpu.vector_store %arg9[%33, %c0_13], %32 {strides = array<i32>} : memref<384x128xbf16, #tpu.memory_space<vmem>>, vector<128x128xbf16>,
      %35 = arith.index_cast %1 : i32 to index
      %c0_14 = arith.constant 0 : index
      %36 = vector.load %arg13[%35, %c0_14] : memref<384x384xf32, #tpu.memory_space<vmem>>, vector<128x384xf32>
      %c0_15 = arith.constant 0 : index
      %c0_16 = arith.constant 0 : index
      %c0_17 = arith.constant 0 : index
      %37 = vector.load %arg5[%c0_15, %c0_16, %c0_17] : memref<1x128x384xbf16, #tpu.memory_space<vmem>>, vector<1x128x384xbf16>
      %38 = vector.shape_cast %37 : vector<1x128x384xbf16> to vector<128x384xbf16>
      %cst_18 = arith.constant dense<0.000000e+00> : vector<128x384xf32>
      %39 = tpu.matmul %32, %38, %cst_18 {dimension_numbers = #tpu.dot_dimension_numbers<[1], [0], [0], [1], [0, 0, 1, 1], [], []>} : vector<128x128xbf16>, vector<128x384xbf16>, vector<128x384xf32> -> vector<128x384xf32>
      %40 = arith.addf %36, %39 : vector<128x384xf32>
      %41 = arith.index_cast %1 : i32 to index
      %c0_19 = arith.constant 0 : index
      %42 = vector.load %arg13[%41, %c0_19] : memref<384x384xf32, #tpu.memory_space<vmem>>, vector<128x384xf32>
      tpu.vector_store %arg13[%41, %c0_19], %40 {strides = array<i32>} : memref<384x384xf32, #tpu.memory_space<vmem>>, vector<128x384xf32>,
    } else {
    }
    %c3_i32 = arith.constant 3 : i32
    %11 = arith.cmpi eq, %arg0, %c3_i32 : i32
    %12 = arith.extui %11 : i1 to i32
    %c0_i32_3 = arith.constant 0 : i32
    %13 = arith.cmpi ne, %12, %c0_i32_3 : i32
    scf.if %13 {
      %23 = arith.index_cast %1 : i32 to index
      %c128 = arith.constant 128 : index
      %24 = vector.load %arg13[%23, %c128] : memref<384x384xf32, #tpu.memory_space<vmem>>, vector<128x128xf32>
      %c0 = arith.constant 0 : index
      %c128_8 = arith.constant 128 : index
      %25 = vector.load %arg7[%c0, %c128_8] : memref<1x384xf32, #tpu.memory_space<vmem>>, vector<1x128xf32>
      %26 = vector.broadcast %25 : vector<1x128xf32> to vector<128x128xf32>
      %27 = arith.addf %24, %26 : vector<128x128xf32>
      %28 = arith.negf %27 : vector<128x128xf32>
      %29 = math.exp %28 : vector<128x128xf32>
      %cst = arith.constant 1.000000e+00 : f32
      %30 = vector.broadcast %cst : f32 to vector<128x128xf32>
      %31 = arith.addf %30, %29 : vector<128x128xf32>
      %32 = arith.divf %30, %31 : vector<128x128xf32>
      %c0_9 = arith.constant 0 : index
      %c0_10 = arith.constant 0 : index
      %33 = vector.load %arg4[%c0_9, %c0_10] : memref<128x128xf32, #tpu.memory_space<vmem>>, vector<128x128xf32>
      %34 = arith.mulf %33, %32 : vector<128x128xf32>
      %35 = arith.truncf %34 : vector<128x128xf32> to vector<128x128xbf16>
      %36 = arith.index_cast %1 : i32 to index
      %c0_11 = arith.constant 0 : index
      %37 = vector.load %arg11[%36, %c0_11] : memref<384x128xbf16, #tpu.memory_space<vmem>>, vector<128x128xbf16>
      tpu.vector_store %arg11[%36, %c0_11], %35 {strides = array<i32>} : memref<384x128xbf16, #tpu.memory_space<vmem>>, vector<128x128xbf16>,
      %38 = arith.index_cast %1 : i32 to index
      %c256 = arith.constant 256 : index
      %39 = vector.load %arg13[%38, %c256] : memref<384x384xf32, #tpu.memory_space<vmem>>, vector<128x128xf32>
      %c0_12 = arith.constant 0 : index
      %c0_13 = arith.constant 0 : index
      %c0_14 = arith.constant 0 : index
      %40 = vector.load %arg6[%c0_12, %c0_13, %c0_14] : memref<1x128x128xbf16, #tpu.memory_space<vmem>>, vector<1x128x128xbf16>
      %41 = vector.shape_cast %40 : vector<1x128x128xbf16> to vector<128x128xbf16>
      %cst_15 = arith.constant dense<0.000000e+00> : vector<128x128xf32>
      %42 = tpu.matmul %35, %41, %cst_15 {dimension_numbers = #tpu.dot_dimension_numbers<[1], [0], [0], [1], [0, 0, 1, 1], [], []>} : vector<128x128xbf16>, vector<128x128xbf16>, vector<128x128xf32> -> vector<128x128xf32>
      %43 = arith.addf %39, %42 : vector<128x128xf32>
      %44 = arith.index_cast %1 : i32 to index
      %c256_16 = arith.constant 256 : index
      %45 = vector.load %arg13[%44, %c256_16] : memref<384x384xf32, #tpu.memory_space<vmem>>, vector<128x128xf32>
      tpu.vector_store %arg13[%44, %c256_16], %43 {strides = array<i32>} : memref<384x384xf32, #tpu.memory_space<vmem>>, vector<128x128xf32>,
    } else {
    }
    %c4_i32 = arith.constant 4 : i32
    %14 = arith.cmpi eq, %arg0, %c4_i32 : i32
    %15 = arith.extui %14 : i1 to i32
    %c0_i32_4 = arith.constant 0 : i32
    %16 = arith.cmpi ne, %15, %c0_i32_4 : i32
    scf.if %16 {
      %c0 = arith.constant 0 : index
      %c0_8 = arith.constant 0 : index
      %23 = vector.load %arg2[%c0, %c0_8] : memref<128x384xbf16, #tpu.memory_space<vmem>>, vector<128x384xbf16>
      %c0_9 = arith.constant 0 : index
      %c0_10 = arith.constant 0 : index
      %24 = vector.load %arg11[%c0_9, %c0_10] : memref<384x128xbf16, #tpu.memory_space<vmem>>, vector<384x128xbf16>
      %cst = arith.constant dense<0.000000e+00> : vector<128x128xf32>
      %25 = tpu.matmul %23, %24, %cst {dimension_numbers = #tpu.dot_dimension_numbers<[1], [0], [0], [1], [0, 0, 1, 1], [], []>} : vector<128x384xbf16>, vector<384x128xbf16>, vector<128x128xf32> -> vector<128x128xf32>
      %26 = arith.truncf %25 : vector<128x128xf32> to vector<128x128xbf16>
      %27 = arith.index_cast %1 : i32 to index
      %c0_11 = arith.constant 0 : index
      %28 = vector.load %arg12[%27, %c0_11] : memref<384x128xbf16, #tpu.memory_space<vmem>>, vector<128x128xbf16>
      tpu.vector_store %arg12[%27, %c0_11], %26 {strides = array<i32>} : memref<384x128xbf16, #tpu.memory_space<vmem>>, vector<128x128xbf16>,
      %29 = arith.index_cast %1 : i32 to index
      %c256 = arith.constant 256 : index
      %30 = vector.load %arg13[%29, %c256] : memref<384x384xf32, #tpu.memory_space<vmem>>, vector<128x128xf32>
      %c0_12 = arith.constant 0 : index
      %c0_13 = arith.constant 0 : index
      %c0_14 = arith.constant 0 : index
      %31 = vector.load %arg6[%c0_12, %c0_13, %c0_14] : memref<1x128x128xbf16, #tpu.memory_space<vmem>>, vector<1x128x128xbf16>
      %32 = vector.shape_cast %31 : vector<1x128x128xbf16> to vector<128x128xbf16>
      %cst_15 = arith.constant dense<0.000000e+00> : vector<128x128xf32>
      %33 = tpu.matmul %26, %32, %cst_15 {dimension_numbers = #tpu.dot_dimension_numbers<[1], [0], [0], [1], [0, 0, 1, 1], [], []>} : vector<128x128xbf16>, vector<128x128xbf16>, vector<128x128xf32> -> vector<128x128xf32>
      %34 = arith.addf %30, %33 : vector<128x128xf32>
      %35 = arith.index_cast %1 : i32 to index
      %c256_16 = arith.constant 256 : index
      %36 = vector.load %arg13[%35, %c256_16] : memref<384x384xf32, #tpu.memory_space<vmem>>, vector<128x128xf32>
      tpu.vector_store %arg13[%35, %c256_16], %34 {strides = array<i32>} : memref<384x384xf32, #tpu.memory_space<vmem>>, vector<128x128xf32>,
    } else {
    }
    %c5_i32 = arith.constant 5 : i32
    %17 = arith.cmpi eq, %arg0, %c5_i32 : i32
    %18 = arith.extui %17 : i1 to i32
    %c0_i32_5 = arith.constant 0 : i32
    %19 = arith.cmpi ne, %18, %c0_i32_5 : i32
    scf.if %19 {
      %c0 = arith.constant 0 : index
      %c0_8 = arith.constant 0 : index
      %23 = vector.load %arg2[%c0, %c0_8] : memref<128x384xbf16, #tpu.memory_space<vmem>>, vector<128x384xbf16>
      %c0_9 = arith.constant 0 : index
      %c0_10 = arith.constant 0 : index
      %24 = vector.load %arg12[%c0_9, %c0_10] : memref<384x128xbf16, #tpu.memory_space<vmem>>, vector<384x128xbf16>
      %cst = arith.constant dense<0.000000e+00> : vector<128x128xf32>
      %25 = tpu.matmul %23, %24, %cst {dimension_numbers = #tpu.dot_dimension_numbers<[1], [0], [0], [1], [0, 0, 1, 1], [], []>} : vector<128x384xbf16>, vector<384x128xbf16>, vector<128x128xf32> -> vector<128x128xf32>
      %26 = arith.index_cast %1 : i32 to index
      %c0_11 = arith.constant 0 : index
      %27 = vector.load %arg11[%26, %c0_11] : memref<384x128xbf16, #tpu.memory_space<vmem>>, vector<128x128xbf16>
      %28 = arith.extf %27 : vector<128x128xbf16> to vector<128x128xf32>
      %cst_12 = arith.constant 2.000000e+00 : f32
      %29 = vector.broadcast %cst_12 : f32 to vector<128x128xf32>
      %30 = arith.mulf %29, %25 : vector<128x128xf32>
      %31 = arith.subf %30, %28 : vector<128x128xf32>
      %32 = arith.truncf %31 : vector<128x128xf32> to vector<128x128xbf16>
      %33 = arith.index_cast %1 : i32 to index
      %c0_13 = arith.constant 0 : index
      %34 = vector.load %arg11[%33, %c0_13] : memref<384x128xbf16, #tpu.memory_space<vmem>>, vector<128x128xbf16>
      tpu.vector_store %arg11[%33, %c0_13], %32 {strides = array<i32>} : memref<384x128xbf16, #tpu.memory_space<vmem>>, vector<128x128xbf16>,
      %35 = arith.index_cast %1 : i32 to index
      %c256 = arith.constant 256 : index
      %36 = vector.load %arg13[%35, %c256] : memref<384x384xf32, #tpu.memory_space<vmem>>, vector<128x128xf32>
      %c0_14 = arith.constant 0 : index
      %c0_15 = arith.constant 0 : index
      %c0_16 = arith.constant 0 : index
      %37 = vector.load %arg6[%c0_14, %c0_15, %c0_16] : memref<1x128x128xbf16, #tpu.memory_space<vmem>>, vector<1x128x128xbf16>
      %38 = vector.shape_cast %37 : vector<1x128x128xbf16> to vector<128x128xbf16>
      %cst_17 = arith.constant dense<0.000000e+00> : vector<128x128xf32>
      %39 = tpu.matmul %32, %38, %cst_17 {dimension_numbers = #tpu.dot_dimension_numbers<[1], [0], [0], [1], [0, 0, 1, 1], [], []>} : vector<128x128xbf16>, vector<128x128xbf16>, vector<128x128xf32> -> vector<128x128xf32>
      %40 = arith.addf %36, %39 : vector<128x128xf32>
      %41 = arith.index_cast %1 : i32 to index
      %c256_18 = arith.constant 256 : index
      %42 = vector.load %arg13[%41, %c256_18] : memref<384x384xf32, #tpu.memory_space<vmem>>, vector<128x128xf32>
      tpu.vector_store %arg13[%41, %c256_18], %40 {strides = array<i32>} : memref<384x384xf32, #tpu.memory_space<vmem>>, vector<128x128xf32>,
    } else {
    }
    %c5_i32_6 = arith.constant 5 : i32
    %20 = arith.cmpi eq, %arg0, %c5_i32_6 : i32
    %21 = arith.extui %20 : i1 to i32
    %c0_i32_7 = arith.constant 0 : i32
    %22 = arith.cmpi ne, %21, %c0_i32_7 : i32
    scf.if %22 {
      %23 = arith.index_cast %1 : i32 to index
      %c0 = arith.constant 0 : index
      %24 = vector.load %arg13[%23, %c0] : memref<384x384xf32, #tpu.memory_space<vmem>>, vector<128x128xf32>
      %c0_8 = arith.constant 0 : index
      %c0_9 = arith.constant 0 : index
      %25 = vector.load %arg7[%c0_8, %c0_9] : memref<1x384xf32, #tpu.memory_space<vmem>>, vector<1x128xf32>
      %26 = vector.broadcast %25 : vector<1x128xf32> to vector<128x128xf32>
      %27 = arith.addf %24, %26 : vector<128x128xf32>
      %28 = arith.negf %27 : vector<128x128xf32>
      %29 = math.exp %28 : vector<128x128xf32>
      %cst = arith.constant 1.000000e+00 : f32
      %30 = vector.broadcast %cst : f32 to vector<128x128xf32>
      %31 = arith.addf %30, %29 : vector<128x128xf32>
      %32 = arith.divf %30, %31 : vector<128x128xf32>
      %33 = arith.index_cast %1 : i32 to index
      %c256 = arith.constant 256 : index
      %34 = vector.load %arg13[%33, %c256] : memref<384x384xf32, #tpu.memory_space<vmem>>, vector<128x128xf32>
      %c0_10 = arith.constant 0 : index
      %c256_11 = arith.constant 256 : index
      %35 = vector.load %arg7[%c0_10, %c256_11] : memref<1x384xf32, #tpu.memory_space<vmem>>, vector<1x128xf32>
      %36 = vector.broadcast %35 : vector<1x128xf32> to vector<128x128xf32>
      %37 = arith.addf %34, %36 : vector<128x128xf32>
      %38 = math.tanh %37 : vector<128x128xf32>
      %c0_12 = arith.constant 0 : index
      %c0_13 = arith.constant 0 : index
      %39 = vector.load %arg4[%c0_12, %c0_13] : memref<128x128xf32, #tpu.memory_space<vmem>>, vector<128x128xf32>
      %40 = arith.mulf %32, %39 : vector<128x128xf32>
      %cst_14 = arith.constant 1.000000e+00 : f32
      %41 = vector.broadcast %cst_14 : f32 to vector<128x128xf32>
      %42 = arith.subf %41, %32 : vector<128x128xf32>
      %43 = arith.mulf %42, %38 : vector<128x128xf32>
      %44 = arith.addf %40, %43 : vector<128x128xf32>
      %c0_15 = arith.constant 0 : index
      %c0_16 = arith.constant 0 : index
      %45 = vector.load %arg8[%c0_15, %c0_16] : memref<128x128xf32, #tpu.memory_space<vmem>>, vector<128x128xf32>
      tpu.vector_store %arg8[%c0_15, %c0_16], %44 {strides = array<i32>} : memref<128x128xf32, #tpu.memory_space<vmem>>, vector<128x128xf32>,
    } else {
    }
    return
  }
  func.func @transform_0(%arg0: i32, %arg1: i32) -> (i32, i32) {
    %c0_i32 = arith.constant 0 : i32
    %0 = arith.cmpi eq, %arg0, %c0_i32 : i32
    %c3_i32 = arith.constant 3 : i32
    %1 = arith.cmpi eq, %arg0, %c3_i32 : i32
    %2 = arith.ori %0, %1 : i1
    %c0_i32_0 = arith.constant 0 : i32
    %3 = arith.select %2, %c0_i32_0, %arg1 : i32
    %c0_i32_1 = arith.constant 0 : i32
    %c0_i32_2 = arith.constant 0 : i32
    return %3, %c0_i32_1 : i32, i32
  }
  func.func @transform_1(%arg0: i32, %arg1: i32) -> (i32, i32) {
    %c0_i32 = arith.constant 0 : i32
    %0 = arith.cmpi eq, %arg0, %c0_i32 : i32
    %c0_i32_0 = arith.constant 0 : i32
    %1 = arith.select %0, %arg1, %c0_i32_0 : i32
    %c0_i32_1 = arith.constant 0 : i32
    %c0_i32_2 = arith.constant 0 : i32
    return %1, %c0_i32_1 : i32, i32
  }
  func.func @transform_2(%arg0: i32, %arg1: i32) -> (i32, i32) {
    %c3_i32 = arith.constant 3 : i32
    %0 = arith.cmpi eq, %arg0, %c3_i32 : i32
    %c5_i32 = arith.constant 5 : i32
    %1 = arith.cmpi eq, %arg0, %c5_i32 : i32
    %2 = arith.ori %0, %1 : i1
    %c0_i32 = arith.constant 0 : i32
    %3 = arith.select %2, %arg1, %c0_i32 : i32
    %c0_i32_0 = arith.constant 0 : i32
    %c0_i32_1 = arith.constant 0 : i32
    return %3, %c0_i32_0 : i32, i32
  }
  func.func @transform_3(%arg0: i32, %arg1: i32) -> (i32, i32, i32) {
    %c2_i32 = arith.constant 2 : i32
    %0 = arith.minsi %arg0, %c2_i32 : i32
    %c0_i32 = arith.constant 0 : i32
    %c0_i32_0 = arith.constant 0 : i32
    %c0_i32_1 = arith.constant 0 : i32
    return %0, %c0_i32, %c0_i32_0 : i32, i32, i32
  }
  func.func @transform_4(%arg0: i32, %arg1: i32) -> (i32, i32, i32) {
    %c3_i32 = arith.constant 3 : i32
    %0 = arith.subi %arg0, %c3_i32 : i32
    %c0_i32 = arith.constant 0 : i32
    %1 = arith.maxsi %0, %c0_i32 : i32
    %c0_i32_0 = arith.constant 0 : i32
    %c0_i32_1 = arith.constant 0 : i32
    %c0_i32_2 = arith.constant 0 : i32
    return %1, %c0_i32_0, %c0_i32_1 : i32, i32, i32
  }
  func.func @transform_5(%arg0: i32, %arg1: i32) -> (i32, i32) {
    %c0_i32 = arith.constant 0 : i32
    %c0_i32_0 = arith.constant 0 : i32
    %c0_i32_1 = arith.constant 0 : i32
    return %c0_i32, %c0_i32_0 : i32, i32
  }
  func.func @transform_6(%arg0: i32, %arg1: i32) -> (i32, i32) {
    %c5_i32 = arith.constant 5 : i32
    %0 = arith.cmpi eq, %arg0, %c5_i32 : i32
    %c0_i32 = arith.constant 0 : i32
    %1 = arith.select %0, %arg1, %c0_i32 : i32
    %c0_i32_0 = arith.constant 0 : i32
    %c0_i32_1 = arith.constant 0 : i32
    return %1, %c0_i32_0 : i32, i32
  }
}

</mosaic_0001>

<bundles_post_ra>
// kernel: gconv_gru.1
= control target key start
LH: loop header
LB: loop body
LE: loop exit
PB: predicated region body
PF: predicated region fallthrough
CT: control target
= control target key end

     0   :  { %s8249_s21 = smov 0   ;;  %s8251_s22 = smov 0   ;;  %s9192_s0 = inlined_call_operand.vmem [shape: bf16[384,384], index: 0, kind: input, shape index: {}]   ;;  %s9193_s1 = inlined_call_operand.vmem [shape: bf16[384,128], index: 1, kind: input, shape index: {}]   ;;  %s9194_s2 = inlined_call_operand.vmem [shape: f32[384,128], index: 2, kind: input, shape index: {}]   ;;  %s9195_s3 = inlined_call_operand.vmem [shape: bf16[3,128,384], index: 3, kind: input, shape index: {}]   ;;  %s9196_s4 = inlined_call_operand.vmem [shape: bf16[3,128,128], index: 4, kind: input, shape index: {}]   ;;  %s9197_s5 = inlined_call_operand.vmem [shape: f32[1,384], index: 5, kind: input, shape index: {}]   ;;  %s9198_s6 = inlined_call_operand.vmem [shape: f32[384,128], index: 6, kind: output, shape index: {}]  }
   0x1   :  { %9199 = sst [smem:[#allocation7_spill]] %s9192_s0  ;;  %s8253_s23 = smov 0  }
   0x2   :  { %s8255_s24 = smov 0   ;;  %s8257_s25 = smov 0  }
   0x3 LB: > { %s25_s26 = sadd.s32 1, %s8201_s23  ;;  %s28_s27 = sadd.s32 1, %s8205_s24  ;;  %s8209_s25 = sphi %s8257_s25, %s16_s25   ;;  %s8205_s24 = sphi %s8255_s24, %s9204_s24   ;;  %s8201_s23 = sphi %s8253_s23, %s9203_s23   ;;  %s8197_s22 = sphi %s8251_s22, %s9202_s22   ;;  %s8193_s21 = sphi %s8249_s21, %s9201_s21  }
   0x4   : > { %p26_p0 = scmp.ge.s32.totalorder %s25_s26, 3  ;;  %p6007_p1 = scmp.ge.s32.totalorder %s8209_s25, 1 }
   0x5   : > { %p332_p2 = scmp.lt.s32.totalorder %s8209_s25, 19 }
   0x6   : > { %s9206_s26 = smov (%p26_p0, %s25_s26), 0  ;;  %s9208_s27 = smov (!%p26_p0, %s28_s27), %s8205_s24 }
   0x7   : > { %p333_p3 = pnand %p6007_p1, %p332_p2  ;;  %p30_p4 = scmp.ge.s32.totalorder %s9208_s27, 6 }
   0x8   : > { %p400_p5 = scmp.eq.s32.totalorder (!%p333_p3), %s8197_s22, 0  ;;  %p401_p6 = scmp.eq.s32.totalorder (!%p333_p3), %s8197_s22, 3 }
   0x9   : > { %s9210_s27 = smov (%p30_p4, %s9208_s27), 0  ;;  %336 = sbr.rel (%p333_p3) target bundleno = 2636 (0xa4c), region = 44 }
   0xa   : > { %p402_p7 = por (!%p333_p3), %p401_p6, %p400_p5  ;;  %p426_p8 = scmp.eq.s32.totalorder (!%p333_p3), %s8197_s22, 5 }
   0xb   : > { %p439_p9 = scmp.lt.s32.totalorder (!%p333_p3), %s8197_s22, 2  ;;  %s6018_s9 = sadd.s32 (!%p333_p3), 4294967293, %s8197_s22 }
   0xc   : > { %p427_p12 = por (!%p333_p3), %p426_p8, %p401_p6  ;;  %s9200_s0 = sld [smem:[#allocation7_spill]] (!%p333_p3) }
   0xd   : > { %s8304_s18 = sshll.u32 (!%p333_p3), %s8193_s21, 7  ;;  %p449_p0 = scmp.gt.s32.totalorder (!%p333_p3), %s6018_s9, 0 }
   0xe   : > { %s416_s28 = scalar_select %p400_p5, %s8193_s21, 0 }
   0xf   : > { %s403_s29 = scalar_select %p402_p7, 0, %s8193_s21 }
  0x10   : > { %s6010_s30 = sshll.u32 %s416_s28, 4  ;;  %p6019_p1 = scmp.lt.s32.totalorder %s6018_s9, 2 }
  0x11   : > { %s6008_s7 = sshll.u32 %s403_s29, 4  ;;  %p418_p10 = scmp.lt.s32.totalorder %s6010_s30, 47 }
  0x12   : > { %p405_p11 = scmp.lt.s32.totalorder %s6008_s7, 47  ;;  %s9220_s9 = smov (!%p449_p0, %s6018_s9), 0 }
  0x13   : > { %s9212_s30 = smov (!%p418_p10, %s6010_s30), 47  ;;  %s9222_s9 = smov (!%p6019_p1, %s9220_s9), 2 }
  0x14   : > { %s9214_s7 = smov (!%p405_p11, %s6008_s7), 47  ;;  %s6011_s8 = sshll.u32 %s9212_s30, 2 }
  0x15   : > { %s7614_s10 = smul.u32 12, %s9214_s7  ;;  %s8295_s13 = scalar_lea.vmem %s9193_s1, %s6011_s8 }
  0x16   : > { %s428_s14 = scalar_select %p427_p12, %s8193_s21, 0 }
  0x17   : > { %s8301_s17 = scalar_lea.vmem %s9200_s0, %s7614_s10  ;;  %s9224_s21 = smov (!%p426_p8, %s8193_s21), 0 }
  0x18   : > { %s6012_s19 = sshll.u32 %s428_s14, 4  ;;  %s6462_s14 = sshll.u32 %s9222_s9, 6 }
  0x19   : > { %p430_p13 = scmp.lt.s32.totalorder %s6012_s19, 47  ;;  %s6026_s0 = sshll.u32 %s9224_s21, 4 }
  0x1a   : > { %s440_s20 = scalar_select %p439_p9, %s8197_s22, 2 }
  0x1b   : > { %s9216_s19 = smov (!%p430_p13, %s6012_s19), 47  ;;  %p462_p2 = scmp.lt.s32.totalorder %s6026_s0, 47 }
  0x1c   : > { %s9218_s20 = smov (!%p439_p9, %s440_s20), 2  ;;  %s6013_s28 = sshll.u32 %s9216_s19, 3 }
  0x1d   : > { %s8314_s7 = scalar_lea.vmem %s9194_s2, %s6013_s28  ;;  %s7615_s8 = smul.u32 192, %s9218_s20 }
  0x1e   : > { %s8327_s19 = scalar_lea.vmem %s9196_s4, %s6462_s14  ;;  %s9226_s0 = smov (!%p462_p2, %s6026_s0), 47 }
  0x1f   : > { %s8319_s12 = scalar_lea.vmem %s9195_s3, %s7615_s8  ;;  %s6027_s28 = sshll.u32 %s9226_s0, 3 }
  0x20   : > { %s8332_s30 = scalar_lea.vmem %s9198_s6, %s6027_s28  ;;  %p6029_p3 = scmp.ne.s32.totalorder %s8197_s22, 0 }
  0x21   : > { %s491_s0 = sshra.s32 (!%p6029_p3), %s8304_s18, 3 }
  0x22   : > { %474 = sbr.rel (%p6029_p3) target bundleno = 328 (0x148), region = 48  ;;  %s6030_s21 = sshll.u32 (!%p6029_p3), %s491_s0, 2 }
  0x23   : > { %s8352_s9 = scalar_lea.vmem (!%p6029_p3), [#allocation2], %s6030_s21 }
  0x27   : > { %v7659_v0 = vld [vmem:[%s8319_s12 + $0xac] ss:$12 sps:$4 sm:$0xff]   ;;  %v7661_v1 = vld [vmem:[%s8319_s12 + $0xa8] ss:$12 sps:$4 sm:$0xff]   ;;  %v8211_v2 = vmov 0  }
  0x28   : > { %751 = vmatprep.mubr.bf16.mxu0 %v8211_v2  ;;  %719 = vmatprep.subr.bf16.mxu0 %v7659_v0  ;;  %v7662_v3 = vld [vmem:[%s8319_s12 + $0x94] ss:$12 sps:$4 sm:$0xff]   ;;  %v7664_v4 = vld [vmem:[%s8319_s12 + $0x90] ss:$12 sps:$4 sm:$0xff]   ;;  %v7667_v6 = vld [vmem:[%s8319_s12 + $0x78] ss:$12 sps:$4 sm:$0xff]  }
  0x29   : > { %720 = vmatpush1.bf16.msra.mxu0 %v7661_v1  ;;  %v7665_v5 = vld [vmem:[%s8319_s12 + $0x7c] ss:$12 sps:$4 sm:$0xff]   ;;  %v7668_v7 = vld [vmem:[%s8319_s12 + $0x64] ss:$12 sps:$4 sm:$0xff]   ;;  %v7670_v9 = vld [vmem:[%s8319_s12 + $0x60] ss:$12 sps:$4 sm:$0xff]  }
  0x2a   : > { %721 = vmatprep.subr.bf16.mxu0 %v7662_v3  ;;  %v7680_v8 = vld [vmem:[%s8319_s12 + $0xb0] ss:$12 sps:$4 sm:$0xff]   ;;  %v7671_v10 = vld [vmem:[%s8319_s12 + $0x4c] ss:$12 sps:$4 sm:$0xff]   ;;  %v475_v12 = vld [vmem:[%s8295_s13] sm:$0xf] }
  0x2b   : > { %7278 = vmatprep.subr.bf16.mxu1 %v7680_v8  ;;  %v7684_v11 = vld [vmem:[%s8319_s12 + $0x98] ss:$12 sps:$4 sm:$0xff]   ;;  %495 = vst [vmem:[%s8352_s9] sm:$0xf] %v475_v12  ;;  %v7686_v15 = vld [vmem:[%s8319_s12 + $0x80] ss:$12 sps:$4 sm:$0xff]  }
  0x2c   : > { %7279 = vmatpush3.bf16.msra.mxu1 %v7680_v8  ;;  %v476_v13 = vld [vmem:[%s8295_s13 + $0x4] sm:$0xf]  ;;  %v7673_v16 = vld [vmem:[%s8319_s12 + $0x48] ss:$12 sps:$4 sm:$0xff]   ;;  %v478_v18 = vld [vmem:[%s8295_s13 + $0xc] sm:$0xf] }
  0x2d   : > { %722 = vmatpush1.bf16.msra.mxu0 %v7664_v4  ;;  %7280 = vmatprep.subr.bf16.mxu1 %v7684_v11  ;;  %496 = vst [vmem:[%s8352_s9 + $0x4] sm:$0xf] %v476_v13  ;;  %v6031_v14 = vcombine.low %v475_v12, %v476_v13  ;;  %v477_v17 = vld [vmem:[%s8295_s13 + $0x8] sm:$0xf]  ;;  %v7674_v19 = vld [vmem:[%s8319_s12 + $0x34] ss:$12 sps:$4 sm:$0xff]  }
  0x2e   : > { %723 = vmatprep.subr.bf16.mxu0 %v7665_v5  ;;  %497 = vst [vmem:[%s8352_s9 + $0x8] sm:$0xf] %v477_v17  ;;  %498 = vst [vmem:[%s8352_s9 + $0xc] sm:$0xf] %v478_v18  ;;  %v7676_v20 = vld [vmem:[%s8319_s12 + $0x30] ss:$12 sps:$4 sm:$0xff]   ;;  %v6032_v42 = vcombine.low %v477_v17, %v478_v18 }
  0x2f   : > { %7294 = vmatprep.mubr.bf16.mxu1 %v6031_v14  ;;  %v7687_v21 = vld [vmem:[%s8319_s12 + $0x68] ss:$12 sps:$4 sm:$0xff]   ;;  %v479_v22 = vld [vmem:[%s8295_s13 + $0x10] sm:$0xf]  ;;  %v481_v26 = vld [vmem:[%s8295_s13 + $0x18] sm:$0xf] }
  0x30   : > { %7281 = vmatpush3.bf16.msra.mxu1 %v7684_v11  ;;  %v480_v23 = vld [vmem:[%s8295_s13 + $0x14] sm:$0xf]  ;;  %v7677_v24 = vld [vmem:[%s8319_s12 + $0x1c] ss:$12 sps:$4 sm:$0xff]   ;;  %499 = vst [vmem:[%s8352_s9 + $0x10] sm:$0xf] %v479_v22 }
  0x31   : > { %724 = vmatpush1.bf16.msra.mxu0 %v7667_v6  ;;  %7282 = vmatprep.subr.bf16.mxu1 %v7686_v15  ;;  %500 = vst [vmem:[%s8352_s9 + $0x14] sm:$0xf] %v480_v23  ;;  %v7689_v25 = vld [vmem:[%s8319_s12 + $0x50] ss:$12 sps:$4 sm:$0xff]   ;;  %v7679_v27 = vld [vmem:[%s8319_s12 + $0x18] ss:$12 sps:$4 sm:$0xff]   ;;  %v6033_v43 = vcombine.low %v479_v22, %v480_v23 }
  0x32   : > { %725 = vmatprep.subr.bf16.mxu0 %v7668_v7  ;;  %v482_v28 = vld [vmem:[%s8295_s13 + $0x1c] sm:$0xf]  ;;  %501 = vst [vmem:[%s8352_s9 + $0x18] sm:$0xf] %v481_v26  ;;  %v483_v29 = vld [vmem:[%s8295_s13 + $0x20] sm:$0xf] }
  0x33   : > { %v484_v30 = vld [vmem:[%s8295_s13 + $0x24] sm:$0xf]  ;;  %502 = vst [vmem:[%s8352_s9 + $0x1c] sm:$0xf] %v482_v28  ;;  %503 = vst [vmem:[%s8352_s9 + $0x20] sm:$0xf] %v483_v29  ;;  %v6034_v44 = vcombine.low %v481_v26, %v482_v28 }
  0x34   : > { %7283 = vmatpush3.bf16.msra.mxu1 %v7686_v15  ;;  %504 = vst [vmem:[%s8352_s9 + $0x24] sm:$0xf] %v484_v30  ;;  %v485_v31 = vld [vmem:[%s8295_s13 + $0x28] sm:$0xf]  ;;  %v486_v32 = vld [vmem:[%s8295_s13 + $0x2c] sm:$0xf]  ;;  %v6035_v45 = vcombine.low %v483_v29, %v484_v30 }
  0x35   : > { %726 = vmatpush1.bf16.msra.mxu0 %v7670_v9  ;;  %7284 = vmatprep.subr.bf16.mxu1 %v7687_v21  ;;  %v487_v33 = vld [vmem:[%s8295_s13 + $0x30] sm:$0xf]  ;;  %505 = vst [vmem:[%s8352_s9 + $0x28] sm:$0xf] %v485_v31  ;;  %506 = vst [vmem:[%s8352_s9 + $0x2c] sm:$0xf] %v486_v32  ;;  %v6036_v47 = vcombine.low %v485_v31, %v486_v32 }
  0x36   : > { %727 = vmatprep.subr.bf16.mxu0 %v7671_v10  ;;  %v488_v34 = vld [vmem:[%s8295_s13 + $0x34] sm:$0xf]  ;;  %507 = vst [vmem:[%s8352_s9 + $0x30] sm:$0xf] %v487_v33  ;;  %v489_v35 = vld [vmem:[%s8295_s13 + $0x38] sm:$0xf] }
  0x37   : > { %v490_v36 = vld [vmem:[%s8295_s13 + $0x3c] sm:$0xf]  ;;  %v7681_v37 = vld [vmem:[%s8319_s12 + $0x4] ss:$12 sps:$4 sm:$0xff]   ;;  %508 = vst [vmem:[%s8352_s9 + $0x34] sm:$0xf] %v488_v34  ;;  %v6037_v46 = vcombine.low %v487_v33, %v488_v34 }
  0x38   : > { %509 = vst [vmem:[%s8352_s9 + $0x38] sm:$0xf] %v489_v35  ;;  %510 = vst [vmem:[%s8352_s9 + $0x3c] sm:$0xf] %v490_v36  ;;  %7285 = vmatpush3.bf16.msra.mxu1 %v7687_v21  ;;  %v7690_v38 = vld [vmem:[%s8319_s12 + $0x38] ss:$12 sps:$4 sm:$0xff]   ;;  %v6038_v48 = vcombine.low %v489_v35, %v490_v36 }
  0x39   : > { %728 = vmatpush1.bf16.msra.mxu0 %v7673_v16  ;;  %7286 = vmatprep.subr.bf16.mxu1 %v7689_v25  ;;  %v7683_v39 = vld [vmem:[%s8319_s12] ss:$12 sps:$4 sm:$0xff]   ;;  %v7693_v41 = vld [vmem:[%s8319_s12 + $0x8] ss:$12 sps:$4 sm:$0xff]   ;;  %s6463_s13 = smul.u32 24, %s491_s0 }
  0x3a   : > { %729 = vmatprep.subr.bf16.mxu0 %v7674_v19  ;;  %v7692_v40 = vld [vmem:[%s8319_s12 + $0x20] ss:$12 sps:$4 sm:$0xff]  }
  0x3b   : > { %s8406_s8 = scalar_lea.vmem [#allocation6], %s6463_s13 }
  0x3c   : > { %7287 = vmatpush3.bf16.msra.mxu1 %v7689_v25 }
  0x3d   : > { %730 = vmatpush1.bf16.msra.mxu0 %v7676_v20  ;;  %7288 = vmatprep.subr.bf16.mxu1 %v7690_v38 }
  0x3e   : > { %731 = vmatprep.subr.bf16.mxu0 %v7677_v24 }
  0x40   : > { %7289 = vmatpush3.bf16.msra.mxu1 %v7690_v38 }
  0x41   : > { %732 = vmatpush1.bf16.msra.mxu0 %v7679_v27  ;;  %7290 = vmatprep.subr.bf16.mxu1 %v7692_v40 }
  0x42   : > { %733 = vmatprep.subr.bf16.mxu0 %v7681_v37 }
  0x44   : > { %7291 = vmatpush3.bf16.msra.mxu1 %v7692_v40 }
  0x45   : > { %734 = vmatpush1.bf16.msra.mxu0 %v7683_v39  ;;  %7292 = vmatprep.subr.bf16.mxu1 %v7693_v41 }
  0x48   : > { %752 = vmatmul.mubr.bf16.vlgmr.msra.gmra.mxu0 %v6031_v14  ;;  %7293 = vmatpush3.bf16.msra.mxu1 %v7693_v41 }
  0x49   : > { %761 = vmatprep.mubr.bf16.mxu0 %v8211_v2 }
  0x4b   : > { %7295 = vmatmul.mubr.bf16.vlgmr.msra.gmra.mxu1 %v6032_v42 }
  0x4c   : > { %7298 = vmatprep.mubr.bf16.mxu1 %v6033_v43 }
  0x50   : > { %762 = vmatmul.mubr.bf16.gmra.mxu0 %v6032_v42 }
  0x51   : > { %771 = vmatprep.mubr.bf16.mxu0 %v8211_v2 }
  0x53   : > { %7299 = vmatmul.mubr.bf16.gmra.mxu1 %v6034_v44 }
  0x54   : > { %7302 = vmatprep.mubr.bf16.mxu1 %v6035_v45 }
  0x58   : > { %772 = vmatmul.mubr.bf16.gmra.mxu0 %v6033_v43 }
  0x59   : > { %781 = vmatprep.mubr.bf16.mxu0 %v8211_v2 }
  0x5b   : > { %7303 = vmatmul.mubr.bf16.gmra.mxu1 %v6036_v47 }
  0x5c   : > { %7306 = vmatprep.mubr.bf16.mxu1 %v6037_v46 }
  0x60   : > { %782 = vmatmul.mubr.bf16.gmra.mxu0 %v6034_v44 }
  0x61   : > { %791 = vmatprep.mubr.bf16.mxu0 %v8211_v2 }
  0x63   : > { %7307 = vmatmul.mubr.bf16.gmra.mxu1 %v6038_v48 }
  0x68   : > { %792 = vmatmul.mubr.bf16.gmra.mxu0 %v6035_v45 }
  0x69   : > { %801 = vmatprep.mubr.bf16.mxu0 %v8211_v2 }
  0x70   : > { %802 = vmatmul.mubr.bf16.gmra.mxu0 %v6036_v47 }
  0x71   : > { %811 = vmatprep.mubr.bf16.mxu0 %v8211_v2 }
  0x78   : > { %812 = vmatmul.mubr.bf16.gmra.mxu0 %v6037_v46 }
  0x79   : > { %821 = vmatprep.mubr.bf16.mxu0 %v8211_v2 }
  0x80   : > { %822 = vmatmul.mubr.bf16.gmra.mxu0 %v6038_v48 }
 0x108   : > { %v753_v49 = vpop.f32.mrf.mxu0 }
 0x109   : > { %932 = vst [vmem:[%s8406_s8] sm:$0xff] %v753_v49 }
 0x10a   : > { %v755_v50 = vpop.f32.mrf.mxu0 }
 0x10b   : > { %933 = vst [vmem:[%s8406_s8 + $0x8] sm:$0xff] %v755_v50  ;;  %v7296_v55 = vpop.f32.mrf.mxu1 }
 0x10c   : > { %v757_v51 = vpop.f32.mrf.mxu0  ;;  %940 = vst [vmem:[%s8406_s8 + $0x40] sm:$0xff] %v7296_v55 }
 0x10d   : > { %935 = vst [vmem:[%s8406_s8 + $0x18] sm:$0xff] %v757_v51  ;;  %v866_v57 = vpop.f32.mrf.mxu1 }
 0x10e   : > { %v759_v52 = vpop.f32.mrf.mxu0  ;;  %934 = vst [vmem:[%s8406_s8 + $0x10] sm:$0xff] %v866_v57 }
 0x10f   : > { %936 = vst [vmem:[%s8406_s8 + $0x20] sm:$0xff] %v759_v52  ;;  %v7297_v59 = vpop.f32.mrf.mxu1 }
 0x110   : > { %v763_v53 = vpop.f32.mrf.mxu0  ;;  %943 = vst [vmem:[%s8406_s8 + $0x58] sm:$0xff] %v7297_v59 }
 0x111   : > { %938 = vst [vmem:[%s8406_s8 + $0x30] sm:$0xff] %v763_v53  ;;  %v869_v61 = vpop.f32.mrf.mxu1 }
 0x112   : > { %v765_v54 = vpop.f32.mrf.mxu0  ;;  %937 = vst [vmem:[%s8406_s8 + $0x28] sm:$0xff] %v869_v61 }
 0x113   : > { %939 = vst [vmem:[%s8406_s8 + $0x38] sm:$0xff] %v765_v54  ;;  %v7300_v63 = vpop.f32.mrf.mxu1 }
 0x114   : > { %v767_v56 = vpop.f32.mrf.mxu0  ;;  %952 = vst [vmem:[%s8406_s8 + $0xa0] sm:$0xff] %v7300_v63 }
 0x115   : > { %941 = vst [vmem:[%s8406_s8 + $0x48] sm:$0xff] %v767_v56  ;;  %v882_v1 = vpop.f32.mrf.mxu1 }
 0x116   : > { %v769_v58 = vpop.f32.mrf.mxu0  ;;  %946 = vst [vmem:[%s8406_s8 + $0x70] sm:$0xff] %v882_v1 }
 0x117   : > { %942 = vst [vmem:[%s8406_s8 + $0x50] sm:$0xff] %v769_v58  ;;  %v7301_v3 = vpop.f32.mrf.mxu1 }
 0x118   : > { %v773_v60 = vpop.f32.mrf.mxu0  ;;  %955 = vst [vmem:[%s8406_s8 + $0xb8] sm:$0xff] %v7301_v3 }
 0x119   : > { %944 = vst [vmem:[%s8406_s8 + $0x60] sm:$0xff] %v773_v60  ;;  %v885_v5 = vpop.f32.mrf.mxu1 }
 0x11a   : > { %v775_v62 = vpop.f32.mrf.mxu0  ;;  %949 = vst [vmem:[%s8406_s8 + $0x88] sm:$0xff] %v885_v5 }
 0x11b   : > { %945 = vst [vmem:[%s8406_s8 + $0x68] sm:$0xff] %v775_v62  ;;  %v7304_v7 = vpop.f32.mrf.mxu1 }
 0x11c   : > { %v777_v0 = vpop.f32.mrf.mxu0  ;;  %964 = vst [vmem:[%s8406_s8 + $0x100] sm:$0xff] %v7304_v7 }
 0x11d   : > { %947 = vst [vmem:[%s8406_s8 + $0x78] sm:$0xff] %v777_v0  ;;  %v898_v9 = vpop.f32.mrf.mxu1 }
 0x11e   : > { %v779_v2 = vpop.f32.mrf.mxu0  ;;  %958 = vst [vmem:[%s8406_s8 + $0xd0] sm:$0xff] %v898_v9 }
 0x11f   : > { %948 = vst [vmem:[%s8406_s8 + $0x80] sm:$0xff] %v779_v2  ;;  %v7305_v11 = vpop.f32.mrf.mxu1 }
 0x120   : > { %v783_v4 = vpop.f32.mrf.mxu0  ;;  %967 = vst [vmem:[%s8406_s8 + $0x118] sm:$0xff] %v7305_v11 }
 0x121   : > { %950 = vst [vmem:[%s8406_s8 + $0x90] sm:$0xff] %v783_v4  ;;  %v901_v13 = vpop.f32.mrf.mxu1 }
 0x122   : > { %v785_v6 = vpop.f32.mrf.mxu0  ;;  %961 = vst [vmem:[%s8406_s8 + $0xe8] sm:$0xff] %v901_v13 }
 0x123   : > { %951 = vst [vmem:[%s8406_s8 + $0x98] sm:$0xff] %v785_v6  ;;  %v7308_v15 = vpop.f32.mrf.mxu1 }
 0x124   : > { %v787_v8 = vpop.f32.mrf.mxu0  ;;  %976 = vst [vmem:[%s8406_s8 + $0x160] sm:$0xff] %v7308_v15 }
 0x125   : > { %953 = vst [vmem:[%s8406_s8 + $0xa8] sm:$0xff] %v787_v8  ;;  %v914_v17 = vpop.f32.mrf.mxu1 }
 0x126   : > { %v789_v10 = vpop.f32.mrf.mxu0  ;;  %970 = vst [vmem:[%s8406_s8 + $0x130] sm:$0xff] %v914_v17 }
 0x127   : > { %954 = vst [vmem:[%s8406_s8 + $0xb0] sm:$0xff] %v789_v10  ;;  %v7309_v19 = vpop.f32.mrf.mxu1 }
 0x128   : > { %v793_v12 = vpop.f32.mrf.mxu0  ;;  %979 = vst [vmem:[%s8406_s8 + $0x178] sm:$0xff] %v7309_v19 }
 0x129   : > { %956 = vst [vmem:[%s8406_s8 + $0xc0] sm:$0xff] %v793_v12  ;;  %v917_v21 = vpop.f32.mrf.mxu1 }
 0x12a   : > { %v795_v14 = vpop.f32.mrf.mxu0  ;;  %973 = vst [vmem:[%s8406_s8 + $0x148] sm:$0xff] %v917_v21 }
 0x12b   : > { %957 = vst [vmem:[%s8406_s8 + $0xc8] sm:$0xff] %v795_v14 }
 0x12c   : > { %v797_v16 = vpop.f32.mrf.mxu0 }
 0x12d   : > { %959 = vst [vmem:[%s8406_s8 + $0xd8] sm:$0xff] %v797_v16 }
 0x12e   : > { %v799_v18 = vpop.f32.mrf.mxu0 }
 0x12f   : > { %960 = vst [vmem:[%s8406_s8 + $0xe0] sm:$0xff] %v799_v18 }
 0x130   : > { %v803_v20 = vpop.f32.mrf.mxu0 }
 0x131   : > { %962 = vst [vmem:[%s8406_s8 + $0xf0] sm:$0xff] %v803_v20 }
 0x132   : > { %v805_v22 = vpop.f32.mrf.mxu0 }
 0x133   : > { %963 = vst [vmem:[%s8406_s8 + $0xf8] sm:$0xff] %v805_v22 }
 0x134   : > { %v807_v23 = vpop.f32.mrf.mxu0 }
 0x135   : > { %965 = vst [vmem:[%s8406_s8 + $0x108] sm:$0xff] %v807_v23 }
 0x136   : > { %v809_v24 = vpop.f32.mrf.mxu0 }
 0x137   : > { %966 = vst [vmem:[%s8406_s8 + $0x110] sm:$0xff] %v809_v24 }
 0x138   : > { %v813_v25 = vpop.f32.mrf.mxu0 }
 0x139   : > { %968 = vst [vmem:[%s8406_s8 + $0x120] sm:$0xff] %v813_v25 }
 0x13a   : > { %v815_v26 = vpop.f32.mrf.mxu0 }
 0x13b   : > { %969 = vst [vmem:[%s8406_s8 + $0x128] sm:$0xff] %v815_v26 }
 0x13c   : > { %v817_v27 = vpop.f32.mrf.mxu0 }
 0x13d   : > { %971 = vst [vmem:[%s8406_s8 + $0x138] sm:$0xff] %v817_v27 }
 0x13e   : > { %v819_v28 = vpop.f32.mrf.mxu0 }
 0x13f   : > { %972 = vst [vmem:[%s8406_s8 + $0x140] sm:$0xff] %v819_v28 }
 0x140   : > { %v823_v29 = vpop.f32.mrf.mxu0 }
 0x141   : > { %974 = vst [vmem:[%s8406_s8 + $0x150] sm:$0xff] %v823_v29 }
 0x142   : > { %v825_v30 = vpop.f32.mrf.mxu0 }
 0x143   : > { %975 = vst [vmem:[%s8406_s8 + $0x158] sm:$0xff] %v825_v30 }
 0x144   : > { %v827_v31 = vpop.f32.mrf.mxu0 }
 0x145   : > { %977 = vst [vmem:[%s8406_s8 + $0x168] sm:$0xff] %v827_v31 }
 0x146   : > { %v829_v32 = vpop.f32.mrf.mxu0 }
 0x147   : > { %978 = vst [vmem:[%s8406_s8 + $0x170] sm:$0xff] %v829_v32 }
 0x148 PF: > { %p6064_p4 = scmp.ne.s32.totalorder %s8197_s22, 1 }
 0x149   : > { %s1594_s10 = sshra.s32 (!%p6064_p4), %s8304_s18, 3 }
 0x14a   : > { %983 = sbr.rel (%p6064_p4) target bundleno = 832 (0x340), region = 52  ;;  %s6129_s11 = sshll.u32 (!%p6064_p4), %s1594_s10, 2 }
 0x14b   : > { %s8509_s14 = scalar_lea.vmem (!%p6064_p4), [#allocation3], %s6129_s11  ;;  %s6480_s15 = smul.u32 (!%p6064_p4), 24, %s1594_s10 }
 0x14d   : > { %s8528_s16 = scalar_lea.vmem (!%p6064_p4), [#allocation6], %s6480_s15 }
 0x14f   : > { %v7699_v33 = vld [vmem:[#allocation2 + $0x78] sm:$0xff]   ;;  %v7702_v36 = vld [vmem:[#allocation2 + $0x70] sm:$0xff]   ;;  %v7705_v39 = vld [vmem:[#allocation2 + $0x68] sm:$0xff]  }
 0x150   : > { %v7700_v34 = vld [vmem:[#allocation2 + $0xb8] sm:$0xff]   ;;  %6878 = vmatprep.subr.bf16.mxu0 %v7699_v33  ;;  %v7703_v37 = vld [vmem:[#allocation2 + $0xb0] sm:$0xff]   ;;  %v7706_v40 = vld [vmem:[#allocation2 + $0xa8] sm:$0xff]  }
 0x151   : > { %v7701_v35 = vld [vmem:[#allocation2 + $0x38] sm:$0xff]   ;;  %7310 = vmatprep.subr.bf16.mxu1 %v7700_v34  ;;  %v7704_v38 = vld [vmem:[#allocation2 + $0x30] sm:$0xff]   ;;  %v7707_v41 = vld [vmem:[#allocation2 + $0x28] sm:$0xff]  }
 0x152   : > { %6879 = vmatpush3.bf16.msra.mxu0 %v7701_v35  ;;  %7311 = vmatpush3.bf16.msra.mxu1 %v7700_v34  ;;  %v7708_v42 = vld [vmem:[#allocation2 + $0x60] sm:$0xff]   ;;  %v7711_v45 = vld [vmem:[#allocation2 + $0x58] sm:$0xff]   ;;  %v7714_v48 = vld [vmem:[#allocation2 + $0x50] sm:$0xff]  }
 0x153   : > { %6880 = vmatprep.subr.bf16.mxu0 %v7702_v36  ;;  %7312 = vmatprep.subr.bf16.mxu1 %v7703_v37  ;;  %v7709_v43 = vld [vmem:[#allocation2 + $0xa0] sm:$0xff]   ;;  %v7712_v46 = vld [vmem:[#allocation2 + $0x98] sm:$0xff]   ;;  %v7715_v49 = vld [vmem:[#allocation2 + $0x90] sm:$0xff]  }
 0x154   : > { %v7710_v44 = vld [vmem:[#allocation2 + $0x20] sm:$0xff]   ;;  %v7713_v47 = vld [vmem:[#allocation2 + $0x18] sm:$0xff]   ;;  %v7716_v50 = vld [vmem:[#allocation2 + $0x10] sm:$0xff]  }
 0x155   : > { %v7717_v51 = vld [vmem:[#allocation2 + $0x48] sm:$0xff]   ;;  %v7720_v54 = vld [vmem:[#allocation2 + $0x40] sm:$0xff]   ;;  %v7732_v0 = vld [vmem:[%s8301_s17 + $0x50] ss:$12 sps:$4 sm:$0xff]  }
 0x156   : > { %6881 = vmatpush3.bf16.msra.mxu0 %v7704_v38  ;;  %7313 = vmatpush3.bf16.msra.mxu1 %v7703_v37  ;;  %v7718_v52 = vld [vmem:[#allocation2 + $0x88] sm:$0xff]   ;;  %v7721_v55 = vld [vmem:[#allocation2 + $0x80] sm:$0xff]   ;;  %v7758_v5 = vld [vmem:[%s8319_s12 + $0xb0] ss:$12 sps:$4 sm:$0xff]  }
 0x157   : > { %6882 = vmatprep.subr.bf16.mxu0 %v7705_v39  ;;  %7314 = vmatprep.subr.bf16.mxu1 %v7706_v40  ;;  %v7719_v53 = vld [vmem:[#allocation2 + $0x8] sm:$0xff]   ;;  %v7725_v56 = vld [vmem:[%s8301_s17 + $0x4] ss:$12 sps:$4 sm:$0xff]   ;;  %v7733_v1 = vld [vmem:[%s8301_s17 + $0x34] ss:$12 sps:$4 sm:$0xff]  }
 0x158   : > { %v7726_v57 = vld [vmem:[%s8301_s17 + $0x8] ss:$12 sps:$4 sm:$0xff]   ;;  %1368 = vmatprep.mubr.bf16.mxu0 %v7725_v56  ;;  %v7722_v58 = vld [vmem:[#allocation2] sm:$0xff]   ;;  %v7757_v4 = vld [vmem:[%s8319_s12 + $0xac] ss:$12 sps:$4 sm:$0xff]  }
 0x159   : > { %v7723_v59 = vld [vmem:[%s8301_s17] ss:$12 sps:$4 sm:$0xff]   ;;  %7326 = vmatprep.mubr.bf16.mxu1 %v7726_v57  ;;  %v7728_v61 = vld [vmem:[%s8301_s17 + $0x1c] ss:$12 sps:$4 sm:$0xff]   ;;  %v7731_v62 = vld [vmem:[%s8301_s17 + $0x38] ss:$12 sps:$4 sm:$0xff]  }
 0x15a   : > { %6883 = vmatpush3.bf16.msra.mxu0 %v7707_v41  ;;  %7315 = vmatpush3.bf16.msra.mxu1 %v7706_v40  ;;  %v7727_v60 = vld [vmem:[%s8301_s17 + $0x20] ss:$12 sps:$4 sm:$0xff]   ;;  %v7730_v63 = vld [vmem:[%s8301_s17 + $0x18] ss:$12 sps:$4 sm:$0xff]   ;;  %v7739_v2 = vld [vmem:[%s8301_s17 + $0x68] ss:$12 sps:$4 sm:$0xff]  }
 0x15b   : > { %6884 = vmatprep.subr.bf16.mxu0 %v7708_v42  ;;  %7316 = vmatprep.subr.bf16.mxu1 %v7709_v43  ;;  %v7755_v3 = vld [vmem:[%s8319_s12 + $0xa8] ss:$12 sps:$4 sm:$0xff]   ;;  %v7735_v6 = vld [vmem:[%s8301_s17 + $0x30] ss:$12 sps:$4 sm:$0xff]   ;;  %v7736_v8 = vld [vmem:[%s8301_s17 + $0x4c] ss:$12 sps:$4 sm:$0xff]  }
 0x15c   : > { %v7759_v7 = vld [vmem:[%s8319_s12 + $0x90] ss:$12 sps:$4 sm:$0xff]   ;;  %v7761_v9 = vld [vmem:[%s8319_s12 + $0x94] ss:$12 sps:$4 sm:$0xff]   ;;  %v7747_v11 = vld [vmem:[%s8301_s17 + $0x98] ss:$12 sps:$4 sm:$0xff]  }
 0x15d   : > { %v7740_v10 = vld [vmem:[%s8301_s17 + $0x80] ss:$12 sps:$4 sm:$0xff]   ;;  %v7765_v12 = vld [vmem:[%s8319_s12 + $0x98] ss:$12 sps:$4 sm:$0xff]   ;;  %v7764_v13 = vld [vmem:[%s8319_s12 + $0x7c] ss:$12 sps:$4 sm:$0xff]  }
 0x15e   : > { %6885 = vmatpush3.bf16.msra.mxu0 %v7710_v44  ;;  %7317 = vmatpush3.bf16.msra.mxu1 %v7709_v43  ;;  %v7762_v14 = vld [vmem:[%s8319_s12 + $0x78] ss:$12 sps:$4 sm:$0xff]   ;;  %v7766_v16 = vld [vmem:[%s8319_s12 + $0x60] ss:$12 sps:$4 sm:$0xff]   ;;  %v7738_v18 = vld [vmem:[%s8301_s17 + $0x48] ss:$12 sps:$4 sm:$0xff]  }
 0x15f   : > { %6886 = vmatprep.subr.bf16.mxu0 %v7711_v45  ;;  %7318 = vmatprep.subr.bf16.mxu1 %v7712_v46  ;;  %v7768_v15 = vld [vmem:[%s8319_s12 + $0x64] ss:$12 sps:$4 sm:$0xff]   ;;  %v7772_v17 = vld [vmem:[%s8319_s12 + $0x80] ss:$12 sps:$4 sm:$0xff]   ;;  %v7769_v22 = vld [vmem:[%s8319_s12 + $0x48] ss:$12 sps:$4 sm:$0xff]  }
 0x160   : > { %v7748_v19 = vld [vmem:[%s8301_s17 + $0xb0] ss:$12 sps:$4 sm:$0xff]   ;;  %v7771_v21 = vld [vmem:[%s8319_s12 + $0x4c] ss:$12 sps:$4 sm:$0xff]   ;;  %v7749_v26 = vld [vmem:[%s8301_s17 + $0x94] ss:$12 sps:$4 sm:$0xff]  }
 0x161   : > { %v7741_v20 = vld [vmem:[%s8301_s17 + $0x64] ss:$12 sps:$4 sm:$0xff]   ;;  %v7743_v23 = vld [vmem:[%s8301_s17 + $0x60] ss:$12 sps:$4 sm:$0xff]   ;;  %v7744_v24 = vld [vmem:[%s8301_s17 + $0x7c] ss:$12 sps:$4 sm:$0xff]  }
 0x162   : > { %6887 = vmatpush3.bf16.msra.mxu0 %v7713_v47  ;;  %7319 = vmatpush3.bf16.msra.mxu1 %v7712_v46  ;;  %v7746_v25 = vld [vmem:[%s8301_s17 + $0x78] ss:$12 sps:$4 sm:$0xff]   ;;  %v7751_v27 = vld [vmem:[%s8301_s17 + $0x90] ss:$12 sps:$4 sm:$0xff]   ;;  %v7754_v29 = vld [vmem:[%s8301_s17 + $0xa8] ss:$12 sps:$4 sm:$0xff]  }
 0x163   : > { %6888 = vmatprep.subr.bf16.mxu0 %v7714_v48  ;;  %7320 = vmatprep.subr.bf16.mxu1 %v7715_v49  ;;  %v7752_v28 = vld [vmem:[%s8301_s17 + $0xac] ss:$12 sps:$4 sm:$0xff]   ;;  %v7775_v30 = vld [vmem:[%s8319_s12 + $0x34] ss:$12 sps:$4 sm:$0xff]   ;;  %v7773_v32 = vld [vmem:[%s8319_s12 + $0x30] ss:$12 sps:$4 sm:$0xff]  }
 0x164   : > { %v7776_v31 = vld [vmem:[%s8319_s12 + $0x68] ss:$12 sps:$4 sm:$0xff]   ;;  %v7780_v34 = vld [vmem:[%s8319_s12 + $0x50] ss:$12 sps:$4 sm:$0xff]   ;;  %v7777_v35 = vld [vmem:[%s8319_s12 + $0x18] ss:$12 sps:$4 sm:$0xff]  }
 0x165   : > { %v7779_v33 = vld [vmem:[%s8319_s12 + $0x1c] ss:$12 sps:$4 sm:$0xff]   ;;  %v7783_v36 = vld [vmem:[%s8319_s12 + $0x4] ss:$12 sps:$4 sm:$0xff]   ;;  %v7781_v38 = vld [vmem:[%s8319_s12] ss:$12 sps:$4 sm:$0xff]  }
 0x166   : > { %6889 = vmatpush3.bf16.msra.mxu0 %v7716_v50  ;;  %7321 = vmatpush3.bf16.msra.mxu1 %v7715_v49  ;;  %v7784_v37 = vld [vmem:[%s8319_s12 + $0x38] ss:$12 sps:$4 sm:$0xff]   ;;  %v7785_v39 = vld [vmem:[%s8319_s12 + $0x20] ss:$12 sps:$4 sm:$0xff]   ;;  %v8212_v40 = vmov 0  }
 0x167   : > { %6890 = vmatprep.subr.bf16.mxu0 %v7717_v51  ;;  %7322 = vmatprep.subr.bf16.mxu1 %v7718_v52  ;;  %v7786_v41 = vld [vmem:[%s8319_s12 + $0x8] ss:$12 sps:$4 sm:$0xff]  }
 0x16a   : > { %6891 = vmatpush3.bf16.msra.mxu0 %v7719_v53  ;;  %7323 = vmatpush3.bf16.msra.mxu1 %v7718_v52 }
 0x16b   : > { %6892 = vmatprep.subr.bf16.mxu0 %v7720_v54  ;;  %7324 = vmatprep.subr.bf16.mxu1 %v7721_v55 }
 0x16e   : > { %6893 = vmatpush3.bf16.msra.mxu0 %v7722_v58  ;;  %7325 = vmatpush3.bf16.msra.mxu1 %v7721_v55 }
 0x16f   : > { %1825 = vmatprep.subr.bf16.mxu1 %v7757_v4  ;;  %7342 = vmatprep.subr.bf16.mxu0 %v7758_v5 }
 0x171   : > { %1369 = vmatmul.mubr.bf16.vlgmr.msra.gmra.mxu0 %v7723_v59  ;;  %7327 = vmatmul.mubr.bf16.vlgmr.msra.gmra.mxu1 %v7727_v60 }
 0x172   : > { %1376 = vmatprep.mubr.bf16.mxu0 %v7728_v61  ;;  %7330 = vmatprep.mubr.bf16.mxu1 %v7731_v62 }
 0x173   : > { %1826 = vmatpush1.bf16.msra.mxu1 %v7755_v3  ;;  %7343 = vmatpush3.bf16.msra.mxu0 %v7758_v5 }
 0x174   : > { %1827 = vmatprep.subr.bf16.mxu1 %v7761_v9  ;;  %7344 = vmatprep.subr.bf16.mxu0 %v7765_v12 }
 0x177   : > { %1828 = vmatpush1.bf16.msra.mxu1 %v7759_v7  ;;  %7345 = vmatpush3.bf16.msra.mxu0 %v7765_v12 }
 0x178   : > { %1829 = vmatprep.subr.bf16.mxu1 %v7764_v13  ;;  %7346 = vmatprep.subr.bf16.mxu0 %v7772_v17 }
 0x179   : > { %1377 = vmatmul.mubr.bf16.gmra.mxu0 %v7730_v63  ;;  %7331 = vmatmul.mubr.bf16.gmra.mxu1 %v7732_v0 }
 0x17a   : > { %1384 = vmatprep.mubr.bf16.mxu0 %v7733_v1  ;;  %7334 = vmatprep.mubr.bf16.mxu1 %v7739_v2 }
 0x17b   : > { %1830 = vmatpush1.bf16.msra.mxu1 %v7762_v14  ;;  %7347 = vmatpush3.bf16.msra.mxu0 %v7772_v17 }
 0x17c   : > { %1831 = vmatprep.subr.bf16.mxu1 %v7768_v15  ;;  %7348 = vmatprep.subr.bf16.mxu0 %v7776_v31 }
 0x17f   : > { %1832 = vmatpush1.bf16.msra.mxu1 %v7766_v16  ;;  %7349 = vmatpush3.bf16.msra.mxu0 %v7776_v31 }
 0x180   : > { %1833 = vmatprep.subr.bf16.mxu1 %v7771_v21  ;;  %7350 = vmatprep.subr.bf16.mxu0 %v7780_v34 }
 0x181   : > { %1385 = vmatmul.mubr.bf16.gmra.mxu0 %v7735_v6  ;;  %7335 = vmatmul.mubr.bf16.gmra.mxu1 %v7740_v10 }
 0x182   : > { %1392 = vmatprep.mubr.bf16.mxu0 %v7736_v8  ;;  %7338 = vmatprep.mubr.bf16.mxu1 %v7747_v11 }
 0x183   : > { %1834 = vmatpush1.bf16.msra.mxu1 %v7769_v22  ;;  %7351 = vmatpush3.bf16.msra.mxu0 %v7780_v34 }
 0x184   : > { %1835 = vmatprep.subr.bf16.mxu1 %v7775_v30  ;;  %7352 = vmatprep.subr.bf16.mxu0 %v7784_v37 }
 0x187   : > { %1836 = vmatpush1.bf16.msra.mxu1 %v7773_v32  ;;  %7353 = vmatpush3.bf16.msra.mxu0 %v7784_v37 }
 0x188   : > { %1837 = vmatprep.subr.bf16.mxu1 %v7779_v33  ;;  %7354 = vmatprep.subr.bf16.mxu0 %v7785_v39 }
 0x189   : > { %1393 = vmatmul.mubr.bf16.gmra.mxu0 %v7738_v18  ;;  %7339 = vmatmul.mubr.bf16.gmra.mxu1 %v7748_v19 }
 0x18a   : > { %1400 = vmatprep.mubr.bf16.mxu0 %v7741_v20  ;;  %1857 = vmatprep.mubr.bf16.mxu1 %v8212_v40 }
 0x18b   : > { %1838 = vmatpush1.bf16.msra.mxu1 %v7777_v35  ;;  %7355 = vmatpush3.bf16.msra.mxu0 %v7785_v39 }
 0x18c   : > { %1839 = vmatprep.subr.bf16.mxu1 %v7783_v36  ;;  %7356 = vmatprep.subr.bf16.mxu0 %v7786_v41 }
 0x18f   : > { %1840 = vmatpush1.bf16.msra.mxu1 %v7781_v38  ;;  %7357 = vmatpush3.bf16.msra.mxu0 %v7786_v41 }
 0x191   : > { %1401 = vmatmul.mubr.bf16.gmra.mxu0 %v7743_v23 }
 0x192   : > { %1408 = vmatprep.mubr.bf16.mxu0 %v7744_v24 }
 0x199   : > { %1409 = vmatmul.mubr.bf16.gmra.mxu0 %v7746_v25 }
 0x19a   : > { %1416 = vmatprep.mubr.bf16.mxu0 %v7749_v26 }
 0x1a1   : > { %1417 = vmatmul.mubr.bf16.gmra.mxu0 %v7751_v27 }
 0x1a2   : > { %1424 = vmatprep.mubr.bf16.mxu0 %v7752_v28 }
 0x1a9   : > { %1425 = vmatmul.mubr.bf16.gmra.mxu0 %v7754_v29 }
 0x231   : > { %v6894_v42 = vpop.f32.mrf.mxu0  ;;  %v7328_v43 = vpop.f32.mrf.mxu1 }
 0x233   : > { %v6895_v44 = vpop.f32.mrf.mxu0  ;;  %v1467_v45 = vpop.f32.mrf.mxu1 }
 0x234   : > { %v6896_v48 = vadd.f32 %v6895_v44, %v6894_v42 }
 0x235   : > { %v6897_v46 = vpop.f32.mrf.mxu0  ;;  %v7329_v47 = vpop.f32.mrf.mxu1 }
 0x236   : > { %v1468_v53 = vadd.f32 %v6896_v48, %v1467_v45 }
 0x237   : > { %v6898_v49 = vpop.f32.mrf.mxu0  ;;  %v1470_v51 = vpop.f32.mrf.mxu1 }
 0x238   : > { %v6899_v50 = vadd.f32 %v6898_v49, %v6897_v46 }
 0x239   : > { %v6900_v52 = vpop.f32.mrf.mxu0  ;;  %v7332_v58 = vpop.f32.mrf.mxu1 }
 0x23a   : > { %v1471_v54 = vadd.f32 %v6899_v50, %v1470_v51 }
 0x23b   : > { %v6901_v55 = vpop.f32.mrf.mxu0  ;;  %v1483_v62 = vpop.f32.mrf.mxu1 }
 0x23c   : > { %v1530_v56 = vpack.c.bf16 %v1471_v54, %v1468_v53  ;;  %v6902_v59 = vadd.f32 %v6901_v55, %v6900_v52 }
 0x23d   : > { %v6903_v57 = vpop.f32.mrf.mxu0  ;;  %v7333_v4 = vpop.f32.mrf.mxu1 }
 0x23e   : > { %6553 = vst [vmem:[%s8509_s14] sm:$0xff] %v1530_v56   ;;  %1858 = vmatmul.mubr.bf16.vlgmr.msra.gmra.mxu1 %v1530_v56  ;;  %7358 = vmatprep.mubr.bf16.mxu0 %v1530_v56  ;;  %v1476_v0 = vadd.f32 %v7328_v43, %v6902_v59 }
 0x23f   : > { %v6904_v60 = vpop.f32.mrf.mxu0  ;;  %1867 = vmatprep.mubr.bf16.mxu1 %v8212_v40  ;;  %v1486_v9 = vpop.f32.mrf.mxu1 }
 0x240   : > { %v6905_v61 = vadd.f32 %v6904_v60, %v6903_v57 }
 0x241   : > { %v6906_v63 = vpop.f32.mrf.mxu0  ;;  %v7336_v16 = vpop.f32.mrf.mxu1 }
 0x242   : > { %v1479_v1 = vadd.f32 %v7329_v47, %v6905_v61 }
 0x243   : > { %v6907_v2 = vpop.f32.mrf.mxu0  ;;  %v1499_v20 = vpop.f32.mrf.mxu1 }
 0x244   : > { %v1531_v3 = vpack.c.bf16 %v1479_v1, %v1476_v0  ;;  %v6908_v6 = vadd.f32 %v6907_v2, %v6906_v63 }
 0x245   : > { %v6909_v5 = vpop.f32.mrf.mxu0  ;;  %v7337_v26 = vpop.f32.mrf.mxu1 }
 0x246   : > { %6813 = vst [vmem:[%s8509_s14 + $0x8] sm:$0xff] %v1531_v3   ;;  %1868 = vmatmul.mubr.bf16.gmra.mxu1 %v1531_v3  ;;  %7359 = vmatmul.mubr.bf16.vlgmr.msra.gmra.mxu0 %v1531_v3  ;;  %v1484_v11 = vadd.f32 %v6908_v6, %v1483_v62 }
 0x247   : > { %v6910_v7 = vpop.f32.mrf.mxu0  ;;  %1877 = vmatprep.mubr.bf16.mxu1 %v8212_v40  ;;  %v1502_v31 = vpop.f32.mrf.mxu1 }
 0x248   : > { %v6911_v8 = vadd.f32 %v6910_v7, %v6909_v5  ;;  %v1620_v7 = vld [vmem:[%s8528_s16 + $0x18] sm:$0xff] }
 0x249   : > { %v6912_v10 = vpop.f32.mrf.mxu0  ;;  %v7340_v38 = vpop.f32.mrf.mxu1 }
 0x24a   : > { %v1487_v12 = vadd.f32 %v6911_v8, %v1486_v9 }
 0x24b   : > { %v6913_v13 = vpop.f32.mrf.mxu0  ;;  %v1515_v43 = vpop.f32.mrf.mxu1 }
 0x24c   : > { %v1532_v14 = vpack.c.bf16 %v1487_v12, %v1484_v11  ;;  %v6914_v17 = vadd.f32 %v6913_v13, %v6912_v10  ;;  %v1621_v10 = vld [vmem:[%s8528_s16 + $0x20] sm:$0xff]  ;;  %v1623_v13 = vld [vmem:[%s8528_s16 + $0x30] sm:$0xff] }
 0x24d   : > { %v6915_v15 = vpop.f32.mrf.mxu0  ;;  %v7341_v49 = vpop.f32.mrf.mxu1 }
 0x24e   : > { %6814 = vst [vmem:[%s8509_s14 + $0x10] sm:$0xff] %v1532_v14   ;;  %1878 = vmatmul.mubr.bf16.gmra.mxu1 %v1532_v14  ;;  %7362 = vmatprep.mubr.bf16.mxu0 %v1532_v14  ;;  %v1492_v22 = vadd.f32 %v7332_v58, %v6914_v17  ;;  %v1625_v14 = vld [vmem:[%s8528_s16 + $0x40] sm:$0xff] }
 0x24f   : > { %v6916_v18 = vpop.f32.mrf.mxu0  ;;  %1887 = vmatprep.mubr.bf16.mxu1 %v8212_v40  ;;  %v1518_v54 = vpop.f32.mrf.mxu1 }
 0x250   : > { %v6917_v19 = vadd.f32 %v6916_v18, %v6915_v15  ;;  %v1624_v18 = vld [vmem:[%s8528_s16 + $0x38] sm:$0xff] }
 0x251   : > { %v6918_v21 = vpop.f32.mrf.mxu0 }
 0x252   : > { %v1495_v23 = vadd.f32 %v7333_v4, %v6917_v19  ;;  %v1618_v4 = vld [vmem:[%s8528_s16 + $0x8] sm:$0xff]  ;;  %v1619_v19 = vld [vmem:[%s8528_s16 + $0x10] sm:$0xff] }
 0x253   : > { %v6919_v24 = vpop.f32.mrf.mxu0 }
 0x254   : > { %v1533_v25 = vpack.c.bf16 %v1495_v23, %v1492_v22  ;;  %v6920_v28 = vadd.f32 %v6919_v24, %v6918_v21  ;;  %v1626_v24 = vld [vmem:[%s8528_s16 + $0x48] sm:$0xff] }
 0x255   : > { %v6921_v27 = vpop.f32.mrf.mxu0 }
 0x256   : > { %6815 = vst [vmem:[%s8509_s14 + $0x18] sm:$0xff] %v1533_v25   ;;  %1888 = vmatmul.mubr.bf16.gmra.mxu1 %v1533_v25  ;;  %7363 = vmatmul.mubr.bf16.gmra.mxu0 %v1533_v25  ;;  %v1500_v33 = vadd.f32 %v6920_v28, %v1499_v20  ;;  %v1628_v25 = vld [vmem:[%s8528_s16 + $0x58] sm:$0xff] }
 0x257   : > { %v6922_v29 = vpop.f32.mrf.mxu0  ;;  %1897 = vmatprep.mubr.bf16.mxu1 %v8212_v40 }
 0x258   : > { %v6923_v30 = vadd.f32 %v6922_v29, %v6921_v27 }
 0x259   : > { %v6924_v32 = vpop.f32.mrf.mxu0 }
 0x25a   : > { %v1503_v34 = vadd.f32 %v6923_v30, %v1502_v31  ;;  %v1627_v30 = vld [vmem:[%s8528_s16 + $0x50] sm:$0xff]  ;;  %v1622_v31 = vld [vmem:[%s8528_s16 + $0x28] sm:$0xff] }
 0x25b   : > { %v6925_v35 = vpop.f32.mrf.mxu0 }
 0x25c   : > { %v1534_v36 = vpack.c.bf16 %v1503_v34, %v1500_v33  ;;  %v6926_v39 = vadd.f32 %v6925_v35, %v6924_v32 }
 0x25d   : > { %v6927_v37 = vpop.f32.mrf.mxu0 }
 0x25e   : > { %6816 = vst [vmem:[%s8509_s14 + $0x20] sm:$0xff] %v1534_v36   ;;  %1898 = vmatmul.mubr.bf16.gmra.mxu1 %v1534_v36  ;;  %7366 = vmatprep.mubr.bf16.mxu0 %v1534_v36  ;;  %v1508_v45 = vadd.f32 %v7336_v16, %v6926_v39  ;;  %v1629_v36 = vld [vmem:[%s8528_s16 + $0x60] sm:$0xff] }
 0x25f   : > { %v6928_v41 = vpop.f32.mrf.mxu0  ;;  %1907 = vmatprep.mubr.bf16.mxu1 %v8212_v40 }
 0x260   : > { %v6929_v42 = vadd.f32 %v6928_v41, %v6927_v37  ;;  %v1630_v41 = vld [vmem:[%s8528_s16 + $0x68] sm:$0xff] }
 0x261   : > { %v6930_v44 = vpop.f32.mrf.mxu0 }
 0x262   : > { %v1511_v46 = vadd.f32 %v7337_v26, %v6929_v42 }
 0x263   : > { %v6931_v47 = vpop.f32.mrf.mxu0 }
 0x264   : > { %v1535_v48 = vpack.c.bf16 %v1511_v46, %v1508_v45  ;;  %v6932_v51 = vadd.f32 %v6931_v47, %v6930_v44  ;;  %v1632_v44 = vld [vmem:[%s8528_s16 + $0x78] sm:$0xff]  ;;  %v1633_v47 = vld [vmem:[%s8528_s16 + $0x80] sm:$0xff] }
 0x265   : > { %v6933_v50 = vpop.f32.mrf.mxu0 }
 0x266   : > { %6817 = vst [vmem:[%s8509_s14 + $0x28] sm:$0xff] %v1535_v48   ;;  %1908 = vmatmul.mubr.bf16.gmra.mxu1 %v1535_v48  ;;  %7367 = vmatmul.mubr.bf16.gmra.mxu0 %v1535_v48  ;;  %v1516_v56 = vadd.f32 %v6932_v51, %v1515_v43  ;;  %v1637_v51 = vld [vmem:[%s8528_s16 + $0xa0] sm:$0xff] }
 0x267   : > { %v6934_v52 = vpop.f32.mrf.mxu0  ;;  %1917 = vmatprep.mubr.bf16.mxu1 %v8212_v40 }
 0x268   : > { %v6935_v53 = vadd.f32 %v6934_v52, %v6933_v50  ;;  %v1635_v50 = vld [vmem:[%s8528_s16 + $0x90] sm:$0xff] }
 0x269   : > { %v6936_v55 = vpop.f32.mrf.mxu0 }
 0x26a   : > { %v1519_v57 = vadd.f32 %v6935_v53, %v1518_v54 }
 0x26b   : > { %v6937_v58 = vpop.f32.mrf.mxu0 }
 0x26c   : > { %v1536_v59 = vpack.c.bf16 %v1519_v57, %v1516_v56  ;;  %v6938_v61 = vadd.f32 %v6937_v58, %v6936_v55  ;;  %v1636_v55 = vld [vmem:[%s8528_s16 + $0x98] sm:$0xff]  ;;  %v1631_v56 = vld [vmem:[%s8528_s16 + $0x70] sm:$0xff] }
 0x26d   : > { %v6939_v60 = vpop.f32.mrf.mxu0 }
 0x26e   : > { %6818 = vst [vmem:[%s8509_s14 + $0x30] sm:$0xff] %v1536_v59   ;;  %1918 = vmatmul.mubr.bf16.gmra.mxu1 %v1536_v59  ;;  %7370 = vmatprep.mubr.bf16.mxu0 %v1536_v59  ;;  %v1524_v0 = vadd.f32 %v7340_v38, %v6938_v61  ;;  %v1638_v61 = vld [vmem:[%s8528_s16 + $0xa8] sm:$0xff] }
 0x26f   : > { %v6940_v62 = vpop.f32.mrf.mxu0  ;;  %1927 = vmatprep.mubr.bf16.mxu1 %v8212_v40  ;;  %v1617_v40 = vld [vmem:[%s8528_s16] sm:$0xff] }
 0x270   : > { %v6941_v63 = vadd.f32 %v6940_v62, %v6939_v60  ;;  %v1640_v62 = vld [vmem:[%s8528_s16 + $0xb8] sm:$0xff] }
 0x272   : > { %v1527_v1 = vadd.f32 %v7341_v49, %v6941_v63 }
 0x274   : > { %v1537_v2 = vpack.c.bf16 %v1527_v1, %v1524_v0 }
 0x276   : > { %6819 = vst [vmem:[%s8509_s14 + $0x38] sm:$0xff] %v1537_v2   ;;  %1928 = vmatmul.mubr.bf16.gmra.mxu1 %v1537_v2  ;;  %7371 = vmatmul.mubr.bf16.gmra.mxu0 %v1537_v2 }
 0x2fe   : > { %v1859_v3 = vpop.f32.mrf.mxu1 }
 0x2ff   : > { %v2035_v5 = vadd.f32 %v1859_v3, %v1617_v40  ;;  %v1639_v40 = vld [vmem:[%s8528_s16 + $0xb0] sm:$0xff]  ;;  %v1634_v3 = vld [vmem:[%s8528_s16 + $0x88] sm:$0xff] }
 0x300   : > { %v1861_v6 = vpop.f32.mrf.mxu1 }
 0x301   : > { %2083 = vst [vmem:[%s8528_s16] sm:$0xff] %v2035_v5  ;;  %v2036_v8 = vadd.f32 %v1861_v6, %v1618_v4 }
 0x302   : > { %v1863_v9 = vpop.f32.mrf.mxu1 }
 0x303   : > { %2084 = vst [vmem:[%s8528_s16 + $0x8] sm:$0xff] %v2036_v8  ;;  %v2038_v11 = vadd.f32 %v1863_v9, %v1620_v7  ;;  %v1641_v8 = vld [vmem:[%s8528_s16 + $0xc0] sm:$0xff] }
 0x304   : > { %v1865_v12 = vpop.f32.mrf.mxu1 }
 0x305   : > { %2086 = vst [vmem:[%s8528_s16 + $0x18] sm:$0xff] %v2038_v11  ;;  %v2039_v15 = vadd.f32 %v1865_v12, %v1621_v10  ;;  %v1642_v12 = vld [vmem:[%s8528_s16 + $0xc8] sm:$0xff] }
 0x306   : > { %v1869_v16 = vpop.f32.mrf.mxu1  ;;  %v7360_v17 = vpop.f32.mrf.mxu0 }
 0x307   : > { %2087 = vst [vmem:[%s8528_s16 + $0x20] sm:$0xff] %v2039_v15  ;;  %v2041_v20 = vadd.f32 %v1869_v16, %v1623_v13  ;;  %v2043_v21 = vadd.f32 %v7360_v17, %v1625_v14  ;;  %v1644_v15 = vld [vmem:[%s8528_s16 + $0xd8] sm:$0xff] }
 0x308   : > { %v1871_v22 = vpop.f32.mrf.mxu1  ;;  %v1972_v23 = vpop.f32.mrf.mxu0 }
 0x309   : > { %2089 = vst [vmem:[%s8528_s16 + $0x30] sm:$0xff] %v2041_v20  ;;  %2091 = vst [vmem:[%s8528_s16 + $0x40] sm:$0xff] %v2043_v21  ;;  %v2042_v26 = vadd.f32 %v1871_v22, %v1624_v18  ;;  %v2037_v27 = vadd.f32 %v1972_v23, %v1619_v19  ;;  %v1645_v18 = vld [vmem:[%s8528_s16 + $0xe0] sm:$0xff]  ;;  %v1647_v21 = vld [vmem:[%s8528_s16 + $0xf0] sm:$0xff] }
 0x30a   : > { %v1873_v28 = vpop.f32.mrf.mxu1  ;;  %v7361_v29 = vpop.f32.mrf.mxu0  ;;  %v1649_v22 = vld [vmem:[%s8528_s16 + $0x100] sm:$0xff] }
 0x30b   : > { %2090 = vst [vmem:[%s8528_s16 + $0x38] sm:$0xff] %v2042_v26  ;;  %2085 = vst [vmem:[%s8528_s16 + $0x10] sm:$0xff] %v2037_v27  ;;  %v2044_v32 = vadd.f32 %v1873_v28, %v1626_v24  ;;  %v2046_v33 = vadd.f32 %v7361_v29, %v1628_v25  ;;  %v1648_v26 = vld [vmem:[%s8528_s16 + $0xf8] sm:$0xff]  ;;  %v1643_v27 = vld [vmem:[%s8528_s16 + $0xd0] sm:$0xff] }
 0x30c   : > { %v1875_v34 = vpop.f32.mrf.mxu1  ;;  %v1975_v35 = vpop.f32.mrf.mxu0 }
 0x30d   : > { %2092 = vst [vmem:[%s8528_s16 + $0x48] sm:$0xff] %v2044_v32  ;;  %2094 = vst [vmem:[%s8528_s16 + $0x58] sm:$0xff] %v2046_v33  ;;  %v2045_v37 = vadd.f32 %v1875_v34, %v1627_v30  ;;  %v2040_v38 = vadd.f32 %v1975_v35, %v1622_v31  ;;  %v1650_v32 = vld [vmem:[%s8528_s16 + $0x108] sm:$0xff]  ;;  %v1652_v33 = vld [vmem:[%s8528_s16 + $0x118] sm:$0xff] }
 0x30e   : > { %v1879_v39 = vpop.f32.mrf.mxu1 }
 0x30f   : > { %2093 = vst [vmem:[%s8528_s16 + $0x50] sm:$0xff] %v2045_v37  ;;  %2088 = vst [vmem:[%s8528_s16 + $0x28] sm:$0xff] %v2040_v38  ;;  %v2047_v42 = vadd.f32 %v1879_v39, %v1629_v36  ;;  %v1651_v38 = vld [vmem:[%s8528_s16 + $0x110] sm:$0xff]  ;;  %v1646_v39 = vld [vmem:[%s8528_s16 + $0xe8] sm:$0xff] }
 0x310   : > { %v1881_v43 = vpop.f32.mrf.mxu1 }
 0x311   : > { %2095 = vst [vmem:[%s8528_s16 + $0x60] sm:$0xff] %v2047_v42  ;;  %v2048_v45 = vadd.f32 %v1881_v43, %v1630_v41 }
 0x312   : > { %v1883_v46 = vpop.f32.mrf.mxu1 }
 0x313   : > { %2096 = vst [vmem:[%s8528_s16 + $0x68] sm:$0xff] %v2048_v45  ;;  %v2050_v48 = vadd.f32 %v1883_v46, %v1632_v44  ;;  %v1653_v45 = vld [vmem:[%s8528_s16 + $0x120] sm:$0xff] }
 0x314   : > { %v1885_v49 = vpop.f32.mrf.mxu1 }
 0x315   : > { %2098 = vst [vmem:[%s8528_s16 + $0x78] sm:$0xff] %v2050_v48  ;;  %v2051_v52 = vadd.f32 %v1885_v49, %v1633_v47  ;;  %v1654_v49 = vld [vmem:[%s8528_s16 + $0x128] sm:$0xff] }
 0x316   : > { %v1889_v53 = vpop.f32.mrf.mxu1  ;;  %v7364_v54 = vpop.f32.mrf.mxu0 }
 0x317   : > { %2099 = vst [vmem:[%s8528_s16 + $0x80] sm:$0xff] %v2051_v52  ;;  %v2053_v57 = vadd.f32 %v1889_v53, %v1635_v50  ;;  %v2055_v58 = vadd.f32 %v7364_v54, %v1637_v51  ;;  %v1656_v52 = vld [vmem:[%s8528_s16 + $0x138] sm:$0xff] }
 0x318   : > { %v1891_v59 = vpop.f32.mrf.mxu1  ;;  %v1988_v60 = vpop.f32.mrf.mxu0 }
 0x319   : > { %2101 = vst [vmem:[%s8528_s16 + $0x90] sm:$0xff] %v2053_v57  ;;  %2103 = vst [vmem:[%s8528_s16 + $0xa0] sm:$0xff] %v2055_v58  ;;  %v2054_v63 = vadd.f32 %v1891_v59, %v1636_v55  ;;  %v2049_v0 = vadd.f32 %v1988_v60, %v1631_v56  ;;  %v1657_v55 = vld [vmem:[%s8528_s16 + $0x140] sm:$0xff]  ;;  %v1659_v58 = vld [vmem:[%s8528_s16 + $0x150] sm:$0xff] }
 0x31a   : > { %v1893_v1 = vpop.f32.mrf.mxu1  ;;  %v7365_v2 = vpop.f32.mrf.mxu0  ;;  %v1661_v59 = vld [vmem:[%s8528_s16 + $0x160] sm:$0xff] }
 0x31b   : > { %2102 = vst [vmem:[%s8528_s16 + $0x98] sm:$0xff] %v2054_v63  ;;  %2097 = vst [vmem:[%s8528_s16 + $0x70] sm:$0xff] %v2049_v0  ;;  %v2056_v4 = vadd.f32 %v1893_v1, %v1638_v61  ;;  %v2058_v5 = vadd.f32 %v7365_v2, %v1640_v62  ;;  %v1660_v63 = vld [vmem:[%s8528_s16 + $0x158] sm:$0xff]  ;;  %v1655_v0 = vld [vmem:[%s8528_s16 + $0x130] sm:$0xff] }
 0x31c   : > { %v1895_v6 = vpop.f32.mrf.mxu1  ;;  %v1991_v7 = vpop.f32.mrf.mxu0 }
 0x31d   : > { %2104 = vst [vmem:[%s8528_s16 + $0xa8] sm:$0xff] %v2056_v4  ;;  %2106 = vst [vmem:[%s8528_s16 + $0xb8] sm:$0xff] %v2058_v5  ;;  %v2057_v9 = vadd.f32 %v1895_v6, %v1639_v40  ;;  %v2052_v10 = vadd.f32 %v1991_v7, %v1634_v3  ;;  %v1662_v4 = vld [vmem:[%s8528_s16 + $0x168] sm:$0xff]  ;;  %v1664_v5 = vld [vmem:[%s8528_s16 + $0x178] sm:$0xff] }
 0x31e   : > { %v1899_v11 = vpop.f32.mrf.mxu1 }
 0x31f   : > { %2105 = vst [vmem:[%s8528_s16 + $0xb0] sm:$0xff] %v2057_v9  ;;  %2100 = vst [vmem:[%s8528_s16 + $0x88] sm:$0xff] %v2052_v10  ;;  %v2059_v13 = vadd.f32 %v1899_v11, %v1641_v8  ;;  %v1663_v10 = vld [vmem:[%s8528_s16 + $0x170] sm:$0xff]  ;;  %v1658_v11 = vld [vmem:[%s8528_s16 + $0x148] sm:$0xff] }
 0x320   : > { %v1901_v14 = vpop.f32.mrf.mxu1 }
 0x321   : > { %2107 = vst [vmem:[%s8528_s16 + $0xc0] sm:$0xff] %v2059_v13  ;;  %v2060_v16 = vadd.f32 %v1901_v14, %v1642_v12 }
 0x322   : > { %v1903_v17 = vpop.f32.mrf.mxu1 }
 0x323   : > { %2108 = vst [vmem:[%s8528_s16 + $0xc8] sm:$0xff] %v2060_v16  ;;  %v2062_v19 = vadd.f32 %v1903_v17, %v1644_v15 }
 0x324   : > { %v1905_v20 = vpop.f32.mrf.mxu1 }
 0x325   : > { %2110 = vst [vmem:[%s8528_s16 + $0xd8] sm:$0xff] %v2062_v19  ;;  %v2063_v23 = vadd.f32 %v1905_v20, %v1645_v18 }
 0x326   : > { %v1909_v24 = vpop.f32.mrf.mxu1  ;;  %v7368_v25 = vpop.f32.mrf.mxu0 }
 0x327   : > { %2111 = vst [vmem:[%s8528_s16 + $0xe0] sm:$0xff] %v2063_v23  ;;  %v2065_v28 = vadd.f32 %v1909_v24, %v1647_v21  ;;  %v2067_v29 = vadd.f32 %v7368_v25, %v1649_v22 }
 0x328   : > { %v1911_v30 = vpop.f32.mrf.mxu1  ;;  %v2004_v31 = vpop.f32.mrf.mxu0 }
 0x329   : > { %2113 = vst [vmem:[%s8528_s16 + $0xf0] sm:$0xff] %v2065_v28  ;;  %2115 = vst [vmem:[%s8528_s16 + $0x100] sm:$0xff] %v2067_v29  ;;  %v2066_v34 = vadd.f32 %v1911_v30, %v1648_v26  ;;  %v2061_v35 = vadd.f32 %v2004_v31, %v1643_v27 }
 0x32a   : > { %v1913_v36 = vpop.f32.mrf.mxu1  ;;  %v7369_v37 = vpop.f32.mrf.mxu0 }
 0x32b   : > { %2114 = vst [vmem:[%s8528_s16 + $0xf8] sm:$0xff] %v2066_v34  ;;  %2109 = vst [vmem:[%s8528_s16 + $0xd0] sm:$0xff] %v2061_v35  ;;  %v2068_v41 = vadd.f32 %v1913_v36, %v1650_v32  ;;  %v2070_v42 = vadd.f32 %v7369_v37, %v1652_v33 }
 0x32c   : > { %v1915_v43 = vpop.f32.mrf.mxu1  ;;  %v2007_v44 = vpop.f32.mrf.mxu0 }
 0x32d   : > { %2116 = vst [vmem:[%s8528_s16 + $0x108] sm:$0xff] %v2068_v41  ;;  %2118 = vst [vmem:[%s8528_s16 + $0x118] sm:$0xff] %v2070_v42  ;;  %v2069_v46 = vadd.f32 %v1915_v43, %v1651_v38  ;;  %v2064_v47 = vadd.f32 %v2007_v44, %v1646_v39 }
 0x32e   : > { %v1919_v48 = vpop.f32.mrf.mxu1 }
 0x32f   : > { %2117 = vst [vmem:[%s8528_s16 + $0x110] sm:$0xff] %v2069_v46  ;;  %2112 = vst [vmem:[%s8528_s16 + $0xe8] sm:$0xff] %v2064_v47  ;;  %v2071_v50 = vadd.f32 %v1919_v48, %v1653_v45 }
 0x330   : > { %v1921_v51 = vpop.f32.mrf.mxu1 }
 0x331   : > { %2119 = vst [vmem:[%s8528_s16 + $0x120] sm:$0xff] %v2071_v50  ;;  %v2072_v53 = vadd.f32 %v1921_v51, %v1654_v49 }
 0x332   : > { %v1923_v54 = vpop.f32.mrf.mxu1 }
 0x333   : > { %2120 = vst [vmem:[%s8528_s16 + $0x128] sm:$0xff] %v2072_v53  ;;  %v2074_v56 = vadd.f32 %v1923_v54, %v1656_v52 }
 0x334   : > { %v1925_v57 = vpop.f32.mrf.mxu1 }
 0x335   : > { %2122 = vst [vmem:[%s8528_s16 + $0x138] sm:$0xff] %v2074_v56  ;;  %v2075_v60 = vadd.f32 %v1925_v57, %v1657_v55 }
 0x336   : > { %v1929_v61 = vpop.f32.mrf.mxu1  ;;  %v7372_v62 = vpop.f32.mrf.mxu0 }
 0x337   : > { %2123 = vst [vmem:[%s8528_s16 + $0x140] sm:$0xff] %v2075_v60  ;;  %v2077_v1 = vadd.f32 %v1929_v61, %v1659_v58  ;;  %v2079_v2 = vadd.f32 %v7372_v62, %v1661_v59 }
 0x338   : > { %v1931_v40 = vpop.f32.mrf.mxu1  ;;  %v2020_v3 = vpop.f32.mrf.mxu0 }
 0x339   : > { %2125 = vst [vmem:[%s8528_s16 + $0x150] sm:$0xff] %v2077_v1  ;;  %2127 = vst [vmem:[%s8528_s16 + $0x160] sm:$0xff] %v2079_v2  ;;  %v2078_v6 = vadd.f32 %v1931_v40, %v1660_v63  ;;  %v2073_v7 = vadd.f32 %v2020_v3, %v1655_v0 }
 0x33a   : > { %v1933_v8 = vpop.f32.mrf.mxu1  ;;  %v7373_v9 = vpop.f32.mrf.mxu0 }
 0x33b   : > { %2126 = vst [vmem:[%s8528_s16 + $0x158] sm:$0xff] %v2078_v6  ;;  %2121 = vst [vmem:[%s8528_s16 + $0x130] sm:$0xff] %v2073_v7  ;;  %v2080_v12 = vadd.f32 %v1933_v8, %v1662_v4  ;;  %v2082_v13 = vadd.f32 %v7373_v9, %v1664_v5 }
 0x33c   : > { %v1935_v14 = vpop.f32.mrf.mxu1  ;;  %v2023_v15 = vpop.f32.mrf.mxu0 }
 0x33d   : > { %2128 = vst [vmem:[%s8528_s16 + $0x168] sm:$0xff] %v2080_v12  ;;  %2130 = vst [vmem:[%s8528_s16 + $0x178] sm:$0xff] %v2082_v13  ;;  %v2081_v16 = vadd.f32 %v1935_v14, %v1663_v10  ;;  %v2076_v17 = vadd.f32 %v2023_v15, %v1658_v11 }
 0x33f   : > { %2129 = vst [vmem:[%s8528_s16 + $0x170] sm:$0xff] %v2081_v16  ;;  %2124 = vst [vmem:[%s8528_s16 + $0x148] sm:$0xff] %v2076_v17 }
 0x340 PF: > { %p6155_p5 = scmp.ne.s32.totalorder %s8197_s22, 2 }
 0x341   : > { %s2681_s28 = sshra.s32 (!%p6155_p5), %s8304_s18, 3 }
 0x342   : > { %2134 = sbr.rel (%p6155_p5) target bundleno = 1340 (0x53c), region = 56  ;;  %s6204_s20 = sshll.u32 (!%p6155_p5), %s2681_s28, 2 }
 0x343   : > { %s8679_s29 = scalar_lea.vmem (!%p6155_p5), [#allocation2], %s6204_s20 }
 0x347   : > { %v7787_v18 = vld [vmem:[#allocation3 + $0x78] sm:$0xff]   ;;  %v7790_v21 = vld [vmem:[#allocation3 + $0x70] sm:$0xff]   ;;  %v7793_v24 = vld [vmem:[#allocation3 + $0x68] sm:$0xff]  }
 0x348   : > { %v7788_v19 = vld [vmem:[#allocation3 + $0xb8] sm:$0xff]   ;;  %6974 = vmatprep.subr.bf16.mxu0 %v7787_v18  ;;  %v7791_v22 = vld [vmem:[#allocation3 + $0xb0] sm:$0xff]   ;;  %v7794_v25 = vld [vmem:[#allocation3 + $0xa8] sm:$0xff]  }
 0x349   : > { %v7789_v20 = vld [vmem:[#allocation3 + $0x38] sm:$0xff]   ;;  %7374 = vmatprep.subr.bf16.mxu1 %v7788_v19  ;;  %v7792_v23 = vld [vmem:[#allocation3 + $0x30] sm:$0xff]   ;;  %v7795_v26 = vld [vmem:[#allocation3 + $0x28] sm:$0xff]  }
 0x34a   : > { %6975 = vmatpush3.bf16.msra.mxu0 %v7789_v20  ;;  %7375 = vmatpush3.bf16.msra.mxu1 %v7788_v19  ;;  %v7796_v27 = vld [vmem:[#allocation3 + $0x60] sm:$0xff]   ;;  %v7799_v30 = vld [vmem:[#allocation3 + $0x58] sm:$0xff]   ;;  %v7802_v33 = vld [vmem:[#allocation3 + $0x50] sm:$0xff]  }
 0x34b   : > { %6976 = vmatprep.subr.bf16.mxu0 %v7790_v21  ;;  %7376 = vmatprep.subr.bf16.mxu1 %v7791_v22  ;;  %v7797_v28 = vld [vmem:[#allocation3 + $0xa0] sm:$0xff]   ;;  %v7800_v31 = vld [vmem:[#allocation3 + $0x98] sm:$0xff]   ;;  %v7803_v34 = vld [vmem:[#allocation3 + $0x90] sm:$0xff]  }
 0x34c   : > { %v7798_v29 = vld [vmem:[#allocation3 + $0x20] sm:$0xff]   ;;  %v7801_v32 = vld [vmem:[#allocation3 + $0x18] sm:$0xff]   ;;  %v7804_v35 = vld [vmem:[#allocation3 + $0x10] sm:$0xff]  }
 0x34d   : > { %v7805_v36 = vld [vmem:[#allocation3 + $0x48] sm:$0xff]   ;;  %v7808_v39 = vld [vmem:[#allocation3 + $0x40] sm:$0xff]   ;;  %v7820_v50 = vld [vmem:[%s8301_s17 + $0x50] ss:$12 sps:$4 sm:$0xff]  }
 0x34e   : > { %6977 = vmatpush3.bf16.msra.mxu0 %v7792_v23  ;;  %7377 = vmatpush3.bf16.msra.mxu1 %v7791_v22  ;;  %v7806_v37 = vld [vmem:[#allocation3 + $0x88] sm:$0xff]   ;;  %v7809_v41 = vld [vmem:[#allocation3 + $0x80] sm:$0xff]   ;;  %v7846_v55 = vld [vmem:[%s8319_s12 + $0xb0] ss:$12 sps:$4 sm:$0xff]  }
 0x34f   : > { %6978 = vmatprep.subr.bf16.mxu0 %v7793_v24  ;;  %7378 = vmatprep.subr.bf16.mxu1 %v7794_v25  ;;  %v7807_v38 = vld [vmem:[#allocation3 + $0x8] sm:$0xff]   ;;  %v7813_v42 = vld [vmem:[%s8301_s17 + $0x4] ss:$12 sps:$4 sm:$0xff]   ;;  %v7821_v51 = vld [vmem:[%s8301_s17 + $0x34] ss:$12 sps:$4 sm:$0xff]  }
 0x350   : > { %v7814_v43 = vld [vmem:[%s8301_s17 + $0x8] ss:$12 sps:$4 sm:$0xff]   ;;  %2519 = vmatprep.mubr.bf16.mxu0 %v7813_v42  ;;  %v7810_v44 = vld [vmem:[#allocation3] sm:$0xff]   ;;  %v7845_v54 = vld [vmem:[%s8319_s12 + $0xac] ss:$12 sps:$4 sm:$0xff]  }
 0x351   : > { %v7811_v45 = vld [vmem:[%s8301_s17] ss:$12 sps:$4 sm:$0xff]   ;;  %7390 = vmatprep.mubr.bf16.mxu1 %v7814_v43  ;;  %v7816_v47 = vld [vmem:[%s8301_s17 + $0x1c] ss:$12 sps:$4 sm:$0xff]   ;;  %v7819_v48 = vld [vmem:[%s8301_s17 + $0x38] ss:$12 sps:$4 sm:$0xff]  }
 0x352   : > { %6979 = vmatpush3.bf16.msra.mxu0 %v7795_v26  ;;  %7379 = vmatpush3.bf16.msra.mxu1 %v7794_v25  ;;  %v7815_v46 = vld [vmem:[%s8301_s17 + $0x20] ss:$12 sps:$4 sm:$0xff]   ;;  %v7818_v49 = vld [vmem:[%s8301_s17 + $0x18] ss:$12 sps:$4 sm:$0xff]   ;;  %v7827_v52 = vld [vmem:[%s8301_s17 + $0x68] ss:$12 sps:$4 sm:$0xff]  }
 0x353   : > { %6980 = vmatprep.subr.bf16.mxu0 %v7796_v27  ;;  %7380 = vmatprep.subr.bf16.mxu1 %v7797_v28  ;;  %v7843_v53 = vld [vmem:[%s8319_s12 + $0xa8] ss:$12 sps:$4 sm:$0xff]   ;;  %v7823_v56 = vld [vmem:[%s8301_s17 + $0x30] ss:$12 sps:$4 sm:$0xff]   ;;  %v7824_v58 = vld [vmem:[%s8301_s17 + $0x4c] ss:$12 sps:$4 sm:$0xff]  }
 0x354   : > { %v7847_v57 = vld [vmem:[%s8319_s12 + $0x90] ss:$12 sps:$4 sm:$0xff]   ;;  %v7849_v59 = vld [vmem:[%s8319_s12 + $0x94] ss:$12 sps:$4 sm:$0xff]   ;;  %v7835_v61 = vld [vmem:[%s8301_s17 + $0x98] ss:$12 sps:$4 sm:$0xff]  }
 0x355   : > { %v7828_v60 = vld [vmem:[%s8301_s17 + $0x80] ss:$12 sps:$4 sm:$0xff]   ;;  %v7850_v62 = vld [vmem:[%s8319_s12 + $0x78] ss:$12 sps:$4 sm:$0xff]   ;;  %v7852_v0 = vld [vmem:[%s8319_s12 + $0x7c] ss:$12 sps:$4 sm:$0xff]  }
 0x356   : > { %6981 = vmatpush3.bf16.msra.mxu0 %v7798_v29  ;;  %7381 = vmatpush3.bf16.msra.mxu1 %v7797_v28  ;;  %v7853_v63 = vld [vmem:[%s8319_s12 + $0x98] ss:$12 sps:$4 sm:$0xff]   ;;  %v7854_v2 = vld [vmem:[%s8319_s12 + $0x60] ss:$12 sps:$4 sm:$0xff]   ;;  %v7826_v40 = vld [vmem:[%s8301_s17 + $0x48] ss:$12 sps:$4 sm:$0xff]  }
 0x357   : > { %6982 = vmatprep.subr.bf16.mxu0 %v7799_v30  ;;  %7382 = vmatprep.subr.bf16.mxu1 %v7800_v31  ;;  %v7856_v1 = vld [vmem:[%s8319_s12 + $0x64] ss:$12 sps:$4 sm:$0xff]   ;;  %v7831_v5 = vld [vmem:[%s8301_s17 + $0x60] ss:$12 sps:$4 sm:$0xff]   ;;  %v7832_v6 = vld [vmem:[%s8301_s17 + $0x7c] ss:$12 sps:$4 sm:$0xff]  }
 0x358   : > { %v7836_v3 = vld [vmem:[%s8301_s17 + $0xb0] ss:$12 sps:$4 sm:$0xff]   ;;  %v7834_v7 = vld [vmem:[%s8301_s17 + $0x78] ss:$12 sps:$4 sm:$0xff]   ;;  %v7837_v8 = vld [vmem:[%s8301_s17 + $0x94] ss:$12 sps:$4 sm:$0xff]  }
 0x359   : > { %v7829_v4 = vld [vmem:[%s8301_s17 + $0x64] ss:$12 sps:$4 sm:$0xff]   ;;  %v7840_v10 = vld [vmem:[%s8301_s17 + $0xac] ss:$12 sps:$4 sm:$0xff]   ;;  %v7842_v11 = vld [vmem:[%s8301_s17 + $0xa8] ss:$12 sps:$4 sm:$0xff]  }
 0x35a   : > { %6983 = vmatpush3.bf16.msra.mxu0 %v7801_v32  ;;  %7383 = vmatpush3.bf16.msra.mxu1 %v7800_v31  ;;  %v7839_v9 = vld [vmem:[%s8301_s17 + $0x90] ss:$12 sps:$4 sm:$0xff]   ;;  %v7859_v12 = vld [vmem:[%s8319_s12 + $0x4c] ss:$12 sps:$4 sm:$0xff]   ;;  %v7857_v14 = vld [vmem:[%s8319_s12 + $0x48] ss:$12 sps:$4 sm:$0xff]  }
 0x35b   : > { %6984 = vmatprep.subr.bf16.mxu0 %v7802_v33  ;;  %7384 = vmatprep.subr.bf16.mxu1 %v7803_v34  ;;  %v7860_v13 = vld [vmem:[%s8319_s12 + $0x80] ss:$12 sps:$4 sm:$0xff]   ;;  %v7864_v16 = vld [vmem:[%s8319_s12 + $0x68] ss:$12 sps:$4 sm:$0xff]   ;;  %v7861_v17 = vld [vmem:[%s8319_s12 + $0x30] ss:$12 sps:$4 sm:$0xff]  }
 0x35c   : > { %v7863_v15 = vld [vmem:[%s8319_s12 + $0x34] ss:$12 sps:$4 sm:$0xff]   ;;  %v7867_v18 = vld [vmem:[%s8319_s12 + $0x1c] ss:$12 sps:$4 sm:$0xff]   ;;  %v7865_v20 = vld [vmem:[%s8319_s12 + $0x18] ss:$12 sps:$4 sm:$0xff]  }
 0x35d   : > { %v7868_v19 = vld [vmem:[%s8319_s12 + $0x50] ss:$12 sps:$4 sm:$0xff]   ;;  %v7872_v22 = vld [vmem:[%s8319_s12 + $0x38] ss:$12 sps:$4 sm:$0xff]   ;;  %v7869_v23 = vld [vmem:[%s8319_s12] ss:$12 sps:$4 sm:$0xff]  }
 0x35e   : > { %6985 = vmatpush3.bf16.msra.mxu0 %v7804_v35  ;;  %7385 = vmatpush3.bf16.msra.mxu1 %v7803_v34  ;;  %v7871_v21 = vld [vmem:[%s8319_s12 + $0x4] ss:$12 sps:$4 sm:$0xff]   ;;  %v7873_v24 = vld [vmem:[%s8319_s12 + $0x20] ss:$12 sps:$4 sm:$0xff]   ;;  %v8213_v25 = vmov 0  }
 0x35f   : > { %6986 = vmatprep.subr.bf16.mxu0 %v7805_v36  ;;  %7386 = vmatprep.subr.bf16.mxu1 %v7806_v37  ;;  %v7874_v26 = vld [vmem:[%s8319_s12 + $0x8] ss:$12 sps:$4 sm:$0xff]   ;;  %v6590_v35 = vld [vmem:[%s8679_s29] sm:$0xff]   ;;  %s6497_s12 = smul.u32 24, %s2681_s28 }
 0x361   : > { %s8706_s0 = scalar_lea.vmem [#allocation6], %s6497_s12 }
 0x362   : > { %6987 = vmatpush3.bf16.msra.mxu0 %v7807_v38  ;;  %7387 = vmatpush3.bf16.msra.mxu1 %v7806_v37 }
 0x363   : > { %6988 = vmatprep.subr.bf16.mxu0 %v7808_v39  ;;  %7388 = vmatprep.subr.bf16.mxu1 %v7809_v41 }
 0x366   : > { %6989 = vmatpush3.bf16.msra.mxu0 %v7810_v44  ;;  %7389 = vmatpush3.bf16.msra.mxu1 %v7809_v41  ;;  %v6591_v41 = vunpack.c.l.bf16 %v6590_v35  ;;  %v6592_v44 = vunpack.c.h.bf16 %v6590_v35 }
 0x367   : > { %3040 = vmatprep.subr.bf16.mxu1 %v7845_v54  ;;  %7406 = vmatprep.subr.bf16.mxu0 %v7846_v55 }
 0x369   : > { %2520 = vmatmul.mubr.bf16.vlgmr.msra.gmra.mxu0 %v7811_v45  ;;  %7391 = vmatmul.mubr.bf16.vlgmr.msra.gmra.mxu1 %v7815_v46 }
 0x36a   : > { %2527 = vmatprep.mubr.bf16.mxu0 %v7816_v47  ;;  %7394 = vmatprep.mubr.bf16.mxu1 %v7819_v48 }
 0x36b   : > { %3041 = vmatpush1.bf16.msra.mxu1 %v7843_v53  ;;  %7407 = vmatpush3.bf16.msra.mxu0 %v7846_v55  ;;  %v6820_v53 = vld [vmem:[%s8679_s29 + $0x8] sm:$0xff]  }
 0x36c   : > { %3042 = vmatprep.subr.bf16.mxu1 %v7849_v59  ;;  %7408 = vmatprep.subr.bf16.mxu0 %v7853_v63  ;;  %v6595_v59 = vunpack.c.l.bf16 %v6820_v53 }
 0x36f   : > { %3043 = vmatpush1.bf16.msra.mxu1 %v7847_v57  ;;  %7409 = vmatpush3.bf16.msra.mxu0 %v7853_v63 }
 0x370   : > { %3044 = vmatprep.subr.bf16.mxu1 %v7852_v0  ;;  %7410 = vmatprep.subr.bf16.mxu0 %v7860_v13 }
 0x371   : > { %2528 = vmatmul.mubr.bf16.gmra.mxu0 %v7818_v49  ;;  %7395 = vmatmul.mubr.bf16.gmra.mxu1 %v7820_v50 }
 0x372   : > { %2535 = vmatprep.mubr.bf16.mxu0 %v7821_v51  ;;  %7398 = vmatprep.mubr.bf16.mxu1 %v7827_v52 }
 0x373   : > { %3045 = vmatpush1.bf16.msra.mxu1 %v7850_v62  ;;  %7411 = vmatpush3.bf16.msra.mxu0 %v7860_v13  ;;  %v6596_v62 = vunpack.c.h.bf16 %v6820_v53 }
 0x374   : > { %3046 = vmatprep.subr.bf16.mxu1 %v7856_v1  ;;  %7412 = vmatprep.subr.bf16.mxu0 %v7864_v16 }
 0x377   : > { %3047 = vmatpush1.bf16.msra.mxu1 %v7854_v2  ;;  %7413 = vmatpush3.bf16.msra.mxu0 %v7864_v16 }
 0x378   : > { %3048 = vmatprep.subr.bf16.mxu1 %v7859_v12  ;;  %7414 = vmatprep.subr.bf16.mxu0 %v7868_v19 }
 0x379   : > { %2536 = vmatmul.mubr.bf16.gmra.mxu0 %v7823_v56  ;;  %7399 = vmatmul.mubr.bf16.gmra.mxu1 %v7828_v60 }
 0x37a   : > { %2543 = vmatprep.mubr.bf16.mxu0 %v7824_v58  ;;  %7402 = vmatprep.mubr.bf16.mxu1 %v7835_v61 }
 0x37b   : > { %3049 = vmatpush1.bf16.msra.mxu1 %v7857_v14  ;;  %7415 = vmatpush3.bf16.msra.mxu0 %v7868_v19 }
 0x37c   : > { %3050 = vmatprep.subr.bf16.mxu1 %v7863_v15  ;;  %7416 = vmatprep.subr.bf16.mxu0 %v7872_v22 }
 0x37f   : > { %3051 = vmatpush1.bf16.msra.mxu1 %v7861_v17  ;;  %7417 = vmatpush3.bf16.msra.mxu0 %v7872_v22 }
 0x380   : > { %3052 = vmatprep.subr.bf16.mxu1 %v7867_v18  ;;  %7418 = vmatprep.subr.bf16.mxu0 %v7873_v24 }
 0x381   : > { %2544 = vmatmul.mubr.bf16.gmra.mxu0 %v7826_v40  ;;  %7403 = vmatmul.mubr.bf16.gmra.mxu1 %v7836_v3 }
 0x382   : > { %2551 = vmatprep.mubr.bf16.mxu0 %v7829_v4  ;;  %3072 = vmatprep.mubr.bf16.mxu1 %v8213_v25 }
 0x383   : > { %3053 = vmatpush1.bf16.msra.mxu1 %v7865_v20  ;;  %7419 = vmatpush3.bf16.msra.mxu0 %v7873_v24  ;;  %v6822_v24 = vld [vmem:[%s8679_s29 + $0x18] sm:$0xff]  }
 0x384   : > { %3054 = vmatprep.subr.bf16.mxu1 %v7871_v21  ;;  %7420 = vmatprep.subr.bf16.mxu0 %v7874_v26 }
 0x387   : > { %3055 = vmatpush1.bf16.msra.mxu1 %v7869_v23  ;;  %7421 = vmatpush3.bf16.msra.mxu0 %v7874_v26 }
 0x389   : > { %2552 = vmatmul.mubr.bf16.gmra.mxu0 %v7831_v5 }
 0x38a   : > { %2559 = vmatprep.mubr.bf16.mxu0 %v7832_v6  ;;  %v6821_v6 = vld [vmem:[%s8679_s29 + $0x10] sm:$0xff]  }
 0x38b   : > { %v6599_v12 = vunpack.c.l.bf16 %v6821_v6  ;;  %v6600_v15 = vunpack.c.h.bf16 %v6821_v6 }
 0x391   : > { %2560 = vmatmul.mubr.bf16.gmra.mxu0 %v7834_v7 }
 0x392   : > { %2567 = vmatprep.mubr.bf16.mxu0 %v7837_v8 }
 0x399   : > { %2568 = vmatmul.mubr.bf16.gmra.mxu0 %v7839_v9 }
 0x39a   : > { %2575 = vmatprep.mubr.bf16.mxu0 %v7840_v10 }
 0x3a1   : > { %2576 = vmatmul.mubr.bf16.gmra.mxu0 %v7842_v11 }
 0x429   : > { %v6990_v27 = vpop.f32.mrf.mxu0  ;;  %v7392_v28 = vpop.f32.mrf.mxu1 }
 0x42b   : > { %v6991_v29 = vpop.f32.mrf.mxu0  ;;  %v2618_v30 = vpop.f32.mrf.mxu1 }
 0x42c   : > { %v6992_v31 = vadd.f32 %v6991_v29, %v6990_v27 }
 0x42d   : > { %v6993_v32 = vpop.f32.mrf.mxu0  ;;  %v7393_v33 = vpop.f32.mrf.mxu1 }
 0x42e   : > { %v2619_v34 = vadd.f32 %v6992_v31, %v2618_v30  ;;  %v6603_v31 = vunpack.c.l.bf16 %v6822_v24 }
 0x42f   : > { %v6994_v36 = vpop.f32.mrf.mxu0  ;;  %v2621_v38 = vpop.f32.mrf.mxu1 }
 0x430   : > { %v6995_v37 = vadd.f32 %v6994_v36, %v6993_v32  ;;  %v2717_v42 = vmul.f32 2.0, %v2619_v34  ;;  %v6604_v34 = vunpack.c.h.bf16 %v6822_v24 }
 0x431   : > { %v6996_v39 = vpop.f32.mrf.mxu0  ;;  %v7396_v49 = vpop.f32.mrf.mxu1 }
 0x432   : > { %v2622_v43 = vadd.f32 %v6995_v37, %v2621_v38  ;;  %v2733_v50 = vsub.f32 %v2717_v42, %v6591_v41 }
 0x433   : > { %v6997_v45 = vpop.f32.mrf.mxu0  ;;  %v2634_v57 = vpop.f32.mrf.mxu1 }
 0x434   : > { %v2718_v46 = vmul.f32 2.0, %v2622_v43  ;;  %v6998_v47 = vadd.f32 %v6997_v45, %v6996_v39 }
 0x435   : > { %v6999_v48 = vpop.f32.mrf.mxu0  ;;  %v7397_v2 = vpop.f32.mrf.mxu1 }
 0x436   : > { %v2734_v51 = vsub.f32 %v2718_v46, %v6592_v44  ;;  %v2627_v52 = vadd.f32 %v7392_v28, %v6998_v47  ;;  %v6823_v44 = vld [vmem:[%s8679_s29 + $0x20] sm:$0xff]  }
 0x437   : > { %v7000_v54 = vpop.f32.mrf.mxu0  ;;  %v2637_v10 = vpop.f32.mrf.mxu1  ;;  %v6608_v53 = vunpack.c.h.bf16 %v6823_v44 }
 0x438   : > { %v2749_v55 = vpack.c.bf16 %v2734_v51, %v2733_v50  ;;  %v7001_v56 = vadd.f32 %v7000_v54, %v6999_v48  ;;  %v2719_v60 = vmul.f32 2.0, %v2627_v52  ;;  %v6607_v50 = vunpack.c.l.bf16 %v6823_v44 }
 0x439   : > { %v7002_v58 = vpop.f32.mrf.mxu0  ;;  %v7400_v20 = vpop.f32.mrf.mxu1 }
 0x43a   : > { %6625 = vst [vmem:[%s8679_s29] sm:$0xff] %v2749_v55   ;;  %v2630_v61 = vadd.f32 %v7393_v33, %v7001_v56  ;;  %3073 = vmatmul.mubr.bf16.vlgmr.msra.gmra.mxu1 %v2749_v55  ;;  %7422 = vmatprep.mubr.bf16.mxu0 %v2749_v55  ;;  %v2735_v3 = vsub.f32 %v2719_v60, %v6595_v59 }
 0x43b   : > { %v7003_v63 = vpop.f32.mrf.mxu0  ;;  %3082 = vmatprep.mubr.bf16.mxu1 %v8213_v25  ;;  %v2650_v29 = vpop.f32.mrf.mxu1 }
 0x43c   : > { %v2720_v0 = vmul.f32 2.0, %v2630_v61  ;;  %v7004_v1 = vadd.f32 %v7003_v63, %v7002_v58 }
 0x43d   : > { %v7005_v40 = vpop.f32.mrf.mxu0  ;;  %v7401_v38 = vpop.f32.mrf.mxu1 }
 0x43e   : > { %v2736_v4 = vsub.f32 %v2720_v0, %v6596_v62  ;;  %v2635_v5 = vadd.f32 %v7004_v1, %v2634_v57  ;;  %v6824_v62 = vld [vmem:[%s8679_s29 + $0x28] sm:$0xff]  }
 0x43f   : > { %v7006_v7 = vpop.f32.mrf.mxu0  ;;  %v2653_v48 = vpop.f32.mrf.mxu1  ;;  %v6612_v6 = vunpack.c.h.bf16 %v6824_v62 }
 0x440   : > { %v7007_v8 = vadd.f32 %v7006_v7, %v7005_v40  ;;  %v2750_v9 = vpack.c.bf16 %v2736_v4, %v2735_v3  ;;  %v2721_v13 = vmul.f32 2.0, %v2635_v5  ;;  %v6611_v3 = vunpack.c.l.bf16 %v6824_v62  ;;  %v2834_v62 = vld [vmem:[%s8706_s0 + $0x10] sm:$0xff] }
 0x441   : > { %v7008_v11 = vpop.f32.mrf.mxu0  ;;  %v7404_v58 = vpop.f32.mrf.mxu1 }
 0x442   : > { %v2638_v14 = vadd.f32 %v7007_v8, %v2637_v10  ;;  %6827 = vst [vmem:[%s8679_s29 + $0x8] sm:$0xff] %v2750_v9   ;;  %3083 = vmatmul.mubr.bf16.gmra.mxu1 %v2750_v9  ;;  %7423 = vmatmul.mubr.bf16.vlgmr.msra.gmra.mxu0 %v2750_v9  ;;  %v2737_v21 = vsub.f32 %v2721_v13, %v6599_v12 }
 0x443   : > { %v7009_v16 = vpop.f32.mrf.mxu0  ;;  %3092 = vmatprep.mubr.bf16.mxu1 %v8213_v25 }
 0x444   : > { %v2722_v17 = vmul.f32 2.0, %v2638_v14  ;;  %v7010_v18 = vadd.f32 %v7009_v16, %v7008_v11 }
 0x445   : > { %v7011_v19 = vpop.f32.mrf.mxu0 }
 0x446   : > { %v2738_v22 = vsub.f32 %v2722_v17, %v6600_v15  ;;  %v2643_v23 = vadd.f32 %v7396_v49, %v7010_v18  ;;  %v6825_v15 = vld [vmem:[%s8679_s29 + $0x30] sm:$0xff]  }
 0x447   : > { %v7012_v26 = vpop.f32.mrf.mxu0  ;;  %v6616_v24 = vunpack.c.h.bf16 %v6825_v15 }
 0x448   : > { %v7013_v27 = vadd.f32 %v7012_v26, %v7011_v19  ;;  %v2751_v28 = vpack.c.bf16 %v2738_v22, %v2737_v21  ;;  %v2723_v32 = vmul.f32 2.0, %v2643_v23  ;;  %v6615_v21 = vunpack.c.l.bf16 %v6825_v15 }
 0x449   : > { %v7014_v30 = vpop.f32.mrf.mxu0 }
 0x44a   : > { %v2646_v33 = vadd.f32 %v7397_v2, %v7013_v27  ;;  %6828 = vst [vmem:[%s8679_s29 + $0x10] sm:$0xff] %v2751_v28   ;;  %3093 = vmatmul.mubr.bf16.gmra.mxu1 %v2751_v28  ;;  %7426 = vmatprep.mubr.bf16.mxu0 %v2751_v28  ;;  %v2739_v41 = vsub.f32 %v2723_v32, %v6603_v31  ;;  %v2666_v2 = vpop.f32.mrf.mxu1 }
 0x44b   : > { %v7015_v35 = vpop.f32.mrf.mxu0  ;;  %3102 = vmatprep.mubr.bf16.mxu1 %v8213_v25 }
 0x44c   : > { %v2724_v36 = vmul.f32 2.0, %v2646_v33  ;;  %v7016_v37 = vadd.f32 %v7015_v35, %v7014_v30  ;;  %v7405_v10 = vpop.f32.mrf.mxu1  ;;  %v6826_v33 = vld [vmem:[%s8679_s29 + $0x38] sm:$0xff]  }
 0x44d   : > { %v7017_v39 = vpop.f32.mrf.mxu0 }
 0x44e   : > { %v2740_v42 = vsub.f32 %v2724_v36, %v6604_v34  ;;  %v2651_v43 = vadd.f32 %v7016_v37, %v2650_v29  ;;  %v2669_v19 = vpop.f32.mrf.mxu1  ;;  %v6619_v37 = vunpack.c.l.bf16 %v6826_v33 }
 0x44f   : > { %v7018_v45 = vpop.f32.mrf.mxu0 }
 0x450   : > { %v7019_v46 = vadd.f32 %v7018_v45, %v7017_v39  ;;  %v2752_v47 = vpack.c.bf16 %v2740_v42, %v2739_v41  ;;  %v2725_v51 = vmul.f32 2.0, %v2651_v43  ;;  %v6620_v41 = vunpack.c.h.bf16 %v6826_v33  ;;  %v2851_v33 = vld [vmem:[%s8706_s0 + $0x98] sm:$0xff] }
 0x451   : > { %v7020_v49 = vpop.f32.mrf.mxu0 }
 0x452   : > { %v2654_v52 = vadd.f32 %v7019_v46, %v2653_v48  ;;  %6829 = vst [vmem:[%s8679_s29 + $0x18] sm:$0xff] %v2752_v47   ;;  %3103 = vmatmul.mubr.bf16.gmra.mxu1 %v2752_v47  ;;  %7427 = vmatmul.mubr.bf16.gmra.mxu0 %v2752_v47  ;;  %v2741_v59 = vsub.f32 %v2725_v51, %v6607_v50  ;;  %v2833_v47 = vld [vmem:[%s8706_s0 + $0x8] sm:$0xff]  ;;  %v2835_v50 = vld [vmem:[%s8706_s0 + $0x18] sm:$0xff] }
 0x453   : > { %v7021_v54 = vpop.f32.mrf.mxu0  ;;  %3112 = vmatprep.mubr.bf16.mxu1 %v8213_v25 }
 0x454   : > { %v2726_v55 = vmul.f32 2.0, %v2654_v52  ;;  %v7022_v56 = vadd.f32 %v7021_v54, %v7020_v49 }
 0x455   : > { %v7023_v57 = vpop.f32.mrf.mxu0 }
 0x456   : > { %v2742_v60 = vsub.f32 %v2726_v55, %v6608_v53  ;;  %v2659_v61 = vadd.f32 %v7400_v20, %v7022_v56  ;;  %v2836_v53 = vld [vmem:[%s8706_s0 + $0x20] sm:$0xff]  ;;  %v2838_v56 = vld [vmem:[%s8706_s0 + $0x30] sm:$0xff] }
 0x457   : > { %v7024_v63 = vpop.f32.mrf.mxu0 }
 0x458   : > { %v7025_v0 = vadd.f32 %v7024_v63, %v7023_v57  ;;  %v2753_v1 = vpack.c.bf16 %v2742_v60, %v2741_v59  ;;  %v2727_v4 = vmul.f32 2.0, %v2659_v61  ;;  %v2840_v57 = vld [vmem:[%s8706_s0 + $0x40] sm:$0xff]  ;;  %v2839_v61 = vld [vmem:[%s8706_s0 + $0x38] sm:$0xff] }
 0x459   : > { %v7026_v40 = vpop.f32.mrf.mxu0 }
 0x45a   : > { %v2662_v5 = vadd.f32 %v7401_v38, %v7025_v0  ;;  %6830 = vst [vmem:[%s8679_s29 + $0x20] sm:$0xff] %v2753_v1   ;;  %3113 = vmatmul.mubr.bf16.gmra.mxu1 %v2753_v1  ;;  %7430 = vmatprep.mubr.bf16.mxu0 %v2753_v1  ;;  %v2743_v12 = vsub.f32 %v2727_v4, %v6611_v3  ;;  %v2843_v3 = vld [vmem:[%s8706_s0 + $0x58] sm:$0xff] }
 0x45b   : > { %v7027_v7 = vpop.f32.mrf.mxu0  ;;  %3122 = vmatprep.mubr.bf16.mxu1 %v8213_v25 }
 0x45c   : > { %v2728_v8 = vmul.f32 2.0, %v2662_v5  ;;  %v7028_v9 = vadd.f32 %v7027_v7, %v7026_v40  ;;  %v2841_v40 = vld [vmem:[%s8706_s0 + $0x48] sm:$0xff] }
 0x45d   : > { %v7029_v11 = vpop.f32.mrf.mxu0 }
 0x45e   : > { %v2744_v13 = vsub.f32 %v2728_v8, %v6612_v6  ;;  %v2667_v14 = vadd.f32 %v7028_v9, %v2666_v2  ;;  %v2842_v8 = vld [vmem:[%s8706_s0 + $0x50] sm:$0xff]  ;;  %v2837_v9 = vld [vmem:[%s8706_s0 + $0x28] sm:$0xff] }
 0x45f   : > { %v7030_v16 = vpop.f32.mrf.mxu0 }
 0x460   : > { %v7031_v17 = vadd.f32 %v7030_v16, %v7029_v11  ;;  %v2754_v18 = vpack.c.bf16 %v2744_v13, %v2743_v12  ;;  %v2729_v22 = vmul.f32 2.0, %v2667_v14  ;;  %v2844_v14 = vld [vmem:[%s8706_s0 + $0x60] sm:$0xff] }
 0x461   : > { %v7032_v20 = vpop.f32.mrf.mxu0 }
 0x462   : > { %v2670_v23 = vadd.f32 %v7031_v17, %v2669_v19  ;;  %6831 = vst [vmem:[%s8679_s29 + $0x28] sm:$0xff] %v2754_v18   ;;  %3123 = vmatmul.mubr.bf16.gmra.mxu1 %v2754_v18  ;;  %7431 = vmatmul.mubr.bf16.gmra.mxu0 %v2754_v18  ;;  %v2745_v30 = vsub.f32 %v2729_v22, %v6615_v21  ;;  %v2845_v18 = vld [vmem:[%s8706_s0 + $0x68] sm:$0xff]  ;;  %v2847_v21 = vld [vmem:[%s8706_s0 + $0x78] sm:$0xff] }
 0x463   : > { %v7033_v26 = vpop.f32.mrf.mxu0  ;;  %3132 = vmatprep.mubr.bf16.mxu1 %v8213_v25 }
 0x464   : > { %v2730_v27 = vmul.f32 2.0, %v2670_v23  ;;  %v7034_v28 = vadd.f32 %v7033_v26, %v7032_v20 }
 0x465   : > { %v7035_v29 = vpop.f32.mrf.mxu0 }
 0x466   : > { %v2746_v31 = vsub.f32 %v2730_v27, %v6616_v24  ;;  %v2675_v32 = vadd.f32 %v7404_v58, %v7034_v28  ;;  %v2848_v24 = vld [vmem:[%s8706_s0 + $0x80] sm:$0xff]  ;;  %v2850_v28 = vld [vmem:[%s8706_s0 + $0x90] sm:$0xff] }
 0x467   : > { %v7036_v34 = vpop.f32.mrf.mxu0 }
 0x468   : > { %v7037_v35 = vadd.f32 %v7036_v34, %v7035_v29  ;;  %v2755_v36 = vpack.c.bf16 %v2746_v31, %v2745_v30  ;;  %v2731_v38 = vmul.f32 2.0, %v2675_v32  ;;  %v2852_v29 = vld [vmem:[%s8706_s0 + $0xa0] sm:$0xff]  ;;  %v2846_v34 = vld [vmem:[%s8706_s0 + $0x70] sm:$0xff] }
 0x46a   : > { %v2678_v39 = vadd.f32 %v7405_v10, %v7037_v35  ;;  %6832 = vst [vmem:[%s8679_s29 + $0x30] sm:$0xff] %v2755_v36   ;;  %3133 = vmatmul.mubr.bf16.gmra.mxu1 %v2755_v36  ;;  %7434 = vmatprep.mubr.bf16.mxu0 %v2755_v36  ;;  %v2747_v43 = vsub.f32 %v2731_v38, %v6619_v37 }
 0x46b   : > { %3142 = vmatprep.mubr.bf16.mxu1 %v8213_v25  ;;  %v2832_v25 = vld [vmem:[%s8706_s0] sm:$0xff] }
 0x46c   : > { %v2732_v42 = vmul.f32 2.0, %v2678_v39  ;;  %v2853_v39 = vld [vmem:[%s8706_s0 + $0xa8] sm:$0xff] }
 0x46e   : > { %v2748_v44 = vsub.f32 %v2732_v42, %v6620_v41  ;;  %v2855_v41 = vld [vmem:[%s8706_s0 + $0xb8] sm:$0xff] }
 0x470   : > { %v2756_v45 = vpack.c.bf16 %v2748_v44, %v2747_v43 }
 0x472   : > { %6833 = vst [vmem:[%s8679_s29 + $0x38] sm:$0xff] %v2756_v45   ;;  %3143 = vmatmul.mubr.bf16.gmra.mxu1 %v2756_v45  ;;  %7435 = vmatmul.mubr.bf16.gmra.mxu0 %v2756_v45 }
 0x4fa   : > { %v3074_v46 = vpop.f32.mrf.mxu1 }
 0x4fb   : > { %v3250_v48 = vadd.f32 %v3074_v46, %v2832_v25  ;;  %v2854_v25 = vld [vmem:[%s8706_s0 + $0xb0] sm:$0xff]  ;;  %v2849_v46 = vld [vmem:[%s8706_s0 + $0x88] sm:$0xff] }
 0x4fc   : > { %v3076_v49 = vpop.f32.mrf.mxu1 }
 0x4fd   : > { %3298 = vst [vmem:[%s8706_s0] sm:$0xff] %v3250_v48  ;;  %v3251_v51 = vadd.f32 %v3076_v49, %v2833_v47 }
 0x4fe   : > { %v3078_v52 = vpop.f32.mrf.mxu1 }
 0x4ff   : > { %3299 = vst [vmem:[%s8706_s0 + $0x8] sm:$0xff] %v3251_v51  ;;  %v3253_v54 = vadd.f32 %v3078_v52, %v2835_v50  ;;  %v2856_v51 = vld [vmem:[%s8706_s0 + $0xc0] sm:$0xff] }
 0x500   : > { %v3080_v55 = vpop.f32.mrf.mxu1 }
 0x501   : > { %3301 = vst [vmem:[%s8706_s0 + $0x18] sm:$0xff] %v3253_v54  ;;  %v3254_v58 = vadd.f32 %v3080_v55, %v2836_v53  ;;  %v2857_v55 = vld [vmem:[%s8706_s0 + $0xc8] sm:$0xff] }
 0x502   : > { %v3084_v59 = vpop.f32.mrf.mxu1  ;;  %v7424_v60 = vpop.f32.mrf.mxu0 }
 0x503   : > { %3302 = vst [vmem:[%s8706_s0 + $0x20] sm:$0xff] %v3254_v58  ;;  %v3256_v63 = vadd.f32 %v3084_v59, %v2838_v56  ;;  %v3258_v0 = vadd.f32 %v7424_v60, %v2840_v57  ;;  %v2859_v58 = vld [vmem:[%s8706_s0 + $0xd8] sm:$0xff] }
 0x504   : > { %v3086_v1 = vpop.f32.mrf.mxu1  ;;  %v3187_v2 = vpop.f32.mrf.mxu0 }
 0x505   : > { %3304 = vst [vmem:[%s8706_s0 + $0x30] sm:$0xff] %v3256_v63  ;;  %3306 = vst [vmem:[%s8706_s0 + $0x40] sm:$0xff] %v3258_v0  ;;  %v3257_v4 = vadd.f32 %v3086_v1, %v2839_v61  ;;  %v3252_v5 = vadd.f32 %v3187_v2, %v2834_v62  ;;  %v2860_v61 = vld [vmem:[%s8706_s0 + $0xe0] sm:$0xff]  ;;  %v2862_v0 = vld [vmem:[%s8706_s0 + $0xf0] sm:$0xff] }
 0x506   : > { %v3088_v6 = vpop.f32.mrf.mxu1  ;;  %v7425_v7 = vpop.f32.mrf.mxu0  ;;  %v2864_v1 = vld [vmem:[%s8706_s0 + $0x100] sm:$0xff] }
 0x507   : > { %3305 = vst [vmem:[%s8706_s0 + $0x38] sm:$0xff] %v3257_v4  ;;  %3300 = vst [vmem:[%s8706_s0 + $0x10] sm:$0xff] %v3252_v5  ;;  %v3259_v10 = vadd.f32 %v3088_v6, %v2841_v40  ;;  %v3261_v11 = vadd.f32 %v7425_v7, %v2843_v3  ;;  %v2863_v4 = vld [vmem:[%s8706_s0 + $0xf8] sm:$0xff]  ;;  %v2858_v5 = vld [vmem:[%s8706_s0 + $0xd0] sm:$0xff] }
 0x508   : > { %v3090_v12 = vpop.f32.mrf.mxu1  ;;  %v3190_v13 = vpop.f32.mrf.mxu0 }
 0x509   : > { %3307 = vst [vmem:[%s8706_s0 + $0x48] sm:$0xff] %v3259_v10  ;;  %3309 = vst [vmem:[%s8706_s0 + $0x58] sm:$0xff] %v3261_v11  ;;  %v3260_v15 = vadd.f32 %v3090_v12, %v2842_v8  ;;  %v3255_v16 = vadd.f32 %v3190_v13, %v2837_v9  ;;  %v2865_v10 = vld [vmem:[%s8706_s0 + $0x108] sm:$0xff]  ;;  %v2867_v11 = vld [vmem:[%s8706_s0 + $0x118] sm:$0xff] }
 0x50a   : > { %v3094_v17 = vpop.f32.mrf.mxu1 }
 0x50b   : > { %3308 = vst [vmem:[%s8706_s0 + $0x50] sm:$0xff] %v3260_v15  ;;  %3303 = vst [vmem:[%s8706_s0 + $0x28] sm:$0xff] %v3255_v16  ;;  %v3262_v19 = vadd.f32 %v3094_v17, %v2844_v14  ;;  %v2866_v16 = vld [vmem:[%s8706_s0 + $0x110] sm:$0xff]  ;;  %v2861_v17 = vld [vmem:[%s8706_s0 + $0xe8] sm:$0xff] }
 0x50c   : > { %v3096_v20 = vpop.f32.mrf.mxu1 }
 0x50d   : > { %3310 = vst [vmem:[%s8706_s0 + $0x60] sm:$0xff] %v3262_v19  ;;  %v3263_v22 = vadd.f32 %v3096_v20, %v2845_v18 }
 0x50e   : > { %v3098_v23 = vpop.f32.mrf.mxu1 }
 0x50f   : > { %3311 = vst [vmem:[%s8706_s0 + $0x68] sm:$0xff] %v3263_v22  ;;  %v3265_v26 = vadd.f32 %v3098_v23, %v2847_v21  ;;  %v2868_v22 = vld [vmem:[%s8706_s0 + $0x120] sm:$0xff] }
 0x510   : > { %v3100_v27 = vpop.f32.mrf.mxu1 }
 0x511   : > { %3313 = vst [vmem:[%s8706_s0 + $0x78] sm:$0xff] %v3265_v26  ;;  %v3266_v30 = vadd.f32 %v3100_v27, %v2848_v24  ;;  %v2869_v27 = vld [vmem:[%s8706_s0 + $0x128] sm:$0xff] }
 0x512   : > { %v3104_v31 = vpop.f32.mrf.mxu1  ;;  %v7428_v32 = vpop.f32.mrf.mxu0 }
 0x513   : > { %3314 = vst [vmem:[%s8706_s0 + $0x80] sm:$0xff] %v3266_v30  ;;  %v3268_v35 = vadd.f32 %v3104_v31, %v2850_v28  ;;  %v3270_v36 = vadd.f32 %v7428_v32, %v2852_v29  ;;  %v2871_v30 = vld [vmem:[%s8706_s0 + $0x138] sm:$0xff] }
 0x514   : > { %v3106_v37 = vpop.f32.mrf.mxu1  ;;  %v3203_v38 = vpop.f32.mrf.mxu0 }
 0x515   : > { %3316 = vst [vmem:[%s8706_s0 + $0x90] sm:$0xff] %v3268_v35  ;;  %3318 = vst [vmem:[%s8706_s0 + $0xa0] sm:$0xff] %v3270_v36  ;;  %v3269_v42 = vadd.f32 %v3106_v37, %v2851_v33  ;;  %v3264_v43 = vadd.f32 %v3203_v38, %v2846_v34  ;;  %v2872_v33 = vld [vmem:[%s8706_s0 + $0x140] sm:$0xff]  ;;  %v2874_v36 = vld [vmem:[%s8706_s0 + $0x150] sm:$0xff] }
 0x516   : > { %v3108_v44 = vpop.f32.mrf.mxu1  ;;  %v7429_v45 = vpop.f32.mrf.mxu0  ;;  %v2876_v37 = vld [vmem:[%s8706_s0 + $0x160] sm:$0xff] }
 0x517   : > { %3317 = vst [vmem:[%s8706_s0 + $0x98] sm:$0xff] %v3269_v42  ;;  %3312 = vst [vmem:[%s8706_s0 + $0x70] sm:$0xff] %v3264_v43  ;;  %v3271_v47 = vadd.f32 %v3108_v44, %v2853_v39  ;;  %v3273_v48 = vadd.f32 %v7429_v45, %v2855_v41  ;;  %v2875_v42 = vld [vmem:[%s8706_s0 + $0x158] sm:$0xff]  ;;  %v2870_v43 = vld [vmem:[%s8706_s0 + $0x130] sm:$0xff] }
 0x518   : > { %v3110_v49 = vpop.f32.mrf.mxu1  ;;  %v3206_v50 = vpop.f32.mrf.mxu0 }
 0x519   : > { %3319 = vst [vmem:[%s8706_s0 + $0xa8] sm:$0xff] %v3271_v47  ;;  %3321 = vst [vmem:[%s8706_s0 + $0xb8] sm:$0xff] %v3273_v48  ;;  %v3272_v52 = vadd.f32 %v3110_v49, %v2854_v25  ;;  %v3267_v53 = vadd.f32 %v3206_v50, %v2849_v46  ;;  %v2877_v47 = vld [vmem:[%s8706_s0 + $0x168] sm:$0xff]  ;;  %v2879_v48 = vld [vmem:[%s8706_s0 + $0x178] sm:$0xff] }
 0x51a   : > { %v3114_v54 = vpop.f32.mrf.mxu1 }
 0x51b   : > { %3320 = vst [vmem:[%s8706_s0 + $0xb0] sm:$0xff] %v3272_v52  ;;  %3315 = vst [vmem:[%s8706_s0 + $0x88] sm:$0xff] %v3267_v53  ;;  %v3274_v56 = vadd.f32 %v3114_v54, %v2856_v51  ;;  %v2878_v53 = vld [vmem:[%s8706_s0 + $0x170] sm:$0xff]  ;;  %v2873_v54 = vld [vmem:[%s8706_s0 + $0x148] sm:$0xff] }
 0x51c   : > { %v3116_v57 = vpop.f32.mrf.mxu1 }
 0x51d   : > { %3322 = vst [vmem:[%s8706_s0 + $0xc0] sm:$0xff] %v3274_v56  ;;  %v3275_v59 = vadd.f32 %v3116_v57, %v2857_v55 }
 0x51e   : > { %v3118_v60 = vpop.f32.mrf.mxu1 }
 0x51f   : > { %3323 = vst [vmem:[%s8706_s0 + $0xc8] sm:$0xff] %v3275_v59  ;;  %v3277_v62 = vadd.f32 %v3118_v60, %v2859_v58 }
 0x520   : > { %v3120_v63 = vpop.f32.mrf.mxu1 }
 0x521   : > { %3325 = vst [vmem:[%s8706_s0 + $0xd8] sm:$0xff] %v3277_v62  ;;  %v3278_v2 = vadd.f32 %v3120_v63, %v2860_v61 }
 0x522   : > { %v3124_v40 = vpop.f32.mrf.mxu1  ;;  %v7432_v3 = vpop.f32.mrf.mxu0 }
 0x523   : > { %3326 = vst [vmem:[%s8706_s0 + $0xe0] sm:$0xff] %v3278_v2  ;;  %v3280_v6 = vadd.f32 %v3124_v40, %v2862_v0  ;;  %v3282_v7 = vadd.f32 %v7432_v3, %v2864_v1 }
 0x524   : > { %v3126_v8 = vpop.f32.mrf.mxu1  ;;  %v3219_v9 = vpop.f32.mrf.mxu0 }
 0x525   : > { %3328 = vst [vmem:[%s8706_s0 + $0xf0] sm:$0xff] %v3280_v6  ;;  %3330 = vst [vmem:[%s8706_s0 + $0x100] sm:$0xff] %v3282_v7  ;;  %v3281_v12 = vadd.f32 %v3126_v8, %v2863_v4  ;;  %v3276_v13 = vadd.f32 %v3219_v9, %v2858_v5 }
 0x526   : > { %v3128_v14 = vpop.f32.mrf.mxu1  ;;  %v7433_v15 = vpop.f32.mrf.mxu0 }
 0x527   : > { %3329 = vst [vmem:[%s8706_s0 + $0xf8] sm:$0xff] %v3281_v12  ;;  %3324 = vst [vmem:[%s8706_s0 + $0xd0] sm:$0xff] %v3276_v13  ;;  %v3283_v18 = vadd.f32 %v3128_v14, %v2865_v10  ;;  %v3285_v19 = vadd.f32 %v7433_v15, %v2867_v11 }
 0x528   : > { %v3130_v20 = vpop.f32.mrf.mxu1  ;;  %v3222_v21 = vpop.f32.mrf.mxu0 }
 0x529   : > { %3331 = vst [vmem:[%s8706_s0 + $0x108] sm:$0xff] %v3283_v18  ;;  %3333 = vst [vmem:[%s8706_s0 + $0x118] sm:$0xff] %v3285_v19  ;;  %v3284_v23 = vadd.f32 %v3130_v20, %v2866_v16  ;;  %v3279_v24 = vadd.f32 %v3222_v21, %v2861_v17 }
 0x52a   : > { %v3134_v26 = vpop.f32.mrf.mxu1 }
 0x52b   : > { %3332 = vst [vmem:[%s8706_s0 + $0x110] sm:$0xff] %v3284_v23  ;;  %3327 = vst [vmem:[%s8706_s0 + $0xe8] sm:$0xff] %v3279_v24  ;;  %v3286_v28 = vadd.f32 %v3134_v26, %v2868_v22 }
 0x52c   : > { %v3136_v29 = vpop.f32.mrf.mxu1 }
 0x52d   : > { %3334 = vst [vmem:[%s8706_s0 + $0x120] sm:$0xff] %v3286_v28  ;;  %v3287_v31 = vadd.f32 %v3136_v29, %v2869_v27 }
 0x52e   : > { %v3138_v32 = vpop.f32.mrf.mxu1 }
 0x52f   : > { %3335 = vst [vmem:[%s8706_s0 + $0x128] sm:$0xff] %v3287_v31  ;;  %v3289_v34 = vadd.f32 %v3138_v32, %v2871_v30 }
 0x530   : > { %v3140_v35 = vpop.f32.mrf.mxu1 }
 0x531   : > { %3337 = vst [vmem:[%s8706_s0 + $0x138] sm:$0xff] %v3289_v34  ;;  %v3290_v38 = vadd.f32 %v3140_v35, %v2872_v33 }
 0x532   : > { %v3144_v39 = vpop.f32.mrf.mxu1  ;;  %v7436_v41 = vpop.f32.mrf.mxu0 }
 0x533   : > { %3338 = vst [vmem:[%s8706_s0 + $0x140] sm:$0xff] %v3290_v38  ;;  %v3292_v44 = vadd.f32 %v3144_v39, %v2874_v36  ;;  %v3294_v45 = vadd.f32 %v7436_v41, %v2876_v37 }
 0x534   : > { %v3146_v25 = vpop.f32.mrf.mxu1  ;;  %v3235_v46 = vpop.f32.mrf.mxu0 }
 0x535   : > { %3340 = vst [vmem:[%s8706_s0 + $0x150] sm:$0xff] %v3292_v44  ;;  %3342 = vst [vmem:[%s8706_s0 + $0x160] sm:$0xff] %v3294_v45  ;;  %v3293_v49 = vadd.f32 %v3146_v25, %v2875_v42  ;;  %v3288_v50 = vadd.f32 %v3235_v46, %v2870_v43 }
 0x536   : > { %v3148_v51 = vpop.f32.mrf.mxu1  ;;  %v7437_v52 = vpop.f32.mrf.mxu0 }
 0x537   : > { %3341 = vst [vmem:[%s8706_s0 + $0x158] sm:$0xff] %v3293_v49  ;;  %3336 = vst [vmem:[%s8706_s0 + $0x130] sm:$0xff] %v3288_v50  ;;  %v3295_v55 = vadd.f32 %v3148_v51, %v2877_v47  ;;  %v3297_v56 = vadd.f32 %v7437_v52, %v2879_v48 }
 0x538   : > { %v3150_v57 = vpop.f32.mrf.mxu1  ;;  %v3238_v58 = vpop.f32.mrf.mxu0 }
 0x539   : > { %3343 = vst [vmem:[%s8706_s0 + $0x168] sm:$0xff] %v3295_v55  ;;  %3345 = vst [vmem:[%s8706_s0 + $0x178] sm:$0xff] %v3297_v56  ;;  %v3296_v59 = vadd.f32 %v3150_v57, %v2878_v53  ;;  %v3291_v60 = vadd.f32 %v3238_v58, %v2873_v54 }
 0x53b   : > { %3344 = vst [vmem:[%s8706_s0 + $0x170] sm:$0xff] %v3296_v59  ;;  %3339 = vst [vmem:[%s8706_s0 + $0x148] sm:$0xff] %v3291_v60 }
 0x53c PF: > { %p6246_p6 = scmp.ne.s32.totalorder %s8197_s22, 3 }
 0x53d   : > { %s3350_s21 = sshra.s32 (!%p6246_p6), %s8304_s18, 3 }
 0x53e   : > { %3349 = sbr.rel (%p6246_p6) target bundleno = 1606 (0x646), region = 60  ;;  %s6281_s11 = sshll.u32 (!%p6246_p6), %s3350_s21, 2 }
 0x53f   : > { %s6498_s9 = smul.u32 (!%p6246_p6), 24, %s3350_s21  ;;  %s8865_s14 = scalar_lea.vmem (!%p6246_p6), [#allocation4], %s6281_s11 }
 0x541   : > { %s8812_s13 = scalar_lea.vmem (!%p6246_p6), [#allocation6], %s6498_s9 }
 0x543   : > { %v7875_v61 = vld [vmem:[%s8327_s19 + $0x38] sm:$0xff]   ;;  %v7876_v62 = vld [vmem:[%s8327_s19 + $0x30] sm:$0xff]   ;;  %v7877_v63 = vld [vmem:[%s8327_s19 + $0x28] sm:$0xff]  }
 0x544   : > { %7438 = vmatprep.subr.bf16.mxu0 %v7875_v61  ;;  %7598 = vmatprep.subr.bf16.mxu1 %v7875_v61  ;;  %v7878_v0 = vld [vmem:[%s8327_s19 + $0x20] sm:$0xff]   ;;  %v3355_v1 = vld [vmem:[%s8812_s13 + $0x8] sm:$0xff]  ;;  %v3357_v11 = vld [vmem:[%s8812_s13 + $0x38] sm:$0xff] }
 0x545   : > { %7439 = vmatpush3.bf16.msra.mxu0 %v7875_v61  ;;  %7606 = vmatpush3.bf16.msra.mxu1 %v7875_v61  ;;  %v3356_v2 = vld [vmem:[%s8812_s13 + $0x20] sm:$0xff]  ;;  %v3363_v5 = vld [vmem:[%s8812_s13 + $0xc8] sm:$0xff]  ;;  %v3358_v12 = vld [vmem:[%s8812_s13 + $0x50] sm:$0xff] }
 0x546   : > { %7440 = vmatprep.subr.bf16.mxu0 %v7876_v62  ;;  %7599 = vmatprep.subr.bf16.mxu1 %v7876_v62  ;;  %v8819_v40 = vld [vmem:[%s9197_s5 + $0x1] ss:$0 sm:$0xff]  ;;  %v7879_v13 = vld [vmem:[%s8327_s19 + $0x18] sm:$0xff]   ;;  %v3366_v19 = vld [vmem:[%s8812_s13 + $0x110] sm:$0xff] }
 0x547   : > { %v3378_v3 = vadd.f32 %v8819_v40, %v3355_v1  ;;  %v3379_v4 = vadd.f32 %v8819_v40, %v3356_v2  ;;  %v3364_v6 = vld [vmem:[%s8812_s13 + $0xe0] sm:$0xff]  ;;  %v3386_v7 = vadd.f32 %v8819_v40, %v3363_v5  ;;  %v3380_v15 = vadd.f32 %v8819_v40, %v3357_v11  ;;  %v3365_v17 = vld [vmem:[%s8812_s13 + $0xf8] sm:$0xff]  ;;  %v3359_v24 = vld [vmem:[%s8812_s13 + $0x68] sm:$0xff] }
 0x548   : > { %v3387_v10 = vadd.f32 %v8819_v40, %v3364_v6  ;;  %v3381_v16 = vadd.f32 %v8819_v40, %v3358_v12  ;;  %v3388_v20 = vadd.f32 %v8819_v40, %v3365_v17  ;;  %v3389_v23 = vadd.f32 %v8819_v40, %v3366_v19  ;;  %v3360_v26 = vld [vmem:[%s8812_s13 + $0x80] sm:$0xff]  ;;  %v3367_v30 = vld [vmem:[%s8812_s13 + $0x128] sm:$0xff]  ;;  %v7880_v31 = vld [vmem:[%s8327_s19 + $0x10] sm:$0xff]  }
 0x549   : > { %7441 = vmatpush3.bf16.msra.mxu0 %v7876_v62  ;;  %7607 = vmatpush3.bf16.msra.mxu1 %v7876_v62  ;;  %v6249_v8 = vmul.f32 -1.442695, %v3378_v3  ;;  %v6250_v9 = vmul.f32 -1.442695, %v3379_v4  ;;  %v6257_v14 = vmul.f32 -1.442695, %v3386_v7  ;;  %v3382_v28 = vadd.f32 %v8819_v40, %v3359_v24 }
 0x54a   : > { %7442 = vmatprep.subr.bf16.mxu0 %v7877_v63  ;;  %7600 = vmatprep.subr.bf16.mxu1 %v7877_v63  ;;  %v6258_v18 = vmul.f32 -1.442695, %v3387_v10  ;;  %v6251_v21 = vmul.f32 -1.442695, %v3380_v15  ;;  %v6252_v22 = vmul.f32 -1.442695, %v3381_v16  ;;  %v3383_v29 = vadd.f32 %v8819_v40, %v3360_v26 }
 0x54b   : > { %7883 = vpow2.f32 %v6249_v8  ;;  %v6259_v27 = vmul.f32 -1.442695, %v3388_v20  ;;  %v6260_v32 = vmul.f32 -1.442695, %v3389_v23  ;;  %v3368_v33 = vld [vmem:[%s8812_s13 + $0x140] sm:$0xff]  ;;  %v3390_v34 = vadd.f32 %v8819_v40, %v3367_v30  ;;  %v3361_v37 = vld [vmem:[%s8812_s13 + $0x98] sm:$0xff] }
 0x54c   : > { %7885 = vpow2.f32 %v6250_v9  ;;  %v6253_v35 = vmul.f32 -1.442695, %v3382_v28  ;;  %v3391_v36 = vadd.f32 %v8819_v40, %v3368_v33  ;;  %v3362_v38 = vld [vmem:[%s8812_s13 + $0xb0] sm:$0xff]  ;;  %v6254_v39 = vmul.f32 -1.442695, %v3383_v29  ;;  %v3369_v43 = vld [vmem:[%s8812_s13 + $0x158] sm:$0xff] }
 0x54d   : > { %7443 = vmatpush3.bf16.msra.mxu0 %v7877_v63  ;;  %7608 = vmatpush3.bf16.msra.mxu1 %v7877_v63  ;;  %7887 = vpow2.f32 %v6257_v14  ;;  %v3384_v41 = vadd.f32 %v8819_v40, %v3361_v37  ;;  %v3385_v42 = vadd.f32 %v8819_v40, %v3362_v38  ;;  %v6261_v44 = vmul.f32 -1.442695, %v3390_v34  ;;  %v3370_v45 = vld [vmem:[%s8812_s13 + $0x170] sm:$0xff]  ;;  %v7881_v46 = vld [vmem:[%s8327_s19 + $0x8] sm:$0xff]   ;;  %v7882_v52 = vld [vmem:[%s8327_s19] sm:$0xff]  }
 0x54e   : > { %7444 = vmatprep.subr.bf16.mxu0 %v7878_v0  ;;  %7601 = vmatprep.subr.bf16.mxu1 %v7878_v0  ;;  %7889 = vpow2.f32 %v6258_v18  ;;  %v3392_v25 = vadd.f32 %v8819_v40, %v3369_v43  ;;  %v6262_v47 = vmul.f32 -1.442695, %v3391_v36  ;;  %v3393_v48 = vadd.f32 %v8819_v40, %v3370_v45  ;;  %v3490_v17 = vld [vmem:[%s8314_s7] sm:$0xff]  ;;  %v3491_v20 = vld [vmem:[%s8314_s7 + $0x8] sm:$0xff]  ;;  %v3493_v34 = vld [vmem:[%s8314_s7 + $0x18] sm:$0xff] }
 0x54f   : > { %7891 = vpow2.f32 %v6251_v21  ;;  %v6255_v49 = vmul.f32 -1.442695, %v3384_v41  ;;  %v6256_v50 = vmul.f32 -1.442695, %v3385_v42  ;;  %v3498_v23 = vld [vmem:[%s8314_s7 + $0x40] sm:$0xff]  ;;  %v3499_v28 = vld [vmem:[%s8314_s7 + $0x48] sm:$0xff] }
 0x550   : > { %7893 = vpow2.f32 %v6252_v22  ;;  %v6263_v51 = vmul.f32 -1.442695, %v3392_v25  ;;  %v6264_v53 = vmul.f32 -1.442695, %v3393_v48  ;;  %v3500_v38 = vld [vmem:[%s8314_s7 + $0x50] sm:$0xff]  ;;  %v3501_v42 = vld [vmem:[%s8314_s7 + $0x58] sm:$0xff] }
 0x551   : > { %7445 = vmatpush3.bf16.msra.mxu0 %v7878_v0  ;;  %7609 = vmatpush3.bf16.msra.mxu1 %v7878_v0  ;;  %7895 = vpow2.f32 %v6259_v27  ;;  %v3494_v25 = vld [vmem:[%s8314_s7 + $0x20] sm:$0xff]  ;;  %v3495_v48 = vld [vmem:[%s8314_s7 + $0x28] sm:$0xff] }
 0x552   : > { %7446 = vmatprep.subr.bf16.mxu0 %v7879_v13  ;;  %7602 = vmatprep.subr.bf16.mxu1 %v7879_v13  ;;  %7897 = vpow2.f32 %v6260_v32 }
 0x553   : > { %7899 = vpow2.f32 %v6253_v35 }
 0x554   : > { %7901 = vpow2.f32 %v6254_v39 }
 0x555   : > { %7447 = vmatpush3.bf16.msra.mxu0 %v7879_v13  ;;  %7610 = vmatpush3.bf16.msra.mxu1 %v7879_v13  ;;  %7903 = vpow2.f32 %v6261_v44 }
 0x556   : > { %7448 = vmatprep.subr.bf16.mxu0 %v7880_v31  ;;  %7603 = vmatprep.subr.bf16.mxu1 %v7880_v31  ;;  %7905 = vpow2.f32 %v6262_v47 }
 0x557   : > { %7907 = vpow2.f32 %v6255_v49 }
 0x558   : > { %v7884_v54 = vpop.eup %7883  ;;  %7909 = vpow2.f32 %v6256_v50 }
 0x559   : > { %7449 = vmatpush3.bf16.msra.mxu0 %v7880_v31  ;;  %7611 = vmatpush3.bf16.msra.mxu1 %v7880_v31  ;;  %v7886_v55 = vpop.eup %7885  ;;  %v3442_v56 = vadd.f32 1.0, %v7884_v54  ;;  %7911 = vpow2.f32 %v6263_v51  ;;  %v3492_v31 = vld [vmem:[%s8314_s7 + $0x10] sm:$0xff] }
 0x55a   : > { %7450 = vmatprep.subr.bf16.mxu0 %v7881_v46  ;;  %7604 = vmatprep.subr.bf16.mxu1 %v7881_v46  ;;  %v7888_v57 = vpop.eup %7887  ;;  %v3443_v58 = vadd.f32 1.0, %v7886_v55  ;;  %7913 = vpow2.f32 %v6264_v53  ;;  %v3503_v55 = vld [vmem:[%s8314_s7 + $0x68] sm:$0xff] }
 0x55b   : > { %v7890_v59 = vpop.eup %7889  ;;  %7915 = vrcp.f32 %v3442_v56  ;;  %v3450_v60 = vadd.f32 1.0, %v7888_v57 }
 0x55c   : > { %v7892_v61 = vpop.eup %7891  ;;  %7917 = vrcp.f32 %v3443_v58  ;;  %v3451_v62 = vadd.f32 1.0, %v7890_v59  ;;  %v3496_v59 = vld [vmem:[%s8314_s7 + $0x30] sm:$0xff] }
 0x55d   : > { %7451 = vmatpush3.bf16.msra.mxu0 %v7881_v46  ;;  %7612 = vmatpush3.bf16.msra.mxu1 %v7881_v46  ;;  %v7894_v63 = vpop.eup %7893  ;;  %7919 = vrcp.f32 %v3450_v60  ;;  %v3444_v0 = vadd.f32 1.0, %v7892_v61 }
 0x55e   : > { %7452 = vmatprep.subr.bf16.mxu0 %v7882_v52  ;;  %7605 = vmatprep.subr.bf16.mxu1 %v7882_v52  ;;  %v7896_v1 = vpop.eup %7895  ;;  %7921 = vrcp.f32 %v3451_v62  ;;  %v3445_v2 = vadd.f32 1.0, %v7894_v63  ;;  %v3497_v62 = vld [vmem:[%s8314_s7 + $0x38] sm:$0xff] }
 0x55f   : > { %v7898_v40 = vpop.eup %7897  ;;  %7923 = vrcp.f32 %v3444_v0  ;;  %v3452_v3 = vadd.f32 1.0, %v7896_v1 }
 0x560   : > { %v7900_v4 = vpop.eup %7899  ;;  %7925 = vrcp.f32 %v3445_v2  ;;  %v3453_v5 = vadd.f32 1.0, %v7898_v40  ;;  %v3504_v2 = vld [vmem:[%s8314_s7 + $0x70] sm:$0xff] }
 0x561   : > { %7453 = vmatpush3.bf16.msra.mxu0 %v7882_v52  ;;  %7613 = vmatpush3.bf16.msra.mxu1 %v7882_v52  ;;  %v7902_v6 = vpop.eup %7901  ;;  %7927 = vrcp.f32 %v3452_v3  ;;  %v3446_v7 = vadd.f32 1.0, %v7900_v4  ;;  %v3502_v52 = vld [vmem:[%s8314_s7 + $0x60] sm:$0xff]  ;;  %v3505_v4 = vld [vmem:[%s8314_s7 + $0x78] sm:$0xff] }
 0x562   : > { %v7904_v8 = vpop.eup %7903  ;;  %7929 = vrcp.f32 %v3453_v5  ;;  %v3447_v9 = vadd.f32 1.0, %v7902_v6 }
 0x563   : > { %v7906_v10 = vpop.eup %7905  ;;  %7931 = vrcp.f32 %v3446_v7  ;;  %v3454_v11 = vadd.f32 1.0, %v7904_v8 }
 0x564   : > { %v7908_v12 = vpop.eup %7907  ;;  %7933 = vrcp.f32 %v3447_v9  ;;  %v3455_v13 = vadd.f32 1.0, %v7906_v10 }
 0x565   : > { %v7910_v14 = vpop.eup %7909  ;;  %7935 = vrcp.f32 %v3454_v11  ;;  %v3448_v15 = vadd.f32 1.0, %v7908_v12 }
 0x566   : > { %v7912_v16 = vpop.eup %7911  ;;  %7937 = vrcp.f32 %v3455_v13  ;;  %v3449_v18 = vadd.f32 1.0, %v7910_v14  ;;  %v3606_v13 = vld [vmem:[%s8812_s13 + $0x40] sm:$0xff] }
 0x567   : > { %v7914_v19 = vpop.eup %7913  ;;  %7939 = vrcp.f32 %v3448_v15  ;;  %v3456_v21 = vadd.f32 1.0, %v7912_v16  ;;  %v3614_v15 = vld [vmem:[%s8812_s13 + $0x100] sm:$0xff]  ;;  %v3604_v16 = vld [vmem:[%s8812_s13 + $0x10] sm:$0xff] }
 0x568   : > { %v7916_v22 = vpop.eup %7915  ;;  %7941 = vrcp.f32 %v3449_v18  ;;  %v3457_v24 = vadd.f32 1.0, %v7914_v19 }
 0x569   : > { %v7918_v26 = vpop.eup %7917  ;;  %v3506_v27 = vmul.f32 %v7916_v22, %v3490_v17  ;;  %7943 = vrcp.f32 %v3456_v21  ;;  %v3607_v21 = vld [vmem:[%s8812_s13 + $0x58] sm:$0xff] }
 0x56a   : > { %v7920_v29 = vpop.eup %7919  ;;  %v3507_v30 = vmul.f32 %v7918_v26, %v3491_v20  ;;  %7945 = vrcp.f32 %v3457_v24  ;;  %v3612_v20 = vld [vmem:[%s8812_s13 + $0xd0] sm:$0xff] }
 0x56b   : > { %v7922_v32 = vpop.eup %7921  ;;  %v3514_v33 = vmul.f32 %v7920_v29, %v3498_v23 }
 0x56c   : > { %v7924_v35 = vpop.eup %7923  ;;  %v3522_v36 = vpack.c.bf16 %v3507_v30, %v3506_v27  ;;  %v3515_v37 = vmul.f32 %v7922_v32, %v3499_v28  ;;  %v3615_v27 = vld [vmem:[%s8812_s13 + $0x118] sm:$0xff]  ;;  %v3605_v28 = vld [vmem:[%s8812_s13 + $0x28] sm:$0xff] }
 0x56d   : > { %v7926_v39 = vpop.eup %7925  ;;  %v3508_v41 = vmul.f32 %v7924_v35, %v3492_v31 }
 0x56e   : > { %v7928_v43 = vpop.eup %7927  ;;  %6665 = vst [vmem:[%s8865_s14] sm:$0xff] %v3522_v36   ;;  %7454 = vmatprep.mubr.bf16.mxu0 %v3522_v36  ;;  %v3526_v44 = vpack.c.bf16 %v3515_v37, %v3514_v33  ;;  %v3509_v45 = vmul.f32 %v7926_v39, %v3493_v34  ;;  %v3613_v33 = vld [vmem:[%s8812_s13 + $0xe8] sm:$0xff]  ;;  %v3610_v34 = vld [vmem:[%s8812_s13 + $0xa0] sm:$0xff] }
 0x56f   : > { %v7930_v46 = vpop.eup %7929  ;;  %v3516_v47 = vmul.f32 %v7928_v43, %v3500_v38  ;;  %v3618_v39 = vld [vmem:[%s8812_s13 + $0x160] sm:$0xff] }
 0x570   : > { %v7932_v49 = vpop.eup %7931  ;;  %6837 = vst [vmem:[%s8865_s14 + $0x20] sm:$0xff] %v3526_v44   ;;  %7462 = vmatprep.mubr.bf16.mxu1 %v3526_v44  ;;  %v3523_v50 = vpack.c.bf16 %v3509_v45, %v3508_v41  ;;  %v3517_v51 = vmul.f32 %v7930_v46, %v3501_v42  ;;  %v3608_v41 = vld [vmem:[%s8812_s13 + $0x70] sm:$0xff]  ;;  %v3611_v46 = vld [vmem:[%s8812_s13 + $0xb8] sm:$0xff] }
 0x571   : > { %v7934_v53 = vpop.eup %7933  ;;  %v3510_v54 = vmul.f32 %v7932_v49, %v3494_v25  ;;  %v3616_v25 = vld [vmem:[%s8812_s13 + $0x130] sm:$0xff] }
 0x572   : > { %v7936_v56 = vpop.eup %7935  ;;  %6834 = vst [vmem:[%s8865_s14 + $0x8] sm:$0xff] %v3523_v50   ;;  %7455 = vmatmul.mubr.bf16.vlgmr.msra.gmra.mxu0 %v3523_v50  ;;  %v3527_v57 = vpack.c.bf16 %v3517_v51, %v3516_v47  ;;  %v3511_v58 = vmul.f32 %v7934_v53, %v3495_v48  ;;  %v3619_v51 = vld [vmem:[%s8812_s13 + $0x178] sm:$0xff] }
 0x573   : > { %v7938_v60 = vpop.eup %7937  ;;  %v3518_v61 = vmul.f32 %v7936_v56, %v3502_v52  ;;  %v3609_v52 = vld [vmem:[%s8812_s13 + $0x88] sm:$0xff] }
 0x574   : > { %v7940_v63 = vpop.eup %7939  ;;  %6838 = vst [vmem:[%s8865_s14 + $0x28] sm:$0xff] %v3527_v57   ;;  %7463 = vmatmul.mubr.bf16.vlgmr.msra.gmra.mxu1 %v3527_v57  ;;  %v3524_v0 = vpack.c.bf16 %v3511_v58, %v3510_v54  ;;  %v3519_v1 = vmul.f32 %v7938_v60, %v3503_v55  ;;  %v3617_v57 = vld [vmem:[%s8812_s13 + $0x148] sm:$0xff] }
 0x575   : > { %v7942_v40 = vpop.eup %7941  ;;  %v3512_v3 = vmul.f32 %v7940_v63, %v3496_v59 }
 0x576   : > { %v7944_v5 = vpop.eup %7943  ;;  %6835 = vst [vmem:[%s8865_s14 + $0x10] sm:$0xff] %v3524_v0   ;;  %7458 = vmatprep.mubr.bf16.mxu0 %v3524_v0  ;;  %v3528_v6 = vpack.c.bf16 %v3519_v1, %v3518_v61  ;;  %v3513_v7 = vmul.f32 %v7942_v40, %v3497_v62 }
 0x577   : > { %v7946_v8 = vpop.eup %7945  ;;  %v3520_v9 = vmul.f32 %v7944_v5, %v3504_v2 }
 0x578   : > { %6839 = vst [vmem:[%s8865_s14 + $0x30] sm:$0xff] %v3528_v6   ;;  %7466 = vmatprep.mubr.bf16.mxu1 %v3528_v6  ;;  %v3525_v10 = vpack.c.bf16 %v3513_v7, %v3512_v3  ;;  %v3521_v11 = vmul.f32 %v7946_v8, %v3505_v4 }
 0x57a   : > { %6836 = vst [vmem:[%s8865_s14 + $0x18] sm:$0xff] %v3525_v10   ;;  %7459 = vmatmul.mubr.bf16.gmra.mxu0 %v3525_v10  ;;  %v3529_v12 = vpack.c.bf16 %v3521_v11, %v3520_v9 }
 0x57c   : > { %6840 = vst [vmem:[%s8865_s14 + $0x38] sm:$0xff] %v3529_v12   ;;  %7467 = vmatmul.mubr.bf16.gmra.mxu1 %v3529_v12 }
 0x632   : > { %v7456_v14 = vpop.f32.mrf.mxu0 }
 0x633   : > { %v3783_v17 = vadd.f32 %v7456_v14, %v3606_v13 }
 0x634   : > { %v7464_v18 = vpop.f32.mrf.mxu1  ;;  %v3718_v19 = vpop.f32.mrf.mxu0 }
 0x635   : > { %3799 = vst [vmem:[%s8812_s13 + $0x40] sm:$0xff] %v3783_v17  ;;  %v3791_v22 = vadd.f32 %v7464_v18, %v3614_v15  ;;  %v3781_v23 = vadd.f32 %v3718_v19, %v3604_v16 }
 0x636   : > { %v3750_v24 = vpop.f32.mrf.mxu1  ;;  %v7457_v26 = vpop.f32.mrf.mxu0 }
 0x637   : > { %3807 = vst [vmem:[%s8812_s13 + $0x100] sm:$0xff] %v3791_v22  ;;  %3797 = vst [vmem:[%s8812_s13 + $0x10] sm:$0xff] %v3781_v23  ;;  %v3789_v29 = vadd.f32 %v3750_v24, %v3612_v20  ;;  %v3784_v30 = vadd.f32 %v7457_v26, %v3607_v21 }
 0x638   : > { %v7465_v31 = vpop.f32.mrf.mxu1  ;;  %v3721_v32 = vpop.f32.mrf.mxu0 }
 0x639   : > { %3805 = vst [vmem:[%s8812_s13 + $0xd0] sm:$0xff] %v3789_v29  ;;  %3800 = vst [vmem:[%s8812_s13 + $0x58] sm:$0xff] %v3784_v30  ;;  %v3792_v35 = vadd.f32 %v7465_v31, %v3615_v27  ;;  %v3782_v36 = vadd.f32 %v3721_v32, %v3605_v28 }
 0x63a   : > { %v3753_v37 = vpop.f32.mrf.mxu1  ;;  %v7460_v38 = vpop.f32.mrf.mxu0 }
 0x63b   : > { %3808 = vst [vmem:[%s8812_s13 + $0x118] sm:$0xff] %v3792_v35  ;;  %3798 = vst [vmem:[%s8812_s13 + $0x28] sm:$0xff] %v3782_v36  ;;  %v3790_v42 = vadd.f32 %v3753_v37, %v3613_v33  ;;  %v3787_v43 = vadd.f32 %v7460_v38, %v3610_v34 }
 0x63c   : > { %v7468_v44 = vpop.f32.mrf.mxu1  ;;  %v3734_v45 = vpop.f32.mrf.mxu0 }
 0x63d   : > { %3806 = vst [vmem:[%s8812_s13 + $0xe8] sm:$0xff] %v3790_v42  ;;  %3803 = vst [vmem:[%s8812_s13 + $0xa0] sm:$0xff] %v3787_v43  ;;  %v3795_v47 = vadd.f32 %v7468_v44, %v3618_v39  ;;  %v3785_v48 = vadd.f32 %v3734_v45, %v3608_v41 }
 0x63e   : > { %v3766_v49 = vpop.f32.mrf.mxu1  ;;  %v7461_v50 = vpop.f32.mrf.mxu0 }
 0x63f   : > { %3811 = vst [vmem:[%s8812_s13 + $0x160] sm:$0xff] %v3795_v47  ;;  %3801 = vst [vmem:[%s8812_s13 + $0x70] sm:$0xff] %v3785_v48  ;;  %v3793_v53 = vadd.f32 %v3766_v49, %v3616_v25  ;;  %v3788_v54 = vadd.f32 %v7461_v50, %v3611_v46 }
 0x640   : > { %v7469_v55 = vpop.f32.mrf.mxu1  ;;  %v3737_v56 = vpop.f32.mrf.mxu0 }
 0x641   : > { %3809 = vst [vmem:[%s8812_s13 + $0x130] sm:$0xff] %v3793_v53  ;;  %3804 = vst [vmem:[%s8812_s13 + $0xb8] sm:$0xff] %v3788_v54  ;;  %v3796_v58 = vadd.f32 %v7469_v55, %v3619_v51  ;;  %v3786_v59 = vadd.f32 %v3737_v56, %v3609_v52 }
 0x642   : > { %v3769_v60 = vpop.f32.mrf.mxu1 }
 0x643   : > { %3812 = vst [vmem:[%s8812_s13 + $0x178] sm:$0xff] %v3796_v58  ;;  %3802 = vst [vmem:[%s8812_s13 + $0x88] sm:$0xff] %v3786_v59  ;;  %v3794_v61 = vadd.f32 %v3769_v60, %v3617_v57 }
 0x645   : > { %3810 = vst [vmem:[%s8812_s13 + $0x148] sm:$0xff] %v3794_v61 }
 0x646 PF: > { %p6290_p7 = scmp.ne.s32.totalorder %s8197_s22, 4 }
 0x647   : > { %s4427_s15 = sshra.s32 (!%p6290_p7), %s8304_s18, 3 }
 0x648   : > { %3816 = sbr.rel (%p6290_p7) target bundleno = 2109 (0x83d), region = 64  ;;  %s6355_s16 = sshll.u32 (!%p6290_p7), %s4427_s15, 2 }
 0x649   : > { %s8951_s28 = scalar_lea.vmem (!%p6290_p7), [#allocation5], %s6355_s16  ;;  %s6531_s20 = smul.u32 (!%p6290_p7), 24, %s4427_s15 }
 0x64b   : > { %s8963_s29 = scalar_lea.vmem (!%p6290_p7), [#allocation6], %s6531_s20 }
 0x64d   : > { %v7947_v62 = vld [vmem:[#allocation4 + $0x78] sm:$0xff]   ;;  %v7950_v1 = vld [vmem:[#allocation4 + $0x70] sm:$0xff]   ;;  %v7953_v3 = vld [vmem:[#allocation4 + $0x68] sm:$0xff]  }
 0x64e   : > { %v7948_v63 = vld [vmem:[#allocation4 + $0x38] sm:$0xff]   ;;  %7086 = vmatprep.subr.bf16.mxu0 %v7947_v62  ;;  %v7951_v2 = vld [vmem:[#allocation4 + $0x30] sm:$0xff]   ;;  %v7954_v4 = vld [vmem:[#allocation4 + $0x28] sm:$0xff]  }
 0x64f   : > { %v7949_v0 = vld [vmem:[#allocation4 + $0xb8] sm:$0xff]   ;;  %7087 = vmatpush3.bf16.msra.mxu0 %v7948_v63  ;;  %v7952_v40 = vld [vmem:[#allocation4 + $0xb0] sm:$0xff]   ;;  %v7955_v5 = vld [vmem:[#allocation4 + $0xa8] sm:$0xff]  }
 0x650   : > { %7470 = vmatprep.subr.bf16.mxu1 %v7949_v0  ;;  %7088 = vmatprep.subr.bf16.mxu0 %v7950_v1  ;;  %v7956_v6 = vld [vmem:[#allocation4 + $0x60] sm:$0xff]   ;;  %v7959_v9 = vld [vmem:[#allocation4 + $0x58] sm:$0xff]   ;;  %v7962_v12 = vld [vmem:[#allocation4 + $0x50] sm:$0xff]  }
 0x651   : > { %7471 = vmatpush3.bf16.msra.mxu1 %v7949_v0  ;;  %v7957_v7 = vld [vmem:[#allocation4 + $0x20] sm:$0xff]   ;;  %v7961_v10 = vld [vmem:[#allocation4 + $0x98] sm:$0xff]   ;;  %v7964_v13 = vld [vmem:[#allocation4 + $0x90] sm:$0xff]  }
 0x652   : > { %7472 = vmatprep.subr.bf16.mxu1 %v7952_v40  ;;  %v7958_v8 = vld [vmem:[#allocation4 + $0xa0] sm:$0xff]   ;;  %v7960_v11 = vld [vmem:[#allocation4 + $0x18] sm:$0xff]   ;;  %v7963_v14 = vld [vmem:[#allocation4 + $0x10] sm:$0xff]  }
 0x653   : > { %7089 = vmatpush3.bf16.msra.mxu0 %v7951_v2  ;;  %v7965_v15 = vld [vmem:[#allocation4 + $0x48] sm:$0xff]   ;;  %v7968_v18 = vld [vmem:[#allocation4 + $0x40] sm:$0xff]   ;;  %v7983_v30 = vld [vmem:[%s8301_s17 + $0x50] ss:$12 sps:$4 sm:$0xff]  }
 0x654   : > { %7090 = vmatprep.subr.bf16.mxu0 %v7953_v3  ;;  %v7966_v16 = vld [vmem:[#allocation4 + $0x8] sm:$0xff]   ;;  %v7970_v19 = vld [vmem:[#allocation4 + $0x80] sm:$0xff]   ;;  %v8003_v32 = vld [vmem:[%s8327_s19 + $0x38] sm:$0xff]  }
 0x655   : > { %7473 = vmatpush3.bf16.msra.mxu1 %v7952_v40  ;;  %v7967_v17 = vld [vmem:[#allocation4 + $0x88] sm:$0xff]   ;;  %v7973_v20 = vld [vmem:[%s8301_s17 + $0x4] ss:$12 sps:$4 sm:$0xff]   ;;  %v7979_v29 = vld [vmem:[%s8301_s17 + $0x34] ss:$12 sps:$4 sm:$0xff]  }
 0x656   : > { %7474 = vmatprep.subr.bf16.mxu1 %v7955_v5  ;;  %v7974_v21 = vld [vmem:[%s8301_s17 + $0x8] ss:$12 sps:$4 sm:$0xff]   ;;  %v7969_v22 = vld [vmem:[#allocation4] sm:$0xff]   ;;  %4201 = vmatprep.mubr.bf16.mxu0 %v7973_v20  ;;  %v7981_v33 = vld [vmem:[%s8301_s17 + $0x30] ss:$12 sps:$4 sm:$0xff]  }
 0x657   : > { %7091 = vmatpush3.bf16.msra.mxu0 %v7954_v4  ;;  %7486 = vmatprep.mubr.bf16.mxu1 %v7974_v21  ;;  %v7971_v23 = vld [vmem:[%s8301_s17] ss:$12 sps:$4 sm:$0xff]   ;;  %v7976_v24 = vld [vmem:[%s8301_s17 + $0x1c] ss:$12 sps:$4 sm:$0xff]   ;;  %v7982_v27 = vld [vmem:[%s8301_s17 + $0x38] ss:$12 sps:$4 sm:$0xff]  }
 0x658   : > { %7092 = vmatprep.subr.bf16.mxu0 %v7956_v6  ;;  %v7975_v26 = vld [vmem:[%s8301_s17 + $0x20] ss:$12 sps:$4 sm:$0xff]   ;;  %v7978_v28 = vld [vmem:[%s8301_s17 + $0x18] ss:$12 sps:$4 sm:$0xff]   ;;  %v7990_v31 = vld [vmem:[%s8301_s17 + $0x68] ss:$12 sps:$4 sm:$0xff]  }
 0x659   : > { %7475 = vmatpush3.bf16.msra.mxu1 %v7955_v5  ;;  %v8004_v34 = vld [vmem:[%s8327_s19 + $0x30] sm:$0xff]   ;;  %v7984_v35 = vld [vmem:[%s8301_s17 + $0x4c] ss:$12 sps:$4 sm:$0xff]   ;;  %v7992_v44 = vld [vmem:[%s8301_s17 + $0x7c] ss:$12 sps:$4 sm:$0xff]  }
 0x65a   : > { %7476 = vmatprep.subr.bf16.mxu1 %v7958_v8  ;;  %v8005_v36 = vld [vmem:[%s8327_s19 + $0x28] sm:$0xff]   ;;  %v7998_v38 = vld [vmem:[%s8301_s17 + $0x98] ss:$12 sps:$4 sm:$0xff]   ;;  %v7999_v42 = vld [vmem:[%s8301_s17 + $0xb0] ss:$12 sps:$4 sm:$0xff]  }
 0x65b   : > { %7093 = vmatpush3.bf16.msra.mxu0 %v7957_v7  ;;  %v7991_v37 = vld [vmem:[%s8301_s17 + $0x80] ss:$12 sps:$4 sm:$0xff]   ;;  %v7986_v39 = vld [vmem:[%s8301_s17 + $0x48] ss:$12 sps:$4 sm:$0xff]   ;;  %v7987_v41 = vld [vmem:[%s8301_s17 + $0x64] ss:$12 sps:$4 sm:$0xff]  }
 0x65c   : > { %7094 = vmatprep.subr.bf16.mxu0 %v7959_v9  ;;  %v7989_v43 = vld [vmem:[%s8301_s17 + $0x60] ss:$12 sps:$4 sm:$0xff]   ;;  %v7994_v45 = vld [vmem:[%s8301_s17 + $0x78] ss:$12 sps:$4 sm:$0xff]   ;;  %v7997_v46 = vld [vmem:[%s8301_s17 + $0x90] ss:$12 sps:$4 sm:$0xff]  }
 0x65d   : > { %7477 = vmatpush3.bf16.msra.mxu1 %v7958_v8  ;;  %v7995_v25 = vld [vmem:[%s8301_s17 + $0x94] ss:$12 sps:$4 sm:$0xff]   ;;  %v8000_v47 = vld [vmem:[%s8301_s17 + $0xac] ss:$12 sps:$4 sm:$0xff]  }
 0x65e   : > { %7478 = vmatprep.subr.bf16.mxu1 %v7961_v10  ;;  %v8002_v48 = vld [vmem:[%s8301_s17 + $0xa8] ss:$12 sps:$4 sm:$0xff]   ;;  %v8006_v49 = vld [vmem:[%s8327_s19 + $0x20] sm:$0xff]   ;;  %v8007_v50 = vld [vmem:[%s8327_s19 + $0x18] sm:$0xff]  }
 0x65f   : > { %7095 = vmatpush3.bf16.msra.mxu0 %v7960_v11  ;;  %v8008_v51 = vld [vmem:[%s8327_s19 + $0x10] sm:$0xff]   ;;  %v8009_v52 = vld [vmem:[%s8327_s19 + $0x8] sm:$0xff]   ;;  %v8010_v53 = vld [vmem:[%s8327_s19] sm:$0xff]  }
 0x660   : > { %7096 = vmatprep.subr.bf16.mxu0 %v7962_v12 }
 0x661   : > { %7479 = vmatpush3.bf16.msra.mxu1 %v7961_v10 }
 0x662   : > { %7480 = vmatprep.subr.bf16.mxu1 %v7964_v13 }
 0x663   : > { %7097 = vmatpush3.bf16.msra.mxu0 %v7963_v14 }
 0x664   : > { %7098 = vmatprep.subr.bf16.mxu0 %v7965_v15 }
 0x665   : > { %7481 = vmatpush3.bf16.msra.mxu1 %v7964_v13 }
 0x666   : > { %7482 = vmatprep.subr.bf16.mxu1 %v7967_v17 }
 0x667   : > { %7099 = vmatpush3.bf16.msra.mxu0 %v7966_v16 }
 0x668   : > { %7100 = vmatprep.subr.bf16.mxu0 %v7968_v18 }
 0x669   : > { %7483 = vmatpush3.bf16.msra.mxu1 %v7967_v17 }
 0x66a   : > { %7484 = vmatprep.subr.bf16.mxu1 %v7970_v19 }
 0x66b   : > { %7101 = vmatpush3.bf16.msra.mxu0 %v7969_v22 }
 0x66d   : > { %7485 = vmatpush3.bf16.msra.mxu1 %v7970_v19 }
 0x66e   : > { %4202 = vmatmul.mubr.bf16.vlgmr.msra.gmra.mxu0 %v7971_v23  ;;  %7502 = vmatprep.subr.bf16.mxu1 %v8003_v32 }
 0x66f   : > { %4209 = vmatprep.mubr.bf16.mxu0 %v7976_v24 }
 0x670   : > { %7487 = vmatmul.mubr.bf16.vlgmr.msra.gmra.mxu1 %v7975_v26 }
 0x671   : > { %7490 = vmatprep.mubr.bf16.mxu1 %v7982_v27  ;;  %7503 = vmatpush3.bf16.msra.mxu1 %v8003_v32 }
 0x672   : > { %7504 = vmatprep.subr.bf16.mxu1 %v8004_v34 }
 0x675   : > { %7505 = vmatpush3.bf16.msra.mxu1 %v8004_v34 }
 0x676   : > { %4210 = vmatmul.mubr.bf16.gmra.mxu0 %v7978_v28  ;;  %7506 = vmatprep.subr.bf16.mxu1 %v8005_v36 }
 0x677   : > { %4217 = vmatprep.mubr.bf16.mxu0 %v7979_v29 }
 0x678   : > { %7491 = vmatmul.mubr.bf16.gmra.mxu1 %v7983_v30 }
 0x679   : > { %7494 = vmatprep.mubr.bf16.mxu1 %v7990_v31  ;;  %7507 = vmatpush3.bf16.msra.mxu1 %v8005_v36 }
 0x67a   : > { %7508 = vmatprep.subr.bf16.mxu1 %v8006_v49 }
 0x67d   : > { %7509 = vmatpush3.bf16.msra.mxu1 %v8006_v49 }
 0x67e   : > { %4218 = vmatmul.mubr.bf16.gmra.mxu0 %v7981_v33  ;;  %7510 = vmatprep.subr.bf16.mxu1 %v8007_v50 }
 0x67f   : > { %4225 = vmatprep.mubr.bf16.mxu0 %v7984_v35 }
 0x680   : > { %7495 = vmatmul.mubr.bf16.gmra.mxu1 %v7991_v37 }
 0x681   : > { %7498 = vmatprep.mubr.bf16.mxu1 %v7998_v38  ;;  %7511 = vmatpush3.bf16.msra.mxu1 %v8007_v50 }
 0x682   : > { %7512 = vmatprep.subr.bf16.mxu1 %v8008_v51 }
 0x685   : > { %7513 = vmatpush3.bf16.msra.mxu1 %v8008_v51 }
 0x686   : > { %4226 = vmatmul.mubr.bf16.gmra.mxu0 %v7986_v39  ;;  %7514 = vmatprep.subr.bf16.mxu1 %v8009_v52 }
 0x687   : > { %4233 = vmatprep.mubr.bf16.mxu0 %v7987_v41 }
 0x688   : > { %7499 = vmatmul.mubr.bf16.gmra.mxu1 %v7999_v42 }
 0x689   : > { %7515 = vmatpush3.bf16.msra.mxu1 %v8009_v52 }
 0x68a   : > { %7516 = vmatprep.subr.bf16.mxu1 %v8010_v53 }
 0x68d   : > { %7517 = vmatpush3.bf16.msra.mxu1 %v8010_v53 }
 0x68e   : > { %4234 = vmatmul.mubr.bf16.gmra.mxu0 %v7989_v43 }
 0x68f   : > { %4241 = vmatprep.mubr.bf16.mxu0 %v7992_v44 }
 0x696   : > { %4242 = vmatmul.mubr.bf16.gmra.mxu0 %v7994_v45 }
 0x697   : > { %4249 = vmatprep.mubr.bf16.mxu0 %v7995_v25 }
 0x69e   : > { %4250 = vmatmul.mubr.bf16.gmra.mxu0 %v7997_v46 }
 0x69f   : > { %4257 = vmatprep.mubr.bf16.mxu0 %v8000_v47 }
 0x6a6   : > { %4258 = vmatmul.mubr.bf16.gmra.mxu0 %v8002_v48 }
 0x72e   : > { %v7102_v54 = vpop.f32.mrf.mxu0 }
 0x730   : > { %v7103_v55 = vpop.f32.mrf.mxu0  ;;  %v7488_v56 = vpop.f32.mrf.mxu1 }
 0x731   : > { %v7104_v59 = vadd.f32 %v7103_v55, %v7102_v54 }
 0x732   : > { %v7105_v57 = vpop.f32.mrf.mxu0  ;;  %v4300_v58 = vpop.f32.mrf.mxu1 }
 0x733   : > { %v4301_v1 = vadd.f32 %v7104_v59, %v4300_v58 }
 0x734   : > { %v7106_v60 = vpop.f32.mrf.mxu0  ;;  %v7489_v61 = vpop.f32.mrf.mxu1 }
 0x735   : > { %v7107_v62 = vadd.f32 %v7106_v60, %v7105_v57 }
 0x736   : > { %v7108_v63 = vpop.f32.mrf.mxu0  ;;  %v4303_v0 = vpop.f32.mrf.mxu1 }
 0x737   : > { %v4304_v2 = vadd.f32 %v7107_v62, %v4303_v0 }
 0x738   : > { %v7109_v40 = vpop.f32.mrf.mxu0  ;;  %v7492_v3 = vpop.f32.mrf.mxu1 }
 0x739   : > { %v4363_v4 = vpack.c.bf16 %v4304_v2, %v4301_v1  ;;  %v7110_v6 = vadd.f32 %v7109_v40, %v7108_v63 }
 0x73a   : > { %v7111_v5 = vpop.f32.mrf.mxu0  ;;  %v4316_v8 = vpop.f32.mrf.mxu1 }
 0x73b   : > { %6705 = vst [vmem:[%s8951_s28] sm:$0xff] %v4363_v4   ;;  %7518 = vmatprep.mubr.bf16.mxu1 %v4363_v4  ;;  %v4309_v11 = vadd.f32 %v7488_v56, %v7110_v6 }
 0x73c   : > { %v7112_v7 = vpop.f32.mrf.mxu0  ;;  %v7493_v14 = vpop.f32.mrf.mxu1 }
 0x73d   : > { %v7113_v9 = vadd.f32 %v7112_v7, %v7111_v5 }
 0x73e   : > { %v7114_v10 = vpop.f32.mrf.mxu0  ;;  %v4319_v19 = vpop.f32.mrf.mxu1 }
 0x73f   : > { %v4312_v12 = vadd.f32 %v7489_v61, %v7113_v9 }
 0x740   : > { %v7115_v13 = vpop.f32.mrf.mxu0  ;;  %v7496_v26 = vpop.f32.mrf.mxu1 }
 0x741   : > { %v4364_v15 = vpack.c.bf16 %v4312_v12, %v4309_v11  ;;  %v7116_v17 = vadd.f32 %v7115_v13, %v7114_v10  ;;  %v4452_v13 = vld [vmem:[%s8963_s29 + $0x40] sm:$0xff] }
 0x742   : > { %v7117_v16 = vpop.f32.mrf.mxu0  ;;  %v4332_v31 = vpop.f32.mrf.mxu1 }
 0x743   : > { %6841 = vst [vmem:[%s8951_s28 + $0x8] sm:$0xff] %v4364_v15   ;;  %7519 = vmatmul.mubr.bf16.vlgmr.msra.gmra.mxu1 %v4364_v15  ;;  %v4317_v22 = vadd.f32 %v7116_v17, %v4316_v8  ;;  %v4450_v15 = vld [vmem:[%s8963_s29 + $0x10] sm:$0xff] }
 0x744   : > { %v7118_v18 = vpop.f32.mrf.mxu0  ;;  %v7497_v37 = vpop.f32.mrf.mxu1 }
 0x745   : > { %v7119_v20 = vadd.f32 %v7118_v18, %v7117_v16  ;;  %v4453_v18 = vld [vmem:[%s8963_s29 + $0x58] sm:$0xff] }
 0x746   : > { %v7120_v21 = vpop.f32.mrf.mxu0  ;;  %v4335_v43 = vpop.f32.mrf.mxu1 }
 0x747   : > { %v4320_v23 = vadd.f32 %v7119_v20, %v4319_v19 }
 0x748   : > { %v7121_v24 = vpop.f32.mrf.mxu0  ;;  %v7500_v48 = vpop.f32.mrf.mxu1 }
 0x749   : > { %v4365_v27 = vpack.c.bf16 %v4320_v23, %v4317_v22  ;;  %v7122_v29 = vadd.f32 %v7121_v24, %v7120_v21  ;;  %v4451_v21 = vld [vmem:[%s8963_s29 + $0x28] sm:$0xff] }
 0x74a   : > { %v7123_v28 = vpop.f32.mrf.mxu0  ;;  %v4348_v53 = vpop.f32.mrf.mxu1 }
 0x74b   : > { %6842 = vst [vmem:[%s8951_s28 + $0x10] sm:$0xff] %v4365_v27   ;;  %7522 = vmatprep.mubr.bf16.mxu1 %v4365_v27  ;;  %v4325_v34 = vadd.f32 %v7492_v3, %v7122_v29 }
 0x74c   : > { %v7124_v30 = vpop.f32.mrf.mxu0  ;;  %v7501_v59 = vpop.f32.mrf.mxu1 }
 0x74d   : > { %v7125_v32 = vadd.f32 %v7124_v30, %v7123_v28  ;;  %v4454_v28 = vld [vmem:[%s8963_s29 + $0x70] sm:$0xff] }
 0x74e   : > { %v7126_v33 = vpop.f32.mrf.mxu0  ;;  %v4351_v0 = vpop.f32.mrf.mxu1 }
 0x74f   : > { %v4328_v35 = vadd.f32 %v7493_v14, %v7125_v32 }
 0x750   : > { %v7127_v36 = vpop.f32.mrf.mxu0 }
 0x751   : > { %v4366_v38 = vpack.c.bf16 %v4328_v35, %v4325_v34  ;;  %v7128_v41 = vadd.f32 %v7127_v36, %v7126_v33  ;;  %v4455_v34 = vld [vmem:[%s8963_s29 + $0x88] sm:$0xff] }
 0x752   : > { %v7129_v39 = vpop.f32.mrf.mxu0 }
 0x753   : > { %6843 = vst [vmem:[%s8951_s28 + $0x18] sm:$0xff] %v4366_v38   ;;  %7523 = vmatmul.mubr.bf16.gmra.mxu1 %v4366_v38  ;;  %v4333_v25 = vadd.f32 %v7128_v41, %v4332_v31  ;;  %v4457_v31 = vld [vmem:[%s8963_s29 + $0xb8] sm:$0xff]  ;;  %v4460_v38 = vld [vmem:[%s8963_s29 + $0x100] sm:$0xff]  ;;  %v4458_v41 = vld [vmem:[%s8963_s29 + $0xd0] sm:$0xff] }
 0x754   : > { %v7130_v42 = vpop.f32.mrf.mxu0 }
 0x755   : > { %v7131_v44 = vadd.f32 %v7130_v42, %v7129_v39 }
 0x756   : > { %v7132_v45 = vpop.f32.mrf.mxu0 }
 0x757   : > { %v4336_v46 = vadd.f32 %v7131_v44, %v4335_v43  ;;  %v4461_v44 = vld [vmem:[%s8963_s29 + $0x118] sm:$0xff] }
 0x758   : > { %v7133_v47 = vpop.f32.mrf.mxu0 }
 0x759   : > { %v4367_v49 = vpack.c.bf16 %v4336_v46, %v4333_v25  ;;  %v7134_v51 = vadd.f32 %v7133_v47, %v7132_v45  ;;  %v4459_v46 = vld [vmem:[%s8963_s29 + $0xe8] sm:$0xff] }
 0x75a   : > { %v7135_v50 = vpop.f32.mrf.mxu0 }
 0x75b   : > { %6844 = vst [vmem:[%s8951_s28 + $0x20] sm:$0xff] %v4367_v49   ;;  %7526 = vmatprep.mubr.bf16.mxu1 %v4367_v49  ;;  %v4341_v56 = vadd.f32 %v7496_v26, %v7134_v51  ;;  %v4456_v26 = vld [vmem:[%s8963_s29 + $0xa0] sm:$0xff] }
 0x75c   : > { %v7136_v52 = vpop.f32.mrf.mxu0 }
 0x75d   : > { %v7137_v54 = vadd.f32 %v7136_v52, %v7135_v50  ;;  %v4464_v50 = vld [vmem:[%s8963_s29 + $0x160] sm:$0xff]  ;;  %v4462_v52 = vld [vmem:[%s8963_s29 + $0x130] sm:$0xff] }
 0x75e   : > { %v7138_v55 = vpop.f32.mrf.mxu0 }
 0x75f   : > { %v4344_v57 = vadd.f32 %v7497_v37, %v7137_v54 }
 0x760   : > { %v7139_v58 = vpop.f32.mrf.mxu0 }
 0x761   : > { %v4368_v60 = vpack.c.bf16 %v4344_v57, %v4341_v56  ;;  %v7140_v62 = vadd.f32 %v7139_v58, %v7138_v55  ;;  %v4465_v55 = vld [vmem:[%s8963_s29 + $0x178] sm:$0xff]  ;;  %v4463_v58 = vld [vmem:[%s8963_s29 + $0x148] sm:$0xff] }
 0x762   : > { %v7141_v61 = vpop.f32.mrf.mxu0 }
 0x763   : > { %6845 = vst [vmem:[%s8951_s28 + $0x28] sm:$0xff] %v4368_v60   ;;  %7527 = vmatmul.mubr.bf16.gmra.mxu1 %v4368_v60  ;;  %v4349_v40 = vadd.f32 %v7140_v62, %v4348_v53 }
 0x764   : > { %v7142_v63 = vpop.f32.mrf.mxu0 }
 0x765   : > { %v7143_v1 = vadd.f32 %v7142_v63, %v7141_v61 }
 0x766   : > { %v7144_v2 = vpop.f32.mrf.mxu0 }
 0x767   : > { %v4352_v3 = vadd.f32 %v7143_v1, %v4351_v0 }
 0x768   : > { %v7145_v4 = vpop.f32.mrf.mxu0 }
 0x769   : > { %v4369_v5 = vpack.c.bf16 %v4352_v3, %v4349_v40  ;;  %v7146_v7 = vadd.f32 %v7145_v4, %v7144_v2 }
 0x76a   : > { %v7147_v6 = vpop.f32.mrf.mxu0 }
 0x76b   : > { %6846 = vst [vmem:[%s8951_s28 + $0x30] sm:$0xff] %v4369_v5   ;;  %7530 = vmatprep.mubr.bf16.mxu1 %v4369_v5  ;;  %v4357_v10 = vadd.f32 %v7500_v48, %v7146_v7 }
 0x76c   : > { %v7148_v8 = vpop.f32.mrf.mxu0 }
 0x76d   : > { %v7149_v9 = vadd.f32 %v7148_v8, %v7147_v6 }
 0x76f   : > { %v4360_v11 = vadd.f32 %v7501_v59, %v7149_v9 }
 0x771   : > { %v4370_v12 = vpack.c.bf16 %v4360_v11, %v4357_v10 }
 0x773   : > { %6847 = vst [vmem:[%s8951_s28 + $0x38] sm:$0xff] %v4370_v12   ;;  %7531 = vmatmul.mubr.bf16.gmra.mxu1 %v4370_v12 }
 0x803   : > { %v7520_v14 = vpop.f32.mrf.mxu1 }
 0x804   : > { %v4629_v16 = vadd.f32 %v7520_v14, %v4452_v13 }
 0x805   : > { %v4564_v17 = vpop.f32.mrf.mxu1 }
 0x806   : > { %4645 = vst [vmem:[%s8963_s29 + $0x40] sm:$0xff] %v4629_v16  ;;  %v4627_v19 = vadd.f32 %v4564_v17, %v4450_v15 }
 0x807   : > { %v7521_v20 = vpop.f32.mrf.mxu1 }
 0x808   : > { %4643 = vst [vmem:[%s8963_s29 + $0x10] sm:$0xff] %v4627_v19  ;;  %v4630_v22 = vadd.f32 %v7521_v20, %v4453_v18 }
 0x809   : > { %v4567_v23 = vpop.f32.mrf.mxu1 }
 0x80a   : > { %4646 = vst [vmem:[%s8963_s29 + $0x58] sm:$0xff] %v4630_v22  ;;  %v4628_v24 = vadd.f32 %v4567_v23, %v4451_v21 }
 0x80c   : > { %4644 = vst [vmem:[%s8963_s29 + $0x28] sm:$0xff] %v4628_v24 }
 0x813   : > { %v7524_v27 = vpop.f32.mrf.mxu1 }
 0x814   : > { %v4633_v29 = vadd.f32 %v7524_v27, %v4456_v26 }
 0x815   : > { %v4580_v30 = vpop.f32.mrf.mxu1 }
 0x816   : > { %4649 = vst [vmem:[%s8963_s29 + $0xa0] sm:$0xff] %v4633_v29  ;;  %v4631_v32 = vadd.f32 %v4580_v30, %v4454_v28 }
 0x817   : > { %v7525_v33 = vpop.f32.mrf.mxu1 }
 0x818   : > { %4647 = vst [vmem:[%s8963_s29 + $0x70] sm:$0xff] %v4631_v32  ;;  %v4634_v35 = vadd.f32 %v7525_v33, %v4457_v31 }
 0x819   : > { %v4583_v36 = vpop.f32.mrf.mxu1 }
 0x81a   : > { %4650 = vst [vmem:[%s8963_s29 + $0xb8] sm:$0xff] %v4634_v35  ;;  %v4632_v37 = vadd.f32 %v4583_v36, %v4455_v34 }
 0x81c   : > { %4648 = vst [vmem:[%s8963_s29 + $0x88] sm:$0xff] %v4632_v37 }
 0x823   : > { %v7528_v39 = vpop.f32.mrf.mxu1 }
 0x824   : > { %v4637_v42 = vadd.f32 %v7528_v39, %v4460_v38 }
 0x825   : > { %v4596_v43 = vpop.f32.mrf.mxu1 }
 0x826   : > { %4653 = vst [vmem:[%s8963_s29 + $0x100] sm:$0xff] %v4637_v42  ;;  %v4635_v45 = vadd.f32 %v4596_v43, %v4458_v41 }
 0x827   : > { %v7529_v25 = vpop.f32.mrf.mxu1 }
 0x828   : > { %4651 = vst [vmem:[%s8963_s29 + $0xd0] sm:$0xff] %v4635_v45  ;;  %v4638_v47 = vadd.f32 %v7529_v25, %v4461_v44 }
 0x829   : > { %v4599_v48 = vpop.f32.mrf.mxu1 }
 0x82a   : > { %4654 = vst [vmem:[%s8963_s29 + $0x118] sm:$0xff] %v4638_v47  ;;  %v4636_v49 = vadd.f32 %v4599_v48, %v4459_v46 }
 0x82c   : > { %4652 = vst [vmem:[%s8963_s29 + $0xe8] sm:$0xff] %v4636_v49 }
 0x833   : > { %v7532_v51 = vpop.f32.mrf.mxu1 }
 0x834   : > { %v4641_v53 = vadd.f32 %v7532_v51, %v4464_v50 }
 0x835   : > { %v4612_v54 = vpop.f32.mrf.mxu1 }
 0x836   : > { %4657 = vst [vmem:[%s8963_s29 + $0x160] sm:$0xff] %v4641_v53  ;;  %v4639_v56 = vadd.f32 %v4612_v54, %v4462_v52 }
 0x837   : > { %v7533_v57 = vpop.f32.mrf.mxu1 }
 0x838   : > { %4655 = vst [vmem:[%s8963_s29 + $0x130] sm:$0xff] %v4639_v56  ;;  %v4642_v59 = vadd.f32 %v7533_v57, %v4465_v55 }
 0x839   : > { %v4615_v60 = vpop.f32.mrf.mxu1 }
 0x83a   : > { %4658 = vst [vmem:[%s8963_s29 + $0x178] sm:$0xff] %v4642_v59  ;;  %v4640_v61 = vadd.f32 %v4615_v60, %v4463_v58 }
 0x83c   : > { %4656 = vst [vmem:[%s8963_s29 + $0x148] sm:$0xff] %v4640_v61 }
 0x83d PF: > { %p6365_p8 = scmp.ne.s32.totalorder %s8197_s22, 5 }
 0x83e   : > { %s5209_s22 = sshra.s32 (!%p6365_p8), %s8304_s18, 3 }
 0x83f   : > { %4662 = sbr.rel (%p6365_p8) target bundleno = 2636 (0xa4c), region = 68 }
 0x844   : > { %v8011_v62 = vld [vmem:[#allocation5 + $0x78] sm:$0xff]   ;;  %v8014_v1 = vld [vmem:[#allocation5 + $0x70] sm:$0xff]   ;;  %v8017_v3 = vld [vmem:[#allocation5 + $0x68] sm:$0xff]  }
 0x845   : > { %v8012_v63 = vld [vmem:[#allocation5 + $0x38] sm:$0xff]   ;;  %7182 = vmatprep.subr.bf16.mxu0 %v8011_v62  ;;  %v8015_v2 = vld [vmem:[#allocation5 + $0x30] sm:$0xff]   ;;  %v8018_v4 = vld [vmem:[#allocation5 + $0x28] sm:$0xff]  }
 0x846   : > { %v8013_v0 = vld [vmem:[#allocation5 + $0xb8] sm:$0xff]   ;;  %7183 = vmatpush3.bf16.msra.mxu0 %v8012_v63  ;;  %v8016_v40 = vld [vmem:[#allocation5 + $0xb0] sm:$0xff]   ;;  %v8019_v5 = vld [vmem:[#allocation5 + $0xa8] sm:$0xff]  }
 0x847   : > { %7534 = vmatprep.subr.bf16.mxu1 %v8013_v0  ;;  %7184 = vmatprep.subr.bf16.mxu0 %v8014_v1  ;;  %v8020_v6 = vld [vmem:[#allocation5 + $0x60] sm:$0xff]   ;;  %v8023_v9 = vld [vmem:[#allocation5 + $0x58] sm:$0xff]   ;;  %v8026_v12 = vld [vmem:[#allocation5 + $0x50] sm:$0xff]  }
 0x848   : > { %7535 = vmatpush3.bf16.msra.mxu1 %v8013_v0  ;;  %v8021_v7 = vld [vmem:[#allocation5 + $0x20] sm:$0xff]   ;;  %v8025_v10 = vld [vmem:[#allocation5 + $0x98] sm:$0xff]   ;;  %v8028_v13 = vld [vmem:[#allocation5 + $0x90] sm:$0xff]  }
 0x849   : > { %7536 = vmatprep.subr.bf16.mxu1 %v8016_v40  ;;  %v8022_v8 = vld [vmem:[#allocation5 + $0xa0] sm:$0xff]   ;;  %v8024_v11 = vld [vmem:[#allocation5 + $0x18] sm:$0xff]   ;;  %v8027_v14 = vld [vmem:[#allocation5 + $0x10] sm:$0xff]  }
 0x84a   : > { %7185 = vmatpush3.bf16.msra.mxu0 %v8015_v2  ;;  %v8029_v15 = vld [vmem:[#allocation5 + $0x48] sm:$0xff]   ;;  %v8032_v18 = vld [vmem:[#allocation5 + $0x40] sm:$0xff]   ;;  %v8047_v30 = vld [vmem:[%s8301_s17 + $0x50] ss:$12 sps:$4 sm:$0xff]  }
 0x84b   : > { %7186 = vmatprep.subr.bf16.mxu0 %v8017_v3  ;;  %v8030_v16 = vld [vmem:[#allocation5 + $0x8] sm:$0xff]   ;;  %v8034_v19 = vld [vmem:[#allocation5 + $0x80] sm:$0xff]   ;;  %v8067_v32 = vld [vmem:[%s8327_s19 + $0x38] sm:$0xff]  }
 0x84c   : > { %7537 = vmatpush3.bf16.msra.mxu1 %v8016_v40  ;;  %v8031_v17 = vld [vmem:[#allocation5 + $0x88] sm:$0xff]   ;;  %v8037_v20 = vld [vmem:[%s8301_s17 + $0x4] ss:$12 sps:$4 sm:$0xff]   ;;  %v8043_v29 = vld [vmem:[%s8301_s17 + $0x34] ss:$12 sps:$4 sm:$0xff]  }
 0x84d   : > { %7538 = vmatprep.subr.bf16.mxu1 %v8019_v5  ;;  %v8038_v21 = vld [vmem:[%s8301_s17 + $0x8] ss:$12 sps:$4 sm:$0xff]   ;;  %v8033_v22 = vld [vmem:[#allocation5] sm:$0xff]   ;;  %5047 = vmatprep.mubr.bf16.mxu0 %v8037_v20  ;;  %v8045_v33 = vld [vmem:[%s8301_s17 + $0x30] ss:$12 sps:$4 sm:$0xff]  }
 0x84e   : > { %7187 = vmatpush3.bf16.msra.mxu0 %v8018_v4  ;;  %7550 = vmatprep.mubr.bf16.mxu1 %v8038_v21  ;;  %v8035_v23 = vld [vmem:[%s8301_s17] ss:$12 sps:$4 sm:$0xff]   ;;  %v8040_v24 = vld [vmem:[%s8301_s17 + $0x1c] ss:$12 sps:$4 sm:$0xff]   ;;  %v8046_v27 = vld [vmem:[%s8301_s17 + $0x38] ss:$12 sps:$4 sm:$0xff]  }
 0x84f   : > { %7188 = vmatprep.subr.bf16.mxu0 %v8020_v6  ;;  %v8039_v26 = vld [vmem:[%s8301_s17 + $0x20] ss:$12 sps:$4 sm:$0xff]   ;;  %v8042_v28 = vld [vmem:[%s8301_s17 + $0x18] ss:$12 sps:$4 sm:$0xff]   ;;  %v8054_v31 = vld [vmem:[%s8301_s17 + $0x68] ss:$12 sps:$4 sm:$0xff]  }
 0x850   : > { %7539 = vmatpush3.bf16.msra.mxu1 %v8019_v5  ;;  %v8068_v34 = vld [vmem:[%s8327_s19 + $0x30] sm:$0xff]   ;;  %v8048_v35 = vld [vmem:[%s8301_s17 + $0x4c] ss:$12 sps:$4 sm:$0xff]   ;;  %v8056_v43 = vld [vmem:[%s8301_s17 + $0x7c] ss:$12 sps:$4 sm:$0xff]  }
 0x851   : > { %7540 = vmatprep.subr.bf16.mxu1 %v8022_v8  ;;  %v8055_v36 = vld [vmem:[%s8301_s17 + $0x80] ss:$12 sps:$4 sm:$0xff]   ;;  %v8062_v37 = vld [vmem:[%s8301_s17 + $0x98] ss:$12 sps:$4 sm:$0xff]   ;;  %v8050_v38 = vld [vmem:[%s8301_s17 + $0x48] ss:$12 sps:$4 sm:$0xff]  }
 0x852   : > { %7189 = vmatpush3.bf16.msra.mxu0 %v8021_v7  ;;  %v8051_v39 = vld [vmem:[%s8301_s17 + $0x64] ss:$12 sps:$4 sm:$0xff]   ;;  %v8053_v42 = vld [vmem:[%s8301_s17 + $0x60] ss:$12 sps:$4 sm:$0xff]   ;;  %v8066_v47 = vld [vmem:[%s8301_s17 + $0xa8] ss:$12 sps:$4 sm:$0xff]  }
 0x853   : > { %7190 = vmatprep.subr.bf16.mxu0 %v8023_v9  ;;  %v8063_v41 = vld [vmem:[%s8301_s17 + $0xb0] ss:$12 sps:$4 sm:$0xff]   ;;  %v8058_v44 = vld [vmem:[%s8301_s17 + $0x78] ss:$12 sps:$4 sm:$0xff]   ;;  %v8059_v45 = vld [vmem:[%s8301_s17 + $0x94] ss:$12 sps:$4 sm:$0xff]  }
 0x854   : > { %7541 = vmatpush3.bf16.msra.mxu1 %v8022_v8  ;;  %v8061_v25 = vld [vmem:[%s8301_s17 + $0x90] ss:$12 sps:$4 sm:$0xff]   ;;  %v8064_v46 = vld [vmem:[%s8301_s17 + $0xac] ss:$12 sps:$4 sm:$0xff]   ;;  %v8070_v49 = vld [vmem:[%s8327_s19 + $0x20] sm:$0xff]   ;;  %s6414_s17 = sshll.u32 %s5209_s22, 2 }
 0x855   : > { %7542 = vmatprep.subr.bf16.mxu1 %v8025_v10  ;;  %v8069_v48 = vld [vmem:[%s8327_s19 + $0x28] sm:$0xff]   ;;  %v8071_v50 = vld [vmem:[%s8327_s19 + $0x18] sm:$0xff]   ;;  %v8072_v51 = vld [vmem:[%s8327_s19 + $0x10] sm:$0xff]   ;;  %s9033_s12 = scalar_lea.vmem [#allocation4], %s6414_s17 }
 0x856   : > { %7191 = vmatpush3.bf16.msra.mxu0 %v8024_v11  ;;  %v8073_v52 = vld [vmem:[%s8327_s19 + $0x8] sm:$0xff]   ;;  %v8074_v53 = vld [vmem:[%s8327_s19] sm:$0xff]   ;;  %s6548_s19 = smul.u32 24, %s5209_s22 }
 0x857   : > { %7192 = vmatprep.subr.bf16.mxu0 %v8026_v12  ;;  %v6742_v61 = vld [vmem:[%s9033_s12] sm:$0xff]  }
 0x858   : > { %7543 = vmatpush3.bf16.msra.mxu1 %v8025_v10  ;;  %v6743_v40 = vunpack.c.l.bf16 %v6742_v61  ;;  %v6744_v5 = vunpack.c.h.bf16 %v6742_v61  ;;  %s9053_s0 = scalar_lea.vmem [#allocation6], %s6548_s19 }
 0x859   : > { %7544 = vmatprep.subr.bf16.mxu1 %v8028_v13 }
 0x85a   : > { %7193 = vmatpush3.bf16.msra.mxu0 %v8027_v14  ;;  %v6848_v14 = vld [vmem:[%s9033_s12 + $0x8] sm:$0xff]  }
 0x85b   : > { %7194 = vmatprep.subr.bf16.mxu0 %v8029_v15  ;;  %v6747_v20 = vunpack.c.l.bf16 %v6848_v14 }
 0x85c   : > { %7545 = vmatpush3.bf16.msra.mxu1 %v8028_v13 }
 0x85d   : > { %7546 = vmatprep.subr.bf16.mxu1 %v8031_v17 }
 0x85e   : > { %7195 = vmatpush3.bf16.msra.mxu0 %v8030_v16 }
 0x85f   : > { %7196 = vmatprep.subr.bf16.mxu0 %v8032_v18 }
 0x860   : > { %7547 = vmatpush3.bf16.msra.mxu1 %v8031_v17 }
 0x861   : > { %7548 = vmatprep.subr.bf16.mxu1 %v8034_v19 }
 0x862   : > { %7197 = vmatpush3.bf16.msra.mxu0 %v8033_v22 }
 0x864   : > { %7549 = vmatpush3.bf16.msra.mxu1 %v8034_v19 }
 0x865   : > { %5048 = vmatmul.mubr.bf16.vlgmr.msra.gmra.mxu0 %v8035_v23  ;;  %7566 = vmatprep.subr.bf16.mxu1 %v8067_v32  ;;  %v6748_v23 = vunpack.c.h.bf16 %v6848_v14 }
 0x866   : > { %5055 = vmatprep.mubr.bf16.mxu0 %v8040_v24 }
 0x867   : > { %7551 = vmatmul.mubr.bf16.vlgmr.msra.gmra.mxu1 %v8039_v26 }
 0x868   : > { %7554 = vmatprep.mubr.bf16.mxu1 %v8046_v27  ;;  %7567 = vmatpush3.bf16.msra.mxu1 %v8067_v32 }
 0x869   : > { %7568 = vmatprep.subr.bf16.mxu1 %v8068_v34 }
 0x86c   : > { %7569 = vmatpush3.bf16.msra.mxu1 %v8068_v34 }
 0x86d   : > { %5056 = vmatmul.mubr.bf16.gmra.mxu0 %v8042_v28  ;;  %7570 = vmatprep.subr.bf16.mxu1 %v8069_v48 }
 0x86e   : > { %5063 = vmatprep.mubr.bf16.mxu0 %v8043_v29 }
 0x86f   : > { %7555 = vmatmul.mubr.bf16.gmra.mxu1 %v8047_v30 }
 0x870   : > { %7558 = vmatprep.mubr.bf16.mxu1 %v8054_v31  ;;  %7571 = vmatpush3.bf16.msra.mxu1 %v8069_v48 }
 0x871   : > { %7572 = vmatprep.subr.bf16.mxu1 %v8070_v49 }
 0x874   : > { %7573 = vmatpush3.bf16.msra.mxu1 %v8070_v49 }
 0x875   : > { %5064 = vmatmul.mubr.bf16.gmra.mxu0 %v8045_v33  ;;  %7574 = vmatprep.subr.bf16.mxu1 %v8071_v50  ;;  %v6849_v33 = vld [vmem:[%s9033_s12 + $0x10] sm:$0xff]  }
 0x876   : > { %5071 = vmatprep.mubr.bf16.mxu0 %v8048_v35 }
 0x877   : > { %7559 = vmatmul.mubr.bf16.gmra.mxu1 %v8055_v36 }
 0x878   : > { %7562 = vmatprep.mubr.bf16.mxu1 %v8062_v37  ;;  %7575 = vmatpush3.bf16.msra.mxu1 %v8071_v50 }
 0x879   : > { %7576 = vmatprep.subr.bf16.mxu1 %v8072_v51 }
 0x87c   : > { %7577 = vmatpush3.bf16.msra.mxu1 %v8072_v51  ;;  %v6850_v51 = vld [vmem:[%s9033_s12 + $0x18] sm:$0xff]  }
 0x87d   : > { %5072 = vmatmul.mubr.bf16.gmra.mxu0 %v8050_v38  ;;  %7578 = vmatprep.subr.bf16.mxu1 %v8073_v52 }
 0x87e   : > { %5079 = vmatprep.mubr.bf16.mxu0 %v8051_v39  ;;  %v6751_v39 = vunpack.c.l.bf16 %v6849_v33 }
 0x87f   : > { %7563 = vmatmul.mubr.bf16.gmra.mxu1 %v8063_v41 }
 0x880   : > { %7579 = vmatpush3.bf16.msra.mxu1 %v8073_v52 }
 0x881   : > { %7580 = vmatprep.subr.bf16.mxu1 %v8074_v53 }
 0x884   : > { %7581 = vmatpush3.bf16.msra.mxu1 %v8074_v53 }
 0x885   : > { %5080 = vmatmul.mubr.bf16.gmra.mxu0 %v8053_v42 }
 0x886   : > { %5087 = vmatprep.mubr.bf16.mxu0 %v8056_v43  ;;  %v6752_v43 = vunpack.c.h.bf16 %v6849_v33 }
 0x88d   : > { %5088 = vmatmul.mubr.bf16.gmra.mxu0 %v8058_v44 }
 0x88e   : > { %5095 = vmatprep.mubr.bf16.mxu0 %v8059_v45 }
 0x895   : > { %5096 = vmatmul.mubr.bf16.gmra.mxu0 %v8061_v25 }
 0x896   : > { %5103 = vmatprep.mubr.bf16.mxu0 %v8064_v46 }
 0x89d   : > { %5104 = vmatmul.mubr.bf16.gmra.mxu0 %v8066_v47 }
 0x925   : > { %v7198_v54 = vpop.f32.mrf.mxu0 }
 0x927   : > { %v7199_v55 = vpop.f32.mrf.mxu0  ;;  %v7552_v56 = vpop.f32.mrf.mxu1 }
 0x928   : > { %v7200_v57 = vadd.f32 %v7199_v55, %v7198_v54 }
 0x929   : > { %v7201_v58 = vpop.f32.mrf.mxu0  ;;  %v5146_v59 = vpop.f32.mrf.mxu1 }
 0x92a   : > { %v5147_v60 = vadd.f32 %v7200_v57, %v5146_v59  ;;  %v6755_v57 = vunpack.c.l.bf16 %v6850_v51 }
 0x92b   : > { %v7202_v62 = vpop.f32.mrf.mxu0  ;;  %v7553_v63 = vpop.f32.mrf.mxu1 }
 0x92c   : > { %v7203_v0 = vadd.f32 %v7202_v62, %v7201_v58  ;;  %v5245_v3 = vmul.f32 2.0, %v5147_v60  ;;  %v6756_v60 = vunpack.c.h.bf16 %v6850_v51 }
 0x92d   : > { %v7204_v1 = vpop.f32.mrf.mxu0  ;;  %v5149_v2 = vpop.f32.mrf.mxu1 }
 0x92e   : > { %v5150_v4 = vadd.f32 %v7203_v0, %v5149_v2  ;;  %v5261_v11 = vsub.f32 %v5245_v3, %v6743_v40 }
 0x92f   : > { %v7205_v6 = vpop.f32.mrf.mxu0  ;;  %v7556_v7 = vpop.f32.mrf.mxu1 }
 0x930   : > { %v5246_v8 = vmul.f32 2.0, %v5150_v4  ;;  %v7206_v9 = vadd.f32 %v7205_v6, %v7204_v1  ;;  %v6851_v4 = vld [vmem:[%s9033_s12 + $0x20] sm:$0xff]  }
 0x931   : > { %v7207_v10 = vpop.f32.mrf.mxu0  ;;  %v5162_v16 = vpop.f32.mrf.mxu1 }
 0x932   : > { %v5262_v12 = vsub.f32 %v5246_v8, %v6744_v5  ;;  %v5155_v13 = vadd.f32 %v7552_v56, %v7206_v9 }
 0x933   : > { %v7208_v15 = vpop.f32.mrf.mxu0  ;;  %v7557_v26 = vpop.f32.mrf.mxu1 }
 0x934   : > { %v7209_v17 = vadd.f32 %v7208_v15, %v7207_v10  ;;  %v5277_v18 = vpack.c.bf16 %v5262_v12, %v5261_v11  ;;  %v5247_v21 = vmul.f32 2.0, %v5155_v13  ;;  %v6759_v10 = vunpack.c.l.bf16 %v6851_v4 }
 0x935   : > { %v7210_v19 = vpop.f32.mrf.mxu0  ;;  %v5165_v35 = vpop.f32.mrf.mxu1  ;;  %v6760_v13 = vunpack.c.h.bf16 %v6851_v4 }
 0x936   : > { %v5158_v22 = vadd.f32 %v7553_v63, %v7209_v17  ;;  %6777 = vst [vmem:[%s9033_s12] sm:$0xff] %v5277_v18   ;;  %7582 = vmatprep.mubr.bf16.mxu1 %v5277_v18  ;;  %v5263_v30 = vsub.f32 %v5247_v21, %v6747_v20 }
 0x937   : > { %v7211_v24 = vpop.f32.mrf.mxu0  ;;  %v7560_v45 = vpop.f32.mrf.mxu1 }
 0x938   : > { %v5248_v27 = vmul.f32 2.0, %v5158_v22  ;;  %v7212_v28 = vadd.f32 %v7211_v24, %v7210_v19  ;;  %v6852_v22 = vld [vmem:[%s9033_s12 + $0x28] sm:$0xff]  }
 0x939   : > { %v7213_v29 = vpop.f32.mrf.mxu0  ;;  %v5178_v53 = vpop.f32.mrf.mxu1 }
 0x93a   : > { %v5264_v31 = vsub.f32 %v5248_v27, %v6748_v23  ;;  %v5163_v32 = vadd.f32 %v7212_v28, %v5162_v16 }
 0x93b   : > { %v7214_v34 = vpop.f32.mrf.mxu0  ;;  %v7561_v62 = vpop.f32.mrf.mxu1 }
 0x93c   : > { %v5278_v36 = vpack.c.bf16 %v5264_v31, %v5263_v30  ;;  %v7215_v37 = vadd.f32 %v7214_v34, %v7213_v29  ;;  %v5249_v41 = vmul.f32 2.0, %v5163_v32  ;;  %v6763_v29 = vunpack.c.l.bf16 %v6852_v22 }
 0x93d   : > { %v7216_v38 = vpop.f32.mrf.mxu0  ;;  %v5181_v6 = vpop.f32.mrf.mxu1  ;;  %v6764_v32 = vunpack.c.h.bf16 %v6852_v22 }
 0x93e   : > { %6855 = vst [vmem:[%s9033_s12 + $0x8] sm:$0xff] %v5278_v36   ;;  %v5166_v42 = vadd.f32 %v7215_v37, %v5165_v35  ;;  %7583 = vmatmul.mubr.bf16.vlgmr.msra.gmra.mxu1 %v5278_v36  ;;  %v5265_v48 = vsub.f32 %v5249_v41, %v6751_v39 }
 0x93f   : > { %v7217_v44 = vpop.f32.mrf.mxu0  ;;  %v7564_v15 = vpop.f32.mrf.mxu1 }
 0x940   : > { %v5250_v25 = vmul.f32 2.0, %v5166_v42  ;;  %v7218_v46 = vadd.f32 %v7217_v44, %v7216_v38  ;;  %v6853_v42 = vld [vmem:[%s9033_s12 + $0x30] sm:$0xff]  }
 0x941   : > { %v7219_v47 = vpop.f32.mrf.mxu0  ;;  %v5194_v24 = vpop.f32.mrf.mxu1 }
 0x942   : > { %v5266_v49 = vsub.f32 %v5250_v25, %v6752_v43  ;;  %v5171_v50 = vadd.f32 %v7556_v7, %v7218_v46 }
 0x943   : > { %v7220_v52 = vpop.f32.mrf.mxu0  ;;  %v7565_v34 = vpop.f32.mrf.mxu1 }
 0x944   : > { %v7221_v54 = vadd.f32 %v7220_v52, %v7219_v47  ;;  %v5279_v55 = vpack.c.bf16 %v5266_v49, %v5265_v48  ;;  %v5251_v58 = vmul.f32 2.0, %v5171_v50  ;;  %v6767_v47 = vunpack.c.l.bf16 %v6853_v42 }
 0x945   : > { %v7222_v56 = vpop.f32.mrf.mxu0  ;;  %v5197_v44 = vpop.f32.mrf.mxu1  ;;  %v6768_v50 = vunpack.c.h.bf16 %v6853_v42  ;;  %v9081_v42 = vld [vmem:[%s9197_s5 + $0x2] ss:$0 sm:$0xff] }
 0x946   : > { %v5174_v59 = vadd.f32 %v7557_v26, %v7221_v54  ;;  %6856 = vst [vmem:[%s9033_s12 + $0x10] sm:$0xff] %v5279_v55   ;;  %7586 = vmatprep.mubr.bf16.mxu1 %v5279_v55  ;;  %v5267_v2 = vsub.f32 %v5251_v58, %v6755_v57  ;;  %v6854_v58 = vld [vmem:[%s9033_s12 + $0x38] sm:$0xff]  }
 0x947   : > { %v7223_v61 = vpop.f32.mrf.mxu0 }
 0x948   : > { %v5252_v63 = vmul.f32 2.0, %v5174_v59  ;;  %v7224_v0 = vadd.f32 %v7223_v61, %v7222_v56 }
 0x949   : > { %v7225_v1 = vpop.f32.mrf.mxu0 }
 0x94a   : > { %v5268_v40 = vsub.f32 %v5252_v63, %v6756_v60  ;;  %v5179_v3 = vadd.f32 %v7224_v0, %v5178_v53 }
 0x94b   : > { %v7226_v5 = vpop.f32.mrf.mxu0 }
 0x94c   : > { %v7227_v7 = vadd.f32 %v7226_v5, %v7225_v1  ;;  %v5280_v8 = vpack.c.bf16 %v5268_v40, %v5267_v2  ;;  %v5253_v11 = vmul.f32 2.0, %v5179_v3  ;;  %v6772_v1 = vunpack.c.h.bf16 %v6854_v58  ;;  %v5571_v5 = vld [vmem:[%s9053_s0 + $0x30] sm:$0xff] }
 0x94d   : > { %v7228_v9 = vpop.f32.mrf.mxu0 }
 0x94e   : > { %v5182_v12 = vadd.f32 %v7227_v7, %v5181_v6  ;;  %6857 = vst [vmem:[%s9033_s12 + $0x18] sm:$0xff] %v5280_v8   ;;  %7587 = vmatmul.mubr.bf16.gmra.mxu1 %v5280_v8  ;;  %v5269_v19 = vsub.f32 %v5253_v11, %v6759_v10  ;;  %v9059_v6 = vld [vmem:[%s9197_s5] ss:$0 sm:$0xff]  ;;  %v5570_v11 = vld [vmem:[%s9053_s0 + $0x18] sm:$0xff] }
 0x94f   : > { %v7229_v14 = vpop.f32.mrf.mxu0  ;;  %v5594_v7 = vadd.f32 %v9059_v6, %v5571_v5  ;;  %v5569_v8 = vld [vmem:[%s9053_s0] sm:$0xff] }
 0x950   : > { %v5254_v16 = vmul.f32 2.0, %v5182_v12  ;;  %v7230_v17 = vadd.f32 %v7229_v14, %v7228_v9  ;;  %v5572_v9 = vld [vmem:[%s9053_s0 + $0x48] sm:$0xff]  ;;  %v5592_v10 = vadd.f32 %v9059_v6, %v5569_v8  ;;  %v5593_v14 = vadd.f32 %v9059_v6, %v5570_v11  ;;  %v5583_v11 = vld [vmem:[%s9053_s0 + $0x150] sm:$0xff] }
 0x951   : > { %v7231_v18 = vpop.f32.mrf.mxu0  ;;  %v6443_v12 = vmul.f32 -1.442695, %v5594_v7 }
 0x952   : > { %v5270_v20 = vsub.f32 %v5254_v16, %v6760_v13  ;;  %v5187_v21 = vadd.f32 %v7560_v45, %v7230_v17  ;;  %v5595_v13 = vadd.f32 %v9059_v6, %v5572_v9  ;;  %v6442_v17 = vmul.f32 -1.442695, %v5593_v14  ;;  %v5366_v14 = vld [vmem:[%s9053_s0 + $0xa0] sm:$0xff] }
 0x953   : > { %v7232_v23 = vpop.f32.mrf.mxu0  ;;  %8075 = vpow2.f32 %v6443_v12 }
 0x954   : > { %v7233_v26 = vadd.f32 %v7232_v23, %v7231_v18  ;;  %v5281_v27 = vpack.c.bf16 %v5270_v20, %v5269_v19  ;;  %v5255_v30 = vmul.f32 2.0, %v5187_v21  ;;  %v6444_v16 = vmul.f32 -1.442695, %v5595_v13  ;;  %v5575_v18 = vld [vmem:[%s9053_s0 + $0x90] sm:$0xff]  ;;  %v5573_v20 = vld [vmem:[%s9053_s0 + $0x60] sm:$0xff]  ;;  %v5576_v21 = vld [vmem:[%s9053_s0 + $0xa8] sm:$0xff] }
 0x955   : > { %v7234_v28 = vpop.f32.mrf.mxu0  ;;  %v5598_v19 = vadd.f32 %v9059_v6, %v5575_v18  ;;  %v5596_v22 = vadd.f32 %v9059_v6, %v5573_v20  ;;  %v5574_v23 = vld [vmem:[%s9053_s0 + $0x78] sm:$0xff]  ;;  %v5761_v13 = vld [vmem:[%s8314_s7 + $0x10] sm:$0xff] }
 0x956   : > { %v5190_v31 = vadd.f32 %v7561_v62, %v7233_v26  ;;  %6858 = vst [vmem:[%s9033_s12 + $0x20] sm:$0xff] %v5281_v27   ;;  %7590 = vmatprep.mubr.bf16.mxu1 %v5281_v27  ;;  %v5271_v38 = vsub.f32 %v5255_v30, %v6763_v29  ;;  %v6771_v62 = vunpack.c.l.bf16 %v6854_v58  ;;  %v5599_v27 = vadd.f32 %v9059_v6, %v5576_v21  ;;  %v5762_v18 = vld [vmem:[%s8314_s7 + $0x18] sm:$0xff]  ;;  %v5364_v21 = vld [vmem:[%s9053_s0 + $0x70] sm:$0xff] }
 0x957   : > { %v7235_v33 = vpop.f32.mrf.mxu0  ;;  %v6445_v29 = vmul.f32 -1.442695, %v5596_v22 }
 0x958   : > { %v5256_v35 = vmul.f32 2.0, %v5190_v31  ;;  %v7236_v36 = vadd.f32 %v7235_v33, %v7234_v28  ;;  %v5597_v28 = vadd.f32 %v9059_v6, %v5574_v23  ;;  %v6448_v33 = vmul.f32 -1.442695, %v5599_v27 }
 0x959   : > { %v7237_v37 = vpop.f32.mrf.mxu0  ;;  %v5606_v23 = vadd.f32 %v9059_v6, %v5583_v11 }
 0x95a   : > { %v5272_v39 = vsub.f32 %v5256_v35, %v6764_v32  ;;  %v5195_v41 = vadd.f32 %v7236_v36, %v5194_v24  ;;  %v6447_v24 = vmul.f32 -1.442695, %v5598_v19 }
 0x95b   : > { %v7238_v43 = vpop.f32.mrf.mxu0 }
 0x95c   : > { %v7239_v45 = vadd.f32 %v7238_v43, %v7237_v37  ;;  %v5282_v25 = vpack.c.bf16 %v5272_v39, %v5271_v38  ;;  %v5257_v48 = vmul.f32 2.0, %v5195_v41  ;;  %v5362_v37 = vld [vmem:[%s9053_s0 + $0x40] sm:$0xff]  ;;  %v5579_v39 = vld [vmem:[%s9053_s0 + $0xf0] sm:$0xff] }
 0x95d   : > { %v7240_v46 = vpop.f32.mrf.mxu0  ;;  %v5360_v43 = vld [vmem:[%s9053_s0 + $0x10] sm:$0xff] }
 0x95e   : > { %v5198_v49 = vadd.f32 %v7239_v45, %v5197_v44  ;;  %6859 = vst [vmem:[%s9033_s12 + $0x28] sm:$0xff] %v5282_v25   ;;  %7591 = vmatmul.mubr.bf16.gmra.mxu1 %v5282_v25  ;;  %v5273_v55 = vsub.f32 %v5257_v48, %v6767_v47  ;;  %v5602_v47 = vadd.f32 %v9059_v6, %v5579_v39  ;;  %v5577_v48 = vld [vmem:[%s9053_s0 + $0xc0] sm:$0xff]  ;;  %v5367_v39 = vld [vmem:[%s9053_s0 + $0xb8] sm:$0xff] }
 0x95f   : > { %v7241_v51 = vpop.f32.mrf.mxu0 }
 0x960   : > { %v5258_v52 = vmul.f32 2.0, %v5198_v49  ;;  %v7242_v53 = vadd.f32 %v7241_v51, %v7240_v46  ;;  %v8076_v26 = vpop.eup %8075  ;;  %v5363_v46 = vld [vmem:[%s9053_s0 + $0x58] sm:$0xff] }
 0x961   : > { %v7243_v54 = vpop.f32.mrf.mxu0  ;;  %v5658_v31 = vadd.f32 1.0, %v8076_v26 }
 0x962   : > { %v5274_v56 = vsub.f32 %v5258_v52, %v6768_v50  ;;  %v5203_v57 = vadd.f32 %v7564_v15, %v7242_v53  ;;  %v6441_v15 = vmul.f32 -1.442695, %v5592_v10  ;;  %v5361_v52 = vld [vmem:[%s9053_s0 + $0x28] sm:$0xff] }
 0x963   : > { %v7244_v59 = vpop.f32.mrf.mxu0  ;;  %v5580_v53 = vld [vmem:[%s9053_s0 + $0x108] sm:$0xff] }
 0x964   : > { %v7245_v60 = vadd.f32 %v7244_v59, %v7243_v54  ;;  %v5283_v61 = vpack.c.bf16 %v5274_v56, %v5273_v55  ;;  %v5259_v63 = vmul.f32 2.0, %v5203_v57  ;;  %8077 = vpow2.f32 %v6441_v15  ;;  %v5578_v57 = vld [vmem:[%s9053_s0 + $0xd8] sm:$0xff] }
 0x965   : > { %8079 = vpow2.f32 %v6444_v16  ;;  %v5600_v56 = vadd.f32 %v9059_v6, %v5577_v48  ;;  %v6451_v59 = vmul.f32 -1.442695, %v5602_v47 }
 0x966   : > { %v5206_v0 = vadd.f32 %v7565_v34, %v7245_v60  ;;  %6860 = vst [vmem:[%s9033_s12 + $0x30] sm:$0xff] %v5283_v61   ;;  %7594 = vmatprep.mubr.bf16.mxu1 %v5283_v61  ;;  %v5275_v40 = vsub.f32 %v5259_v63, %v6771_v62  ;;  %8081 = vpow2.f32 %v6442_v17  ;;  %v6446_v34 = vmul.f32 -1.442695, %v5597_v28  ;;  %v5759_v17 = vld [vmem:[%s8314_s7] sm:$0xff] }
 0x967   : > { %8083 = vpow2.f32 %v6447_v24  ;;  %v5603_v63 = vadd.f32 %v9059_v6, %v5580_v53 }
 0x968   : > { %v5260_v2 = vmul.f32 2.0, %v5206_v0  ;;  %8085 = vpow2.f32 %v6445_v29  ;;  %v5601_v0 = vadd.f32 %v9059_v6, %v5578_v57  ;;  %v5581_v29 = vld [vmem:[%s9053_s0 + $0x120] sm:$0xff] }
 0x969   : > { %8087 = vrcp.f32 %v5658_v31  ;;  %v6452_v5 = vmul.f32 -1.442695, %v5603_v63  ;;  %v5604_v47 = vadd.f32 %v9059_v6, %v5581_v29 }
 0x96a   : > { %v5276_v3 = vsub.f32 %v5260_v2, %v6772_v1  ;;  %8089 = vpow2.f32 %v6448_v33  ;;  %v6449_v2 = vmul.f32 -1.442695, %v5600_v56  ;;  %v6450_v8 = vmul.f32 -1.442695, %v5601_v0 }
 0x96b   : > { %8091 = vpow2.f32 %v6446_v34 }
 0x96c   : > { %v5284_v4 = vpack.c.bf16 %v5276_v3, %v5275_v40 }
 0x96e   : > { %6861 = vst [vmem:[%s9033_s12 + $0x38] sm:$0xff] %v5284_v4   ;;  %7595 = vmatmul.mubr.bf16.gmra.mxu1 %v5284_v4 }
 0x971   : > { %v8078_v30 = vpop.eup %8077 }
 0x972   : > { %v8080_v32 = vpop.eup %8079  ;;  %v5656_v36 = vadd.f32 1.0, %v8078_v30 }
 0x973   : > { %v8082_v35 = vpop.eup %8081  ;;  %v5659_v38 = vadd.f32 1.0, %v8080_v32 }
 0x974   : > { %v5657_v44 = vadd.f32 1.0, %v8082_v35  ;;  %8093 = vrcp.f32 %v5656_v36  ;;  %v8084_v60 = vpop.eup %8083  ;;  %v5760_v36 = vld [vmem:[%s8314_s7 + $0x8] sm:$0xff] }
 0x975   : > { %8095 = vrcp.f32 %v5659_v38  ;;  %v8086_v40 = vpop.eup %8085  ;;  %v5662_v3 = vadd.f32 1.0, %v8084_v60 }
 0x976   : > { %8097 = vrcp.f32 %v5657_v44  ;;  %v8088_v4 = vpop.eup %8087  ;;  %v5660_v10 = vadd.f32 1.0, %v8086_v40  ;;  %v6453_v40 = vmul.f32 -1.442695, %v5604_v47 }
 0x977   : > { %v8090_v7 = vpop.eup %8089  ;;  %v5793_v16 = vsub.f32 1.0, %v8088_v4  ;;  %v5777_v26 = vmul.f32 %v8088_v4, %v5761_v13  ;;  %v5765_v13 = vld [vmem:[%s8314_s7 + $0x30] sm:$0xff] }
 0x978   : > { %v8092_v9 = vpop.eup %8091  ;;  %v5663_v19 = vadd.f32 1.0, %v8090_v7 }
 0x979   : > { %v5661_v22 = vadd.f32 1.0, %v8092_v9 }
 0x981   : > { %v8094_v12 = vpop.eup %8093 }
 0x982   : > { %v8096_v15 = vpop.eup %8095  ;;  %v5791_v27 = vsub.f32 1.0, %v8094_v12  ;;  %v5775_v31 = vmul.f32 %v8094_v12, %v5759_v17 }
 0x983   : > { %v8098_v24 = vpop.eup %8097  ;;  %v5778_v32 = vmul.f32 %v8096_v15, %v5762_v18  ;;  %v5794_v33 = vsub.f32 1.0, %v8096_v15 }
 0x984   : > { %v5792_v44 = vsub.f32 1.0, %v8098_v24  ;;  %v5776_v53 = vmul.f32 %v8098_v24, %v5760_v36 }
 0x9fe   : > { %v7584_v41 = vpop.f32.mrf.mxu1 }
 0x9ff   : > { %v5539_v45 = vadd.f32 %v7584_v41, %v5362_v37  ;;  %v5584_v41 = vld [vmem:[%s9053_s0 + $0x168] sm:$0xff] }
 0xa00   : > { %v5474_v25 = vpop.f32.mrf.mxu1  ;;  %v5607_v56 = vadd.f32 %v9059_v6, %v5584_v41  ;;  %v5369_v41 = vld [vmem:[%s9053_s0 + $0xe8] sm:$0xff] }
 0xa01   : > { %5555 = vst [vmem:[%s9053_s0 + $0x40] sm:$0xff] %v5539_v45  ;;  %v5729_v49 = vadd.f32 %v9081_v42, %v5539_v45  ;;  %v5537_v50 = vadd.f32 %v5474_v25, %v5360_v43  ;;  %v5365_v25 = vld [vmem:[%s9053_s0 + $0x88] sm:$0xff] }
 0xa02   : > { %v7585_v51 = vpop.f32.mrf.mxu1 }
 0xa03   : > { %8099 = vtanh.f32 %v5729_v49  ;;  %5553 = vst [vmem:[%s9053_s0 + $0x10] sm:$0xff] %v5537_v50  ;;  %v5727_v54 = vadd.f32 %v9081_v42, %v5537_v50  ;;  %v5540_v55 = vadd.f32 %v7585_v51, %v5363_v46  ;;  %v6455_v46 = vmul.f32 -1.442695, %v5606_v23  ;;  %v5582_v51 = vld [vmem:[%s9053_s0 + $0x138] sm:$0xff] }
 0xa04   : > { %v5477_v58 = vpop.f32.mrf.mxu1  ;;  %v5605_v63 = vadd.f32 %v9059_v6, %v5582_v51 }
 0xa05   : > { %8101 = vtanh.f32 %v5727_v54  ;;  %5556 = vst [vmem:[%s9053_s0 + $0x58] sm:$0xff] %v5540_v55  ;;  %v5730_v61 = vadd.f32 %v9081_v42, %v5540_v55  ;;  %v5538_v62 = vadd.f32 %v5477_v58, %v5361_v52 }
 0xa06   : > { %v6454_v9 = vmul.f32 -1.442695, %v5605_v63 }
 0xa07   : > { %8103 = vtanh.f32 %v5730_v61  ;;  %5554 = vst [vmem:[%s9053_s0 + $0x28] sm:$0xff] %v5538_v62  ;;  %v5728_v1 = vadd.f32 %v9081_v42, %v5538_v62 }
 0xa08   : > { %8105 = vpow2.f32 %v6451_v59 }
 0xa09   : > { %8107 = vtanh.f32 %v5728_v1 }
 0xa0a   : > { %8109 = vpow2.f32 %v6449_v2 }
 0xa0b   : > { %8111 = vrcp.f32 %v5662_v3 }
 0xa0c   : > { %8113 = vpow2.f32 %v6452_v5 }
 0xa0d   : > { %8115 = vpow2.f32 %v6450_v8  ;;  %v6456_v8 = vmul.f32 -1.442695, %v5607_v56 }
 0xa0e   : > { %v7588_v20 = vpop.f32.mrf.mxu1  ;;  %8117 = vrcp.f32 %v5660_v10 }
 0xa0f   : > { %v5543_v28 = vadd.f32 %v7588_v20, %v5366_v14  ;;  %8119 = vrcp.f32 %v5663_v19  ;;  %v5370_v14 = vld [vmem:[%s9053_s0 + $0x100] sm:$0xff]  ;;  %v5368_v20 = vld [vmem:[%s9053_s0 + $0xd0] sm:$0xff] }
 0xa10   : > { %v8100_v30 = vpop.eup %8099  ;;  %v5490_v34 = vpop.f32.mrf.mxu1  ;;  %8121 = vrcp.f32 %v5661_v22 }
 0xa11   : > { %v5809_v35 = vmul.f32 %v8100_v30, %v5793_v16  ;;  %5559 = vst [vmem:[%s9053_s0 + $0xa0] sm:$0xff] %v5543_v28  ;;  %v5733_v37 = vadd.f32 %v9081_v42, %v5543_v28  ;;  %v5541_v38 = vadd.f32 %v5490_v34, %v5364_v21  ;;  %v5763_v16 = vld [vmem:[%s8314_s7 + $0x20] sm:$0xff]  ;;  %v5371_v34 = vld [vmem:[%s9053_s0 + $0x118] sm:$0xff] }
 0xa12   : > { %v8102_v43 = vpop.eup %8101  ;;  %v7589_v45 = vpop.f32.mrf.mxu1 }
 0xa13   : > { %v5825_v48 = vadd.f32 %v5809_v35, %v5777_v26  ;;  %v5807_v49 = vmul.f32 %v8102_v43, %v5791_v27  ;;  %8123 = vtanh.f32 %v5733_v37  ;;  %5557 = vst [vmem:[%s9053_s0 + $0x70] sm:$0xff] %v5541_v38  ;;  %v5731_v50 = vadd.f32 %v9081_v42, %v5541_v38  ;;  %v5764_v37 = vld [vmem:[%s8314_s7 + $0x28] sm:$0xff] }
 0xa14   : > { %v8104_v52 = vpop.eup %8103  ;;  %v5544_v54 = vadd.f32 %v7589_v45, %v5367_v39  ;;  %v5493_v55 = vpop.f32.mrf.mxu1 }
 0xa15   : > { %v8106_v57 = vpop.eup %8105  ;;  %5841 = vst [vmem:[%s8332_s30 + $0x10] sm:$0xff] %v5825_v48  ;;  %v5823_v58 = vadd.f32 %v5807_v49, %v5775_v31  ;;  %v5810_v59 = vmul.f32 %v8104_v52, %v5794_v33  ;;  %8125 = vtanh.f32 %v5731_v50  ;;  %v5542_v60 = vadd.f32 %v5493_v55, %v5365_v25  ;;  %v5766_v31 = vld [vmem:[%s8314_s7 + $0x38] sm:$0xff] }
 0xa16   : > { %v8108_v61 = vpop.eup %8107  ;;  %5560 = vst [vmem:[%s9053_s0 + $0xb8] sm:$0xff] %v5544_v54  ;;  %v5734_v62 = vadd.f32 %v9081_v42, %v5544_v54  ;;  %8127 = vpow2.f32 %v6455_v46  ;;  %v5666_v4 = vadd.f32 1.0, %v8106_v57 }
 0xa17   : > { %5839 = vst [vmem:[%s8332_s30] sm:$0xff] %v5823_v58  ;;  %v5826_v0 = vadd.f32 %v5810_v59, %v5778_v32  ;;  %v5808_v1 = vmul.f32 %v8108_v61, %v5792_v44  ;;  %5558 = vst [vmem:[%s9053_s0 + $0x88] sm:$0xff] %v5542_v60  ;;  %v5732_v2 = vadd.f32 %v9081_v42, %v5542_v60  ;;  %v8110_v3 = vpop.eup %8109 }
 0xa18   : > { %8129 = vtanh.f32 %v5734_v62  ;;  %v8112_v5 = vpop.eup %8111  ;;  %v5664_v11 = vadd.f32 1.0, %v8110_v3  ;;  %v5374_v3 = vld [vmem:[%s9053_s0 + $0x160] sm:$0xff] }
 0xa19   : > { %5842 = vst [vmem:[%s8332_s30 + $0x18] sm:$0xff] %v5826_v0  ;;  %v5824_v7 = vadd.f32 %v5808_v1, %v5776_v53  ;;  %8131 = vtanh.f32 %v5732_v2  ;;  %v8114_v6 = vpop.eup %8113  ;;  %v5797_v15 = vsub.f32 1.0, %v8112_v5  ;;  %v5781_v23 = vmul.f32 %v8112_v5, %v5765_v13  ;;  %v5767_v5 = vld [vmem:[%s8314_s7 + $0x40] sm:$0xff] }
 0xa1a   : > { %v8116_v10 = vpop.eup %8115  ;;  %8133 = vpow2.f32 %v6453_v40  ;;  %v5667_v17 = vadd.f32 1.0, %v8114_v6  ;;  %v5769_v40 = vld [vmem:[%s8314_s7 + $0x50] sm:$0xff] }
 0xa1b   : > { %5840 = vst [vmem:[%s8332_s30 + $0x8] sm:$0xff] %v5824_v7  ;;  %v8118_v12 = vpop.eup %8117  ;;  %8135 = vrcp.f32 %v5666_v4  ;;  %v5665_v21 = vadd.f32 1.0, %v8116_v10 }
 0xa1c   : > { %8137 = vpow2.f32 %v6456_v8  ;;  %v8120_v18 = vpop.eup %8119  ;;  %v5795_v24 = vsub.f32 1.0, %v8118_v12  ;;  %v5779_v28 = vmul.f32 %v8118_v12, %v5763_v16 }
 0xa1d   : > { %8139 = vpow2.f32 %v6454_v9  ;;  %v8122_v22 = vpop.eup %8121  ;;  %v5798_v36 = vsub.f32 1.0, %v8120_v18  ;;  %v5782_v46 = vmul.f32 %v8120_v18, %v5766_v31  ;;  %v5372_v9 = vld [vmem:[%s9053_s0 + $0x130] sm:$0xff] }
 0xa1e   : > { %v7592_v19 = vpop.f32.mrf.mxu1  ;;  %8141 = vrcp.f32 %v5664_v11  ;;  %v5796_v38 = vsub.f32 1.0, %v8122_v22  ;;  %v5780_v51 = vmul.f32 %v8122_v22, %v5764_v37  ;;  %v5375_v22 = vld [vmem:[%s9053_s0 + $0x178] sm:$0xff] }
 0xa1f   : > { %v5547_v26 = vadd.f32 %v7592_v19, %v5370_v14  ;;  %8143 = vrcp.f32 %v5667_v17  ;;  %v5770_v19 = vld [vmem:[%s8314_s7 + $0x58] sm:$0xff] }
 0xa20   : > { %v8124_v27 = vpop.eup %8123  ;;  %v5506_v29 = vpop.f32.mrf.mxu1  ;;  %8145 = vrcp.f32 %v5665_v21 }
 0xa21   : > { %v5813_v30 = vmul.f32 %v8124_v27, %v5797_v15  ;;  %5563 = vst [vmem:[%s9053_s0 + $0x100] sm:$0xff] %v5547_v26  ;;  %v5737_v32 = vadd.f32 %v9081_v42, %v5547_v26  ;;  %v5545_v33 = vadd.f32 %v5506_v29, %v5368_v20  ;;  %v5768_v26 = vld [vmem:[%s8314_s7 + $0x48] sm:$0xff] }
 0xa22   : > { %v8126_v35 = vpop.eup %8125  ;;  %v7593_v39 = vpop.f32.mrf.mxu1  ;;  %v5373_v29 = vld [vmem:[%s9053_s0 + $0x148] sm:$0xff] }
 0xa23   : > { %v8128_v43 = vpop.eup %8127  ;;  %v5829_v44 = vadd.f32 %v5813_v30, %v5781_v23  ;;  %v5811_v45 = vmul.f32 %v8126_v35, %v5795_v24  ;;  %8147 = vtanh.f32 %v5737_v32  ;;  %5561 = vst [vmem:[%s9053_s0 + $0xd0] sm:$0xff] %v5545_v33  ;;  %v5735_v25 = vadd.f32 %v9081_v42, %v5545_v33 }
 0xa24   : > { %v5548_v47 = vadd.f32 %v7593_v39, %v5371_v34  ;;  %v5509_v48 = vpop.f32.mrf.mxu1  ;;  %v5670_v62 = vadd.f32 1.0, %v8128_v43 }
 0xa25   : > { %v8130_v49 = vpop.eup %8129  ;;  %5845 = vst [vmem:[%s8332_s30 + $0x30] sm:$0xff] %v5829_v44  ;;  %v5827_v50 = vadd.f32 %v5811_v45, %v5779_v28  ;;  %8149 = vtanh.f32 %v5735_v25  ;;  %v5546_v52 = vadd.f32 %v5509_v48, %v5369_v41 }
 0xa26   : > { %v8132_v53 = vpop.eup %8131  ;;  %v5814_v54 = vmul.f32 %v8130_v49, %v5798_v36  ;;  %5564 = vst [vmem:[%s9053_s0 + $0x118] sm:$0xff] %v5548_v47  ;;  %v5738_v55 = vadd.f32 %v9081_v42, %v5548_v47 }
 0xa27   : > { %5843 = vst [vmem:[%s8332_s30 + $0x20] sm:$0xff] %v5827_v50  ;;  %v5812_v56 = vmul.f32 %v8132_v53, %v5796_v38  ;;  %5562 = vst [vmem:[%s9053_s0 + $0xe8] sm:$0xff] %v5546_v52  ;;  %v5736_v57 = vadd.f32 %v9081_v42, %v5546_v52  ;;  %v8134_v58 = vpop.eup %8133  ;;  %v5773_v50 = vld [vmem:[%s8314_s7 + $0x70] sm:$0xff]  ;;  %v5771_v53 = vld [vmem:[%s8314_s7 + $0x60] sm:$0xff] }
 0xa28   : > { %v5830_v59 = vadd.f32 %v5814_v54, %v5782_v46  ;;  %8151 = vtanh.f32 %v5738_v55  ;;  %v8136_v60 = vpop.eup %8135  ;;  %v5668_v1 = vadd.f32 1.0, %v8134_v58 }
 0xa29   : > { %v5828_v61 = vadd.f32 %v5812_v56, %v5780_v51  ;;  %8153 = vtanh.f32 %v5736_v57  ;;  %v8138_v63 = vpop.eup %8137  ;;  %v5801_v4 = vsub.f32 1.0, %v8136_v60  ;;  %v5785_v12 = vmul.f32 %v8136_v60, %v5769_v40 }
 0xa2a   : > { %5846 = vst [vmem:[%s8332_s30 + $0x38] sm:$0xff] %v5830_v59  ;;  %v8140_v0 = vpop.eup %8139  ;;  %8155 = vrcp.f32 %v5670_v62  ;;  %v5671_v7 = vadd.f32 1.0, %v8138_v63  ;;  %v5774_v59 = vld [vmem:[%s8314_s7 + $0x78] sm:$0xff]  ;;  %v5772_v62 = vld [vmem:[%s8314_s7 + $0x68] sm:$0xff] }
 0xa2b   : > { %5844 = vst [vmem:[%s8332_s30 + $0x28] sm:$0xff] %v5828_v61  ;;  %v8142_v2 = vpop.eup %8141  ;;  %v5669_v10 = vadd.f32 1.0, %v8140_v0  ;;  %8157 = vrcp.f32 %v5668_v1 }
 0xa2c   : > { %v8144_v8 = vpop.eup %8143  ;;  %v5799_v13 = vsub.f32 1.0, %v8142_v2  ;;  %v5783_v16 = vmul.f32 %v8142_v2, %v5767_v5  ;;  %8159 = vrcp.f32 %v5671_v7 }
 0xa2d   : > { %v8146_v11 = vpop.eup %8145  ;;  %v5802_v24 = vsub.f32 1.0, %v8144_v8  ;;  %8161 = vrcp.f32 %v5669_v10  ;;  %v5786_v33 = vmul.f32 %v8144_v8, %v5770_v19 }
 0xa2e   : > { %v7596_v6 = vpop.f32.mrf.mxu1  ;;  %v5800_v27 = vsub.f32 1.0, %v8146_v11  ;;  %v5784_v38 = vmul.f32 %v8146_v11, %v5768_v26 }
 0xa2f   : > { %v5551_v14 = vadd.f32 %v7596_v6, %v5374_v3 }
 0xa30   : > { %v8148_v15 = vpop.eup %8147  ;;  %v5522_v17 = vpop.f32.mrf.mxu1 }
 0xa31   : > { %v5817_v18 = vmul.f32 %v8148_v15, %v5801_v4  ;;  %5567 = vst [vmem:[%s9053_s0 + $0x160] sm:$0xff] %v5551_v14  ;;  %v5741_v20 = vadd.f32 %v9081_v42, %v5551_v14  ;;  %v5549_v21 = vadd.f32 %v5522_v17, %v5372_v9 }
 0xa32   : > { %v8150_v23 = vpop.eup %8149  ;;  %v7597_v28 = vpop.f32.mrf.mxu1 }
 0xa33   : > { %v5833_v30 = vadd.f32 %v5817_v18, %v5785_v12  ;;  %v5815_v31 = vmul.f32 %v8150_v23, %v5799_v13  ;;  %8163 = vtanh.f32 %v5741_v20  ;;  %5565 = vst [vmem:[%s9053_s0 + $0x130] sm:$0xff] %v5549_v21  ;;  %v5739_v32 = vadd.f32 %v9081_v42, %v5549_v21 }
 0xa34   : > { %v5552_v34 = vadd.f32 %v7597_v28, %v5375_v22  ;;  %v5525_v35 = vpop.f32.mrf.mxu1 }
 0xa35   : > { %v8152_v36 = vpop.eup %8151  ;;  %5849 = vst [vmem:[%s8332_s30 + $0x50] sm:$0xff] %v5833_v30  ;;  %v5831_v37 = vadd.f32 %v5815_v31, %v5783_v16  ;;  %8165 = vtanh.f32 %v5739_v32  ;;  %v5550_v39 = vadd.f32 %v5525_v35, %v5373_v29 }
 0xa36   : > { %v8154_v41 = vpop.eup %8153  ;;  %v5818_v43 = vmul.f32 %v8152_v36, %v5802_v24  ;;  %5568 = vst [vmem:[%s9053_s0 + $0x178] sm:$0xff] %v5552_v34  ;;  %v5742_v44 = vadd.f32 %v9081_v42, %v5552_v34 }
 0xa37   : > { %5847 = vst [vmem:[%s8332_s30 + $0x40] sm:$0xff] %v5831_v37  ;;  %v5816_v45 = vmul.f32 %v8154_v41, %v5800_v27  ;;  %5566 = vst [vmem:[%s9053_s0 + $0x148] sm:$0xff] %v5550_v39  ;;  %v5740_v25 = vadd.f32 %v9081_v42, %v5550_v39  ;;  %v8156_v48 = vpop.eup %8155 }
 0xa38   : > { %v5834_v46 = vadd.f32 %v5818_v43, %v5786_v33  ;;  %8167 = vtanh.f32 %v5742_v44  ;;  %v8158_v49 = vpop.eup %8157  ;;  %v5805_v51 = vsub.f32 1.0, %v8156_v48  ;;  %v5789_v55 = vmul.f32 %v8156_v48, %v5773_v50 }
 0xa39   : > { %v5832_v47 = vadd.f32 %v5816_v45, %v5784_v38  ;;  %8169 = vtanh.f32 %v5740_v25  ;;  %v8160_v52 = vpop.eup %8159  ;;  %v5803_v56 = vsub.f32 1.0, %v8158_v49  ;;  %v5787_v58 = vmul.f32 %v8158_v49, %v5771_v53 }
 0xa3a   : > { %5850 = vst [vmem:[%s8332_s30 + $0x58] sm:$0xff] %v5834_v46  ;;  %v8162_v54 = vpop.eup %8161  ;;  %v5806_v61 = vsub.f32 1.0, %v8160_v52  ;;  %v5790_v2 = vmul.f32 %v8160_v52, %v5774_v59 }
 0xa3b   : > { %5848 = vst [vmem:[%s8332_s30 + $0x48] sm:$0xff] %v5832_v47  ;;  %v5804_v1 = vsub.f32 1.0, %v8162_v54  ;;  %v5788_v4 = vmul.f32 %v8162_v54, %v5772_v62 }
 0xa40   : > { %v8164_v57 = vpop.eup %8163 }
 0xa41   : > { %v5821_v42 = vmul.f32 %v8164_v57, %v5805_v51 }
 0xa42   : > { %v8166_v60 = vpop.eup %8165 }
 0xa43   : > { %v5837_v63 = vadd.f32 %v5821_v42, %v5789_v55  ;;  %v5819_v0 = vmul.f32 %v8166_v60, %v5803_v56 }
 0xa45   : > { %v8168_v40 = vpop.eup %8167  ;;  %5853 = vst [vmem:[%s8332_s30 + $0x70] sm:$0xff] %v5837_v63  ;;  %v5835_v3 = vadd.f32 %v5819_v0, %v5787_v58 }
 0xa46   : > { %v8170_v5 = vpop.eup %8169  ;;  %v5822_v7 = vmul.f32 %v8168_v40, %v5806_v61 }
 0xa47   : > { %5851 = vst [vmem:[%s8332_s30 + $0x60] sm:$0xff] %v5835_v3  ;;  %v5820_v8 = vmul.f32 %v8170_v5, %v5804_v1 }
 0xa48   : > { %v5838_v6 = vadd.f32 %v5822_v7, %v5790_v2 }
 0xa49   : > { %v5836_v9 = vadd.f32 %v5820_v8, %v5788_v4 }
 0xa4a   : > { %5854 = vst [vmem:[%s8332_s30 + $0x78] sm:$0xff] %v5838_v6 }
 0xa4b   : > { %5852 = vst [vmem:[%s8332_s30 + $0x68] sm:$0xff] %v5836_v9 }
 0xa4c PF: > { %s16_s25 = sadd.s32 1, %s8209_s25   ;;  %s9201_s21 = smov %s8201_s23 }
 0xa4d   : > { %p13_p9 = scmp.ge.s32.totalorder %s16_s25, 20   ;;  %s9202_s22 = smov %s8205_s24 }
 0xa4e   : > { %s9203_s23 = smov %s9206_s26  ;;  %s9204_s24 = smov %s9210_s27 }
 0xa4f   :  { %15 = sbr.rel (!%p13_p9) target bundleno = 3 (0x3), region = 122 }

</bundles_post_ra>
